<compile_context>
chip_gen: v7x
topology: tpu7x:2x2x1
jax: 0.10.0
libtpu: 0.0.40
codegen_flags: <defaults>
</compile_context>

<pallas_src>
import numpy as np

import jax
import jax.numpy as jnp
from jax.experimental import pallas as pl
from jax.experimental.pallas import tpu as pltpu

NDF = 8        # opt['ndf'] (small for the demo)
NC = 3         # image channels
EPS = 1e-5     # BatchNorm eps (PyTorch default)
LANES = 128    # TPU lane width


# ---------------------------------------------------------------------------
# Fused layer:  GEMM (+ BatchNorm stats + normalize + activation)  in one
# pallas_call, operating on a lane-dense (M/G, 128) packed slab.
# ---------------------------------------------------------------------------
def _fused_layer_call(a, b, col_chan, gamma, beta, act, alpha, out_dtype):
    """Compute act(BN(a @ b)) fused in a single Pallas kernel.

    a        : (M, K) patch matrix (any float dtype, cast to bf16).
    b        : (K, C_eff) GEMM weights.
    col_chan : np.int array (C_eff,) mapping GEMM column -> BN channel,
               or None for layers without BatchNorm/activation statistics.
    gamma/beta: (C,) BN affine params (or None).
    act      : "leaky_relu" | "relu" | None.

    Returns an (M, C_eff) slab (out_dtype).
    """
    M, K = a.shape
    C_eff = b.shape[1]
    assert C_eff <= LANES
    # Smallest divisor of 128 that holds C_eff columns; pack G rows per vreg row.
    Cp = next(d for d in (1, 2, 4, 8, 16, 32, 64, 128) if d >= C_eff)
    G = LANES // Cp
    # TODO(synk): general M would need row padding + masked stats; all layer
    # sizes of this model satisfy M % G == 0 so we keep the kernel mask-free.
    assert M % G == 0, (M, G)
    Mr = M // G

    # Lane-dense packing: G consecutive rows of A share one 128-lane row, the
    # weight slab becomes block-diagonal so the GEMM output is already packed.
    a_big = a.reshape(Mr, G * K).astype(jnp.bfloat16)
    wz = jnp.zeros((K, Cp), jnp.float32).at[:, :C_eff].set(b.astype(jnp.float32))
    w_big = jax.scipy.linalg.block_diag(*([wz] * G)).astype(jnp.bfloat16)

    use_bn = col_chan is not None
    if use_bn:
        chan = np.full(LANES, -1, np.int64)
        for g in range(G):
            chan[g * Cp: g * Cp + C_eff] = col_chan
        valid = chan >= 0
        # Q[i, j] = 1 iff lanes i and j carry the same BN channel.
        q_np = ((chan[:, None] == chan[None, :])
                & valid[:, None] & valid[None, :]).astype(np.float32)
        q = jnp.asarray(q_np)
        col_mult = q_np.sum(axis=0)                      # lanes per channel
        inv_cnt = jnp.asarray(
            np.where(valid, 1.0 / np.maximum(Mr * col_mult, 1.0), 0.0)
            .astype(np.float32)).reshape(1, LANES)
        gidx = np.where(valid, chan, 0)
        valid_f = jnp.asarray(valid.astype(np.float32))
        gamma_big = (gamma.astype(jnp.float32)[gidx] * valid_f).reshape(1, LANES)
        beta_big = (beta.astype(jnp.float32)[gidx] * valid_f).reshape(1, LANES)

    def kernel(*refs):
        if use_bn:
            a_ref, b_ref, q_ref, ic_ref, g_ref, bt_ref, o_ref = refs
        else:
            a_ref, b_ref, o_ref = refs
        # bf16 operands, f32 accumulation on the MXU.
        y = jnp.dot(a_ref[...], b_ref[...], preferred_element_type=jnp.float32)
        if use_bn:
            qm = q_ref[...]                              # (128, 128) 0/1
            ic = ic_ref[...]                             # (1, 128) 1/count
            # Channel totals, broadcast back per-lane via the 0/1 matmul.
            mean = jnp.sum(jnp.dot(y, qm, preferred_element_type=jnp.float32),
                           axis=0, keepdims=True) * ic
            d = y - mean
            # Two-pass (centered) variance: numerically safer than E[x^2]-E[x]^2.
            var = jnp.sum(jnp.dot(d * d, qm, preferred_element_type=jnp.float32),
                          axis=0, keepdims=True) * ic
            y = d * (g_ref[...] * jax.lax.rsqrt(var + EPS)) + bt_ref[...]
        if act == "leaky_relu":
            y = jnp.where(y > 0, y, alpha * y)
        elif act == "relu":
            y = jnp.maximum(y, 0.0)
        o_ref[...] = y.astype(o_ref.dtype)

    args = (a_big, w_big)
    if use_bn:
        args = args + (q, inv_cnt, gamma_big, beta_big)

    out = pl.pallas_call(
        kernel,
        out_shape=jax.ShapeDtypeStruct((Mr, LANES), out_dtype),
        compiler_params=pltpu.CompilerParams(
            vmem_limit_bytes=32 * 1024 * 1024),
    )(*args)

    # (Mr, 128) row-major is exactly (M, Cp); drop padded columns (if any).
    return out.reshape(M, Cp)[:, :C_eff]


# ---------------------------------------------------------------------------
# Layout glue (im2col / subpixel weight repack / depth-to-space).
# TODO(synk): im2col patch extraction stays as XLA slicing in the wrapper
# rather than in-kernel pl.ds tap loops.
# ---------------------------------------------------------------------------
def _im2col_nhwc(x, k, stride, pad):
    """x: (N, H, W, C) -> (N*Ho*Wo, C*k*k) patches, K-index = c*k*k + i*k + j."""
    N, H, W, C = x.shape
    xp = jnp.pad(x, ((0, 0), (pad, pad), (pad, pad), (0, 0)))
    Ho = (H + 2 * pad - k) // stride + 1
    Wo = (W + 2 * pad - k) // stride + 1
    taps = []
    for i in range(k):
        for j in range(k):
            taps.append(xp[:, i:i + stride * (Ho - 1) + 1:stride,
                           j:j + stride * (Wo - 1) + 1:stride, :])
    p = jnp.stack(taps, axis=0).reshape(k, k, N, Ho, Wo, C)
    p = p.transpose(2, 3, 4, 5, 0, 1)                # (N, Ho, Wo, C, ki, kj)
    return p.reshape(N * Ho * Wo, C * k * k), Ho, Wo


def _convT_gemm_weights(w_t):
    """ConvTranspose2d(k=4, s=2, p=1) weight (Cin, Cout, 4, 4) -> subpixel GEMM
    weights B of shape (Cin*9, 4*Cout); column (rh*2+rw)*Cout + co, row
    ci*9 + dh*3 + dw, where (dh, dw) index a stride-1 3x3 patch (pad=1) and
    (rh, rw) the 2x2 output parity.  Derivation: oh = 2p + rh receives taps
    (ih=p-1+dh, kh) with kh = oh + 1 - 2*ih, i.e. kh = {3,1,-} for rh=0 and
    {-,2,0} for rh=1 (and identically in w)."""
    Cin, Cout, _, _ = w_t.shape
    kmap = {(0, 0): 3, (0, 1): 1, (1, 1): 2, (1, 2): 0}    # (parity, d) -> k tap
    zeros = jnp.zeros((Cin, Cout), w_t.dtype)
    rows = []
    for dh in range(3):
        for dw in range(3):
            cols = []
            for rh in range(2):
                for rw in range(2):
                    kh = kmap.get((rh, dh))
                    kw = kmap.get((rw, dw))
                    cols.append(zeros if (kh is None or kw is None)
                                else w_t[:, :, kh, kw])
            rows.append(jnp.concatenate(cols, axis=1))      # (Cin, 4*Cout)
    b = jnp.stack(rows, axis=1)                             # (Cin, 9, 4*Cout)
    return b.reshape(Cin * 9, 4 * Cout)


def conv_bn_act(x, w, gamma, beta, act, out_dtype, stride=2, pad=1):
    """x: (N,H,W,Cin) NHWC; w: (Cout,Cin,k,k) PyTorch Conv2d weight (no bias)."""
    N = x.shape[0]
    Cout, _, k, _ = w.shape
    a, Ho, Wo = _im2col_nhwc(x, k, stride, pad)
    b = w.reshape(Cout, -1).T                                # (Cin*k*k, Cout)
    chan = np.arange(Cout) if gamma is not None else None
    y = _fused_layer_call(a, b, chan, gamma, beta, act, 0.2, out_dtype)
    return y.reshape(N, Ho, Wo, Cout)


def convT_bn_act(x, w_t, gamma, beta, act, out_dtype):
    """x: (N,H,W,Cin) NHWC; w_t: (Cin,Cout,4,4); stride 2, pad 1 -> (N,2H,2W,Cout)."""
    N, H, W, _ = x.shape
    Cout = w_t.shape[1]
    a, _, _ = _im2col_nhwc(x, 3, 1, 1)                       # (N*H*W, Cin*9)
    b = _convT_gemm_weights(w_t)                             # (Cin*9, 4*Cout)
    chan = np.tile(np.arange(Cout), 4) if gamma is not None else None
    y = _fused_layer_call(a, b, chan, gamma, beta, act, 0.2, out_dtype)
    # depth-to-space: column (rh*2+rw)*Cout + c -> output pixel (2p_h+rh, 2p_w+rw).
    y = y.reshape(N, H, W, 2, 2, Cout).transpose(0, 1, 3, 2, 4, 5)
    return y.reshape(N, 2 * H, 2 * W, Cout)


# ---------------------------------------------------------------------------
# Parameters & forward
# ---------------------------------------------------------------------------
def init_params(key):
    ks = jax.random.split(key, 6)
    std = 0.02

    def w(k, shape):
        return std * jax.random.normal(k, shape, jnp.float32)

    def bn(c):
        return jnp.ones((c,), jnp.float32), jnp.zeros((c,), jnp.float32)

    p = {
        # encoder Conv2d weights: (Cout, Cin, 4, 4)
        "enc_w1": w(ks[0], (NDF, NC, 4, 4)),
        "enc_w2": w(ks[1], (NDF * 2, NDF, 4, 4)),
        "enc_w3": w(ks[2], (NDF * 4, NDF * 2, 4, 4)),
        # decoder ConvTranspose2d weights: (Cin, Cout, 4, 4)
        "dec_w1": w(ks[3], (NDF * 4, NDF * 2, 4, 4)),
        "dec_w2": w(ks[4], (NDF * 2, NDF, 4, 4)),
        "dec_w3": w(ks[5], (NDF, NC, 4, 4)),
    }
    p["enc_bn1_g"], p["enc_bn1_b"] = bn(NDF)
    p["enc_bn2_g"], p["enc_bn2_b"] = bn(NDF * 2)
    p["dec_bn1_g"], p["dec_bn1_b"] = bn(NDF * 2)
    p["dec_bn2_g"], p["dec_bn2_b"] = bn(NDF)
    return p


def autoenc_forward(params, x):
    """x: (N, 3, 64, 64) NCHW float32 -> (N, 3, 64, 64) NCHW float32."""
    bf16 = jnp.bfloat16
    h = jnp.transpose(x, (0, 2, 3, 1)).astype(bf16)          # NCHW -> NHWC once

    # ----- encoder -----
    h = conv_bn_act(h, params["enc_w1"], params["enc_bn1_g"],
                    params["enc_bn1_b"], "leaky_relu", bf16)   # 64 -> 32
    h = conv_bn_act(h, params["enc_w2"], params["enc_bn2_g"],
                    params["enc_bn2_b"], "leaky_relu", bf16)   # 32 -> 16
    h = conv_bn_act(h, params["enc_w3"], None, None, None, bf16)  # 16 -> 8
    # enc returns view(-1, 1); autoenc views back to (N, ndf*4, 8, 8): identity.

    # ----- decoder -----
    h = convT_bn_act(h, params["dec_w1"], params["dec_bn1_g"],
                     params["dec_bn1_b"], "relu", bf16)        # 8 -> 16
    h = convT_bn_act(h, params["dec_w2"], params["dec_bn2_g"],
                     params["dec_bn2_b"], "relu", bf16)        # 16 -> 32
    h = convT_bn_act(h, params["dec_w3"], None, None, None, jnp.float32)  # 32 -> 64

    return jnp.transpose(h, (0, 3, 1, 2))                     # NHWC -> NCHW once


if __name__ == "__main__":
    root = jax.random.PRNGKey(0)
    k_param, k_input = jax.random.split(root)
    params = init_params(k_param)
    # imageSize must be 64 for the enc-output view(-1, ndf*4, 8, 8) to hold.
    x = jax.random.normal(k_input, (2, NC, 64, 64), jnp.float32)

    y = jax.jit(autoenc_forward)(params, x)
    y = jax.block_until_ready(y)
    assert y.shape == (2, NC, 64, 64), y.shape
    assert y.dtype == jnp.float32
    assert bool(jnp.all(jnp.isfinite(y)))
    print("KERNEL_OK")
</pallas_src>

<mosaic_0001>
module attributes {stable_mosaic.version = 11 : i64} {
  func.func @kernel(%arg0: memref<128x768xbf16, #tpu.memory_space<vmem>>, %arg1: memref<768x128xbf16, #tpu.memory_space<vmem>>, %arg2: memref<128x128xf32, #tpu.memory_space<vmem>>, %arg3: memref<1x128xf32, #tpu.memory_space<vmem>>, %arg4: memref<1x128xf32, #tpu.memory_space<vmem>>, %arg5: memref<1x128xf32, #tpu.memory_space<vmem>>, %arg6: memref<128x128xbf16, #tpu.memory_space<vmem>>) attributes {dimension_semantics = [], scalar_prefetch = 0 : i64, scratch_operands = 0 : i64, tpu.core_type = #tpu.core_type<tc>} {
    %c0 = arith.constant 0 : index
    %c0_0 = arith.constant 0 : index
    %0 = vector.load %arg0[%c0, %c0_0] : memref<128x768xbf16, #tpu.memory_space<vmem>>, vector<128x768xbf16>
    %c0_1 = arith.constant 0 : index
    %c0_2 = arith.constant 0 : index
    %1 = vector.load %arg1[%c0_1, %c0_2] : memref<768x128xbf16, #tpu.memory_space<vmem>>, vector<768x128xbf16>
    %cst = arith.constant dense<0.000000e+00> : vector<128x128xf32>
    %2 = tpu.matmul %0, %1, %cst {dimension_numbers = #tpu.dot_dimension_numbers<[1], [0], [0], [1], [0, 0, 1, 1], [], []>} : vector<128x768xbf16>, vector<768x128xbf16>, vector<128x128xf32> -> vector<128x128xf32>
    %c0_3 = arith.constant 0 : index
    %c0_4 = arith.constant 0 : index
    %3 = vector.load %arg2[%c0_3, %c0_4] : memref<128x128xf32, #tpu.memory_space<vmem>>, vector<128x128xf32>
    %c0_5 = arith.constant 0 : index
    %c0_6 = arith.constant 0 : index
    %4 = vector.load %arg3[%c0_5, %c0_6] : memref<1x128xf32, #tpu.memory_space<vmem>>, vector<1x128xf32>
    %cst_7 = arith.constant dense<0.000000e+00> : vector<128x128xf32>
    %5 = tpu.matmul %2, %3, %cst_7 {dimension_numbers = #tpu.dot_dimension_numbers<[1], [0], [0], [1], [0, 0, 1, 1], [], []>} : vector<128x128xf32>, vector<128x128xf32>, vector<128x128xf32> -> vector<128x128xf32>
    %cst_8 = arith.constant dense<0.000000e+00> : vector<128xf32>
    %6 = vector.multi_reduction <add>, %5, %cst_8 [0] : vector<128x128xf32> to vector<128xf32>
    %7 = vector.shape_cast %6 : vector<128xf32> to vector<1x128xf32>
    %8 = arith.mulf %7, %4 : vector<1x128xf32>
    %9 = vector.broadcast %8 : vector<1x128xf32> to vector<128x128xf32>
    %10 = arith.subf %2, %9 : vector<128x128xf32>
    %11 = arith.mulf %10, %10 : vector<128x128xf32>
    %cst_9 = arith.constant dense<0.000000e+00> : vector<128x128xf32>
    %12 = tpu.matmul %11, %3, %cst_9 {dimension_numbers = #tpu.dot_dimension_numbers<[1], [0], [0], [1], [0, 0, 1, 1], [], []>} : vector<128x128xf32>, vector<128x128xf32>, vector<128x128xf32> -> vector<128x128xf32>
    %cst_10 = arith.constant dense<0.000000e+00> : vector<128xf32>
    %13 = vector.multi_reduction <add>, %12, %cst_10 [0] : vector<128x128xf32> to vector<128xf32>
    %14 = vector.shape_cast %13 : vector<128xf32> to vector<1x128xf32>
    %15 = arith.mulf %14, %4 : vector<1x128xf32>
    %c0_11 = arith.constant 0 : index
    %c0_12 = arith.constant 0 : index
    %16 = vector.load %arg4[%c0_11, %c0_12] : memref<1x128xf32, #tpu.memory_space<vmem>>, vector<1x128xf32>
    %cst_13 = arith.constant 9.99999974E-6 : f32
    %17 = vector.broadcast %cst_13 : f32 to vector<1x128xf32>
    %18 = arith.addf %15, %17 : vector<1x128xf32>
    %19 = math.rsqrt %18 : vector<1x128xf32>
    %20 = arith.mulf %16, %19 : vector<1x128xf32>
    %21 = vector.broadcast %20 : vector<1x128xf32> to vector<128x128xf32>
    %22 = arith.mulf %10, %21 : vector<128x128xf32>
    %c0_14 = arith.constant 0 : index
    %c0_15 = arith.constant 0 : index
    %23 = vector.load %arg5[%c0_14, %c0_15] : memref<1x128xf32, #tpu.memory_space<vmem>>, vector<1x128xf32>
    %24 = vector.broadcast %23 : vector<1x128xf32> to vector<128x128xf32>
    %25 = arith.addf %22, %24 : vector<128x128xf32>
    %cst_16 = arith.constant 0.000000e+00 : f32
    %26 = vector.broadcast %cst_16 : f32 to vector<128x128xf32>
    %27 = arith.cmpf ogt, %25, %26 : vector<128x128xf32>
    %cst_17 = arith.constant 2.000000e-01 : f32
    %28 = vector.broadcast %cst_17 : f32 to vector<128x128xf32>
    %29 = arith.mulf %28, %25 : vector<128x128xf32>
    %30 = arith.select %27, %25, %29 : vector<128x128xi1>, vector<128x128xf32>
    %31 = arith.truncf %30 : vector<128x128xf32> to vector<128x128xbf16>
    %c0_18 = arith.constant 0 : index
    %c0_19 = arith.constant 0 : index
    %32 = vector.load %arg6[%c0_18, %c0_19] : memref<128x128xbf16, #tpu.memory_space<vmem>>, vector<128x128xbf16>
    tpu.vector_store %arg6[%c0_18, %c0_19], %31 {strides = array<i32>} : memref<128x128xbf16, #tpu.memory_space<vmem>>, vector<128x128xbf16>,
    return
  }
}

module attributes {stable_mosaic.version = 11 : i64} {
  func.func @kernel(%arg0: memref<64x1024xbf16, #tpu.memory_space<vmem>>, %arg1: memref<1024x128xbf16, #tpu.memory_space<vmem>>, %arg2: memref<128x128xf32, #tpu.memory_space<vmem>>, %arg3: memref<1x128xf32, #tpu.memory_space<vmem>>, %arg4: memref<1x128xf32, #tpu.memory_space<vmem>>, %arg5: memref<1x128xf32, #tpu.memory_space<vmem>>, %arg6: memref<64x128xbf16, #tpu.memory_space<vmem>>) attributes {dimension_semantics = [], scalar_prefetch = 0 : i64, scratch_operands = 0 : i64, tpu.core_type = #tpu.core_type<tc>} {
    %c0 = arith.constant 0 : index
    %c0_0 = arith.constant 0 : index
    %0 = vector.load %arg0[%c0, %c0_0] : memref<64x1024xbf16, #tpu.memory_space<vmem>>, vector<64x1024xbf16>
    %c0_1 = arith.constant 0 : index
    %c0_2 = arith.constant 0 : index
    %1 = vector.load %arg1[%c0_1, %c0_2] : memref<1024x128xbf16, #tpu.memory_space<vmem>>, vector<1024x128xbf16>
    %cst = arith.constant dense<0.000000e+00> : vector<64x128xf32>
    %2 = tpu.matmul %0, %1, %cst {dimension_numbers = #tpu.dot_dimension_numbers<[1], [0], [0], [1], [0, 0, 1, 1], [], []>} : vector<64x1024xbf16>, vector<1024x128xbf16>, vector<64x128xf32> -> vector<64x128xf32>
    %c0_3 = arith.constant 0 : index
    %c0_4 = arith.constant 0 : index
    %3 = vector.load %arg2[%c0_3, %c0_4] : memref<128x128xf32, #tpu.memory_space<vmem>>, vector<128x128xf32>
    %c0_5 = arith.constant 0 : index
    %c0_6 = arith.constant 0 : index
    %4 = vector.load %arg3[%c0_5, %c0_6] : memref<1x128xf32, #tpu.memory_space<vmem>>, vector<1x128xf32>
    %cst_7 = arith.constant dense<0.000000e+00> : vector<64x128xf32>
    %5 = tpu.matmul %2, %3, %cst_7 {dimension_numbers = #tpu.dot_dimension_numbers<[1], [0], [0], [1], [0, 0, 1, 1], [], []>} : vector<64x128xf32>, vector<128x128xf32>, vector<64x128xf32> -> vector<64x128xf32>
    %cst_8 = arith.constant dense<0.000000e+00> : vector<128xf32>
    %6 = vector.multi_reduction <add>, %5, %cst_8 [0] : vector<64x128xf32> to vector<128xf32>
    %7 = vector.shape_cast %6 : vector<128xf32> to vector<1x128xf32>
    %8 = arith.mulf %7, %4 : vector<1x128xf32>
    %9 = vector.broadcast %8 : vector<1x128xf32> to vector<64x128xf32>
    %10 = arith.subf %2, %9 : vector<64x128xf32>
    %11 = arith.mulf %10, %10 : vector<64x128xf32>
    %cst_9 = arith.constant dense<0.000000e+00> : vector<64x128xf32>
    %12 = tpu.matmul %11, %3, %cst_9 {dimension_numbers = #tpu.dot_dimension_numbers<[1], [0], [0], [1], [0, 0, 1, 1], [], []>} : vector<64x128xf32>, vector<128x128xf32>, vector<64x128xf32> -> vector<64x128xf32>
    %cst_10 = arith.constant dense<0.000000e+00> : vector<128xf32>
    %13 = vector.multi_reduction <add>, %12, %cst_10 [0] : vector<64x128xf32> to vector<128xf32>
    %14 = vector.shape_cast %13 : vector<128xf32> to vector<1x128xf32>
    %15 = arith.mulf %14, %4 : vector<1x128xf32>
    %c0_11 = arith.constant 0 : index
    %c0_12 = arith.constant 0 : index
    %16 = vector.load %arg4[%c0_11, %c0_12] : memref<1x128xf32, #tpu.memory_space<vmem>>, vector<1x128xf32>
    %cst_13 = arith.constant 9.99999974E-6 : f32
    %17 = vector.broadcast %cst_13 : f32 to vector<1x128xf32>
    %18 = arith.addf %15, %17 : vector<1x128xf32>
    %19 = math.rsqrt %18 : vector<1x128xf32>
    %20 = arith.mulf %16, %19 : vector<1x128xf32>
    %21 = vector.broadcast %20 : vector<1x128xf32> to vector<64x128xf32>
    %22 = arith.mulf %10, %21 : vector<64x128xf32>
    %c0_14 = arith.constant 0 : index
    %c0_15 = arith.constant 0 : index
    %23 = vector.load %arg5[%c0_14, %c0_15] : memref<1x128xf32, #tpu.memory_space<vmem>>, vector<1x128xf32>
    %24 = vector.broadcast %23 : vector<1x128xf32> to vector<64x128xf32>
    %25 = arith.addf %22, %24 : vector<64x128xf32>
    %cst_16 = arith.constant 0.000000e+00 : f32
    %26 = vector.broadcast %cst_16 : f32 to vector<64x128xf32>
    %27 = arith.cmpf ogt, %25, %26 : vector<64x128xf32>
    %cst_17 = arith.constant 2.000000e-01 : f32
    %28 = vector.broadcast %cst_17 : f32 to vector<64x128xf32>
    %29 = arith.mulf %28, %25 : vector<64x128xf32>
    %30 = arith.select %27, %25, %29 : vector<64x128xi1>, vector<64x128xf32>
    %31 = arith.truncf %30 : vector<64x128xf32> to vector<64x128xbf16>
    %c0_18 = arith.constant 0 : index
    %c0_19 = arith.constant 0 : index
    %32 = vector.load %arg6[%c0_18, %c0_19] : memref<64x128xbf16, #tpu.memory_space<vmem>>, vector<64x128xbf16>
    tpu.vector_store %arg6[%c0_18, %c0_19], %31 {strides = array<i32>} : memref<64x128xbf16, #tpu.memory_space<vmem>>, vector<64x128xbf16>,
    return
  }
}

module attributes {stable_mosaic.version = 11 : i64} {
  func.func @kernel(%arg0: memref<32x1024xbf16, #tpu.memory_space<vmem>>, %arg1: memref<1024x128xbf16, #tpu.memory_space<vmem>>, %arg2: memref<32x128xbf16, #tpu.memory_space<vmem>>) attributes {dimension_semantics = [], scalar_prefetch = 0 : i64, scratch_operands = 0 : i64, tpu.core_type = #tpu.core_type<tc>} {
    %c0 = arith.constant 0 : index
    %c0_0 = arith.constant 0 : index
    %0 = vector.load %arg0[%c0, %c0_0] : memref<32x1024xbf16, #tpu.memory_space<vmem>>, vector<32x1024xbf16>
    %c0_1 = arith.constant 0 : index
    %c0_2 = arith.constant 0 : index
    %1 = vector.load %arg1[%c0_1, %c0_2] : memref<1024x128xbf16, #tpu.memory_space<vmem>>, vector<1024x128xbf16>
    %cst = arith.constant dense<0.000000e+00> : vector<32x128xf32>
    %2 = tpu.matmul %0, %1, %cst {dimension_numbers = #tpu.dot_dimension_numbers<[1], [0], [0], [1], [0, 0, 1, 1], [], []>} : vector<32x1024xbf16>, vector<1024x128xbf16>, vector<32x128xf32> -> vector<32x128xf32>
    %3 = arith.truncf %2 : vector<32x128xf32> to vector<32x128xbf16>
    %c0_3 = arith.constant 0 : index
    %c0_4 = arith.constant 0 : index
    %4 = vector.load %arg2[%c0_3, %c0_4] : memref<32x128xbf16, #tpu.memory_space<vmem>>, vector<32x128xbf16>
    tpu.vector_store %arg2[%c0_3, %c0_4], %3 {strides = array<i32>} : memref<32x128xbf16, #tpu.memory_space<vmem>>, vector<32x128xbf16>,
    return
  }
}

module attributes {stable_mosaic.version = 11 : i64} {
  func.func @kernel(%arg0: memref<64x576xbf16, #tpu.memory_space<vmem>>, %arg1: memref<576x128xbf16, #tpu.memory_space<vmem>>, %arg2: memref<128x128xf32, #tpu.memory_space<vmem>>, %arg3: memref<1x128xf32, #tpu.memory_space<vmem>>, %arg4: memref<1x128xf32, #tpu.memory_space<vmem>>, %arg5: memref<1x128xf32, #tpu.memory_space<vmem>>, %arg6: memref<64x128xbf16, #tpu.memory_space<vmem>>) attributes {dimension_semantics = [], scalar_prefetch = 0 : i64, scratch_operands = 0 : i64, tpu.core_type = #tpu.core_type<tc>} {
    %c0 = arith.constant 0 : index
    %c0_0 = arith.constant 0 : index
    %0 = vector.load %arg0[%c0, %c0_0] : memref<64x576xbf16, #tpu.memory_space<vmem>>, vector<64x576xbf16>
    %c0_1 = arith.constant 0 : index
    %c0_2 = arith.constant 0 : index
    %1 = vector.load %arg1[%c0_1, %c0_2] : memref<576x128xbf16, #tpu.memory_space<vmem>>, vector<576x128xbf16>
    %cst = arith.constant dense<0.000000e+00> : vector<64x128xf32>
    %2 = tpu.matmul %0, %1, %cst {dimension_numbers = #tpu.dot_dimension_numbers<[1], [0], [0], [1], [0, 0, 1, 1], [], []>} : vector<64x576xbf16>, vector<576x128xbf16>, vector<64x128xf32> -> vector<64x128xf32>
    %c0_3 = arith.constant 0 : index
    %c0_4 = arith.constant 0 : index
    %3 = vector.load %arg2[%c0_3, %c0_4] : memref<128x128xf32, #tpu.memory_space<vmem>>, vector<128x128xf32>
    %c0_5 = arith.constant 0 : index
    %c0_6 = arith.constant 0 : index
    %4 = vector.load %arg3[%c0_5, %c0_6] : memref<1x128xf32, #tpu.memory_space<vmem>>, vector<1x128xf32>
    %cst_7 = arith.constant dense<0.000000e+00> : vector<64x128xf32>
    %5 = tpu.matmul %2, %3, %cst_7 {dimension_numbers = #tpu.dot_dimension_numbers<[1], [0], [0], [1], [0, 0, 1, 1], [], []>} : vector<64x128xf32>, vector<128x128xf32>, vector<64x128xf32> -> vector<64x128xf32>
    %cst_8 = arith.constant dense<0.000000e+00> : vector<128xf32>
    %6 = vector.multi_reduction <add>, %5, %cst_8 [0] : vector<64x128xf32> to vector<128xf32>
    %7 = vector.shape_cast %6 : vector<128xf32> to vector<1x128xf32>
    %8 = arith.mulf %7, %4 : vector<1x128xf32>
    %9 = vector.broadcast %8 : vector<1x128xf32> to vector<64x128xf32>
    %10 = arith.subf %2, %9 : vector<64x128xf32>
    %11 = arith.mulf %10, %10 : vector<64x128xf32>
    %cst_9 = arith.constant dense<0.000000e+00> : vector<64x128xf32>
    %12 = tpu.matmul %11, %3, %cst_9 {dimension_numbers = #tpu.dot_dimension_numbers<[1], [0], [0], [1], [0, 0, 1, 1], [], []>} : vector<64x128xf32>, vector<128x128xf32>, vector<64x128xf32> -> vector<64x128xf32>
    %cst_10 = arith.constant dense<0.000000e+00> : vector<128xf32>
    %13 = vector.multi_reduction <add>, %12, %cst_10 [0] : vector<64x128xf32> to vector<128xf32>
    %14 = vector.shape_cast %13 : vector<128xf32> to vector<1x128xf32>
    %15 = arith.mulf %14, %4 : vector<1x128xf32>
    %c0_11 = arith.constant 0 : index
    %c0_12 = arith.constant 0 : index
    %16 = vector.load %arg4[%c0_11, %c0_12] : memref<1x128xf32, #tpu.memory_space<vmem>>, vector<1x128xf32>
    %cst_13 = arith.constant 9.99999974E-6 : f32
    %17 = vector.broadcast %cst_13 : f32 to vector<1x128xf32>
    %18 = arith.addf %15, %17 : vector<1x128xf32>
    %19 = math.rsqrt %18 : vector<1x128xf32>
    %20 = arith.mulf %16, %19 : vector<1x128xf32>
    %21 = vector.broadcast %20 : vector<1x128xf32> to vector<64x128xf32>
    %22 = arith.mulf %10, %21 : vector<64x128xf32>
    %c0_14 = arith.constant 0 : index
    %c0_15 = arith.constant 0 : index
    %23 = vector.load %arg5[%c0_14, %c0_15] : memref<1x128xf32, #tpu.memory_space<vmem>>, vector<1x128xf32>
    %24 = vector.broadcast %23 : vector<1x128xf32> to vector<64x128xf32>
    %25 = arith.addf %22, %24 : vector<64x128xf32>
    %cst_16 = arith.constant 0.000000e+00 : f32
    %26 = vector.broadcast %cst_16 : f32 to vector<64x128xf32>
    %27 = arith.maximumf %25, %26 : vector<64x128xf32>
    %28 = arith.truncf %27 : vector<64x128xf32> to vector<64x128xbf16>
    %c0_17 = arith.constant 0 : index
    %c0_18 = arith.constant 0 : index
    %29 = vector.load %arg6[%c0_17, %c0_18] : memref<64x128xbf16, #tpu.memory_space<vmem>>, vector<64x128xbf16>
    tpu.vector_store %arg6[%c0_17, %c0_18], %28 {strides = array<i32>} : memref<64x128xbf16, #tpu.memory_space<vmem>>, vector<64x128xbf16>,
    return
  }
}

module attributes {stable_mosaic.version = 11 : i64} {
  func.func @kernel(%arg0: memref<128x576xbf16, #tpu.memory_space<vmem>>, %arg1: memref<576x128xbf16, #tpu.memory_space<vmem>>, %arg2: memref<128x128xf32, #tpu.memory_space<vmem>>, %arg3: memref<1x128xf32, #tpu.memory_space<vmem>>, %arg4: memref<1x128xf32, #tpu.memory_space<vmem>>, %arg5: memref<1x128xf32, #tpu.memory_space<vmem>>, %arg6: memref<128x128xbf16, #tpu.memory_space<vmem>>) attributes {dimension_semantics = [], scalar_prefetch = 0 : i64, scratch_operands = 0 : i64, tpu.core_type = #tpu.core_type<tc>} {
    %c0 = arith.constant 0 : index
    %c0_0 = arith.constant 0 : index
    %0 = vector.load %arg0[%c0, %c0_0] : memref<128x576xbf16, #tpu.memory_space<vmem>>, vector<128x576xbf16>
    %c0_1 = arith.constant 0 : index
    %c0_2 = arith.constant 0 : index
    %1 = vector.load %arg1[%c0_1, %c0_2] : memref<576x128xbf16, #tpu.memory_space<vmem>>, vector<576x128xbf16>
    %cst = arith.constant dense<0.000000e+00> : vector<128x128xf32>
    %2 = tpu.matmul %0, %1, %cst {dimension_numbers = #tpu.dot_dimension_numbers<[1], [0], [0], [1], [0, 0, 1, 1], [], []>} : vector<128x576xbf16>, vector<576x128xbf16>, vector<128x128xf32> -> vector<128x128xf32>
    %c0_3 = arith.constant 0 : index
    %c0_4 = arith.constant 0 : index
    %3 = vector.load %arg2[%c0_3, %c0_4] : memref<128x128xf32, #tpu.memory_space<vmem>>, vector<128x128xf32>
    %c0_5 = arith.constant 0 : index
    %c0_6 = arith.constant 0 : index
    %4 = vector.load %arg3[%c0_5, %c0_6] : memref<1x128xf32, #tpu.memory_space<vmem>>, vector<1x128xf32>
    %cst_7 = arith.constant dense<0.000000e+00> : vector<128x128xf32>
    %5 = tpu.matmul %2, %3, %cst_7 {dimension_numbers = #tpu.dot_dimension_numbers<[1], [0], [0], [1], [0, 0, 1, 1], [], []>} : vector<128x128xf32>, vector<128x128xf32>, vector<128x128xf32> -> vector<128x128xf32>
    %cst_8 = arith.constant dense<0.000000e+00> : vector<128xf32>
    %6 = vector.multi_reduction <add>, %5, %cst_8 [0] : vector<128x128xf32> to vector<128xf32>
    %7 = vector.shape_cast %6 : vector<128xf32> to vector<1x128xf32>
    %8 = arith.mulf %7, %4 : vector<1x128xf32>
    %9 = vector.broadcast %8 : vector<1x128xf32> to vector<128x128xf32>
    %10 = arith.subf %2, %9 : vector<128x128xf32>
    %11 = arith.mulf %10, %10 : vector<128x128xf32>
    %cst_9 = arith.constant dense<0.000000e+00> : vector<128x128xf32>
    %12 = tpu.matmul %11, %3, %cst_9 {dimension_numbers = #tpu.dot_dimension_numbers<[1], [0], [0], [1], [0, 0, 1, 1], [], []>} : vector<128x128xf32>, vector<128x128xf32>, vector<128x128xf32> -> vector<128x128xf32>
    %cst_10 = arith.constant dense<0.000000e+00> : vector<128xf32>
    %13 = vector.multi_reduction <add>, %12, %cst_10 [0] : vector<128x128xf32> to vector<128xf32>
    %14 = vector.shape_cast %13 : vector<128xf32> to vector<1x128xf32>
    %15 = arith.mulf %14, %4 : vector<1x128xf32>
    %c0_11 = arith.constant 0 : index
    %c0_12 = arith.constant 0 : index
    %16 = vector.load %arg4[%c0_11, %c0_12] : memref<1x128xf32, #tpu.memory_space<vmem>>, vector<1x128xf32>
    %cst_13 = arith.constant 9.99999974E-6 : f32
    %17 = vector.broadcast %cst_13 : f32 to vector<1x128xf32>
    %18 = arith.addf %15, %17 : vector<1x128xf32>
    %19 = math.rsqrt %18 : vector<1x128xf32>
    %20 = arith.mulf %16, %19 : vector<1x128xf32>
    %21 = vector.broadcast %20 : vector<1x128xf32> to vector<128x128xf32>
    %22 = arith.mulf %10, %21 : vector<128x128xf32>
    %c0_14 = arith.constant 0 : index
    %c0_15 = arith.constant 0 : index
    %23 = vector.load %arg5[%c0_14, %c0_15] : memref<1x128xf32, #tpu.memory_space<vmem>>, vector<1x128xf32>
    %24 = vector.broadcast %23 : vector<1x128xf32> to vector<128x128xf32>
    %25 = arith.addf %22, %24 : vector<128x128xf32>
    %cst_16 = arith.constant 0.000000e+00 : f32
    %26 = vector.broadcast %cst_16 : f32 to vector<128x128xf32>
    %27 = arith.maximumf %25, %26 : vector<128x128xf32>
    %28 = arith.truncf %27 : vector<128x128xf32> to vector<128x128xbf16>
    %c0_17 = arith.constant 0 : index
    %c0_18 = arith.constant 0 : index
    %29 = vector.load %arg6[%c0_17, %c0_18] : memref<128x128xbf16, #tpu.memory_space<vmem>>, vector<128x128xbf16>
    tpu.vector_store %arg6[%c0_17, %c0_18], %28 {strides = array<i32>} : memref<128x128xbf16, #tpu.memory_space<vmem>>, vector<128x128xbf16>,
    return
  }
}

module attributes {stable_mosaic.version = 11 : i64} {
  func.func @kernel(%arg0: memref<256x576xbf16, #tpu.memory_space<vmem>>, %arg1: memref<576x128xbf16, #tpu.memory_space<vmem>>, %arg2: memref<256x128xf32, #tpu.memory_space<vmem>>) attributes {dimension_semantics = [], scalar_prefetch = 0 : i64, scratch_operands = 0 : i64, tpu.core_type = #tpu.core_type<tc>} {
    %c0 = arith.constant 0 : index
    %c0_0 = arith.constant 0 : index
    %0 = vector.load %arg0[%c0, %c0_0] : memref<256x576xbf16, #tpu.memory_space<vmem>>, vector<256x576xbf16>
    %c0_1 = arith.constant 0 : index
    %c0_2 = arith.constant 0 : index
    %1 = vector.load %arg1[%c0_1, %c0_2] : memref<576x128xbf16, #tpu.memory_space<vmem>>, vector<576x128xbf16>
    %cst = arith.constant dense<0.000000e+00> : vector<256x128xf32>
    %2 = tpu.matmul %0, %1, %cst {dimension_numbers = #tpu.dot_dimension_numbers<[1], [0], [0], [1], [0, 0, 1, 1], [], []>} : vector<256x576xbf16>, vector<576x128xbf16>, vector<256x128xf32> -> vector<256x128xf32>
    %c0_3 = arith.constant 0 : index
    %c0_4 = arith.constant 0 : index
    %3 = vector.load %arg2[%c0_3, %c0_4] : memref<256x128xf32, #tpu.memory_space<vmem>>, vector<256x128xf32>
    tpu.vector_store %arg2[%c0_3, %c0_4], %2 {strides = array<i32>} : memref<256x128xf32, #tpu.memory_space<vmem>>, vector<256x128xf32>,
    return
  }
}

</mosaic_0001>

<bundles_post_ra>
// kernel: autoenc_forward.6
= control target key start
LH: loop header
LB: loop body
LE: loop exit
PB: predicated region body
PF: predicated region fallthrough
CT: control target
= control target key end

     0   :  { %s2956_s1 = inlined_call_operand.vmem [shape: bf16[768,128], index: 1, kind: input, shape index: {}]   ;;  %s2957_s0 = inlined_call_operand.vmem [shape: bf16[128,768], index: 0, kind: input, shape index: {}]   ;;  %s2958_s2 = inlined_call_operand.vmem [shape: f32[128,128], index: 2, kind: input, shape index: {}]   ;;  %s2959_s3 = inlined_call_operand.vmem [shape: f32[1,128], index: 3, kind: input, shape index: {}]   ;;  %s2960_s4 = inlined_call_operand.vmem [shape: f32[1,128], index: 4, kind: input, shape index: {}]   ;;  %s2961_s5 = inlined_call_operand.vmem [shape: f32[1,128], index: 5, kind: input, shape index: {}]   ;;  %s2962_s6 = inlined_call_operand.vmem [shape: bf16[128,128], index: 6, kind: output, shape index: {}]  }
   0x1   :  { %v2163_v0 = vld [vmem:[%s2956_s1 + $0x40] sm:$0xff]   ;;  %v2167_v4 = vld [vmem:[%s2956_s1 + $0x48] sm:$0xff]   ;;  %v2171_v8 = vld [vmem:[%s2956_s1 + $0x50] sm:$0xff]  }
   0x2   :  { %v2164_v1 = vld [vmem:[%s2956_s1 + $0xc0] sm:$0xff]   ;;  %1731 = vmatprep.subr.bf16.mxu0 %v2163_v0  ;;  %v2168_v5 = vld [vmem:[%s2956_s1 + $0xc8] sm:$0xff]   ;;  %v2172_v9 = vld [vmem:[%s2956_s1 + $0xd0] sm:$0xff]  }
   0x3   :  { %v2165_v2 = vld [vmem:[%s2956_s1] sm:$0xff]   ;;  %1795 = vmatprep.subr.bf16.mxu1 %v2164_v1  ;;  %v2169_v6 = vld [vmem:[%s2956_s1 + $0x8] sm:$0xff]   ;;  %v2173_v10 = vld [vmem:[%s2956_s1 + $0x10] sm:$0xff]  }
   0x4   :  { %v2166_v3 = vld [vmem:[%s2956_s1 + $0x80] sm:$0xff]   ;;  %1732 = vmatpush3.bf16.msra.mxu0 %v2165_v2  ;;  %v2170_v7 = vld [vmem:[%s2956_s1 + $0x88] sm:$0xff]   ;;  %v2174_v11 = vld [vmem:[%s2956_s1 + $0x90] sm:$0xff]  }
   0x5   :  { %1796 = vmatpush3.bf16.msra.mxu1 %v2166_v3  ;;  %1733 = vmatprep.subr.bf16.mxu0 %v2167_v4  ;;  %v2175_v12 = vld [vmem:[%s2956_s1 + $0x58] sm:$0xff]   ;;  %v2179_v16 = vld [vmem:[%s2956_s1 + $0x60] sm:$0xff]   ;;  %v2183_v20 = vld [vmem:[%s2956_s1 + $0x68] sm:$0xff]  }
   0x6   :  { %1797 = vmatprep.subr.bf16.mxu1 %v2168_v5  ;;  %v2176_v13 = vld [vmem:[%s2956_s1 + $0xd8] sm:$0xff]   ;;  %v2180_v17 = vld [vmem:[%s2956_s1 + $0xe0] sm:$0xff]   ;;  %v2184_v21 = vld [vmem:[%s2956_s1 + $0xe8] sm:$0xff]  }
   0x7   :  { %v2177_v14 = vld [vmem:[%s2956_s1 + $0x18] sm:$0xff]   ;;  %v2181_v18 = vld [vmem:[%s2956_s1 + $0x20] sm:$0xff]   ;;  %v2185_v22 = vld [vmem:[%s2956_s1 + $0x28] sm:$0xff]  }
   0x8   :  { %1734 = vmatpush3.bf16.msra.mxu0 %v2169_v6  ;;  %v2178_v15 = vld [vmem:[%s2956_s1 + $0x98] sm:$0xff]   ;;  %v2182_v19 = vld [vmem:[%s2956_s1 + $0xa0] sm:$0xff]   ;;  %v2186_v23 = vld [vmem:[%s2956_s1 + $0xa8] sm:$0xff]  }
   0x9   :  { %1798 = vmatpush3.bf16.msra.mxu1 %v2170_v7  ;;  %1735 = vmatprep.subr.bf16.mxu0 %v2171_v8  ;;  %v2187_v24 = vld [vmem:[%s2956_s1 + $0x70] sm:$0xff]   ;;  %v2191_v28 = vld [vmem:[%s2956_s1 + $0x78] sm:$0xff]   ;;  %v2198_v34 = vld [vmem:[%s2957_s0 + $0x8] ss:$24 sps:$4 sm:$0xff]  }
   0xa   :  { %1799 = vmatprep.subr.bf16.mxu1 %v2172_v9  ;;  %v2188_v25 = vld [vmem:[%s2956_s1 + $0xf0] sm:$0xff]   ;;  %v2192_v29 = vld [vmem:[%s2956_s1 + $0xf8] sm:$0xff]   ;;  %v2200_v35 = vld [vmem:[%s2957_s0 + $0xc] ss:$24 sps:$4 sm:$0xff]  }
   0xb   :  { %v2189_v26 = vld [vmem:[%s2956_s1 + $0x30] sm:$0xff]   ;;  %v2193_v30 = vld [vmem:[%s2956_s1 + $0x38] sm:$0xff]   ;;  %v2201_v36 = vld [vmem:[%s2956_s1 + $0x140] sm:$0xff]   ;;  %825 = vmatprep.mubr.bf16.mxu1 %v2200_v35 }
   0xc   :  { %1736 = vmatpush3.bf16.msra.mxu0 %v2173_v10  ;;  %v2190_v27 = vld [vmem:[%s2956_s1 + $0xb0] sm:$0xff]   ;;  %v2194_v31 = vld [vmem:[%s2956_s1 + $0xb8] sm:$0xff]   ;;  %v2202_v37 = vld [vmem:[%s2956_s1 + $0x100] sm:$0xff]  }
   0xd   :  { %1800 = vmatpush3.bf16.msra.mxu1 %v2174_v11  ;;  %1737 = vmatprep.subr.bf16.mxu0 %v2175_v12  ;;  %v2195_v32 = vld [vmem:[%s2957_s0] ss:$24 sps:$4 sm:$0xff]   ;;  %v2197_v33 = vld [vmem:[%s2957_s0 + $0x4] ss:$24 sps:$4 sm:$0xff]   ;;  %v2203_v38 = vld [vmem:[%s2957_s0 + $0x34] ss:$24 sps:$4 sm:$0xff]  }
   0xe   :  { %1801 = vmatprep.subr.bf16.mxu1 %v2176_v13  ;;  %728 = vmatprep.mubr.bf16.mxu0 %v2197_v33  ;;  %v2205_v39 = vld [vmem:[%s2957_s0 + $0x3c] ss:$24 sps:$4 sm:$0xff]   ;;  %v2207_v40 = vld [vmem:[%s2957_s0 + $0x30] ss:$24 sps:$4 sm:$0xff]   ;;  %v2213_v45 = vld [vmem:[%s2957_s0 + $0x6c] ss:$24 sps:$4 sm:$0xff]  }
   0xf   :  { %v2208_v41 = vld [vmem:[%s2957_s0 + $0x38] ss:$24 sps:$4 sm:$0xff]   ;;  %v2209_v42 = vld [vmem:[%s2956_s1 + $0x148] sm:$0xff]   ;;  %v2211_v44 = vld [vmem:[%s2957_s0 + $0x64] ss:$24 sps:$4 sm:$0xff]  }
  0x10   :  { %1738 = vmatpush3.bf16.msra.mxu0 %v2177_v14  ;;  %v2210_v43 = vld [vmem:[%s2956_s1 + $0x108] sm:$0xff]   ;;  %v2217_v46 = vld [vmem:[%s2956_s1 + $0x150] sm:$0xff]   ;;  %v2215_v48 = vld [vmem:[%s2957_s0 + $0x60] ss:$24 sps:$4 sm:$0xff]  }
  0x11   :  { %1802 = vmatpush3.bf16.msra.mxu1 %v2178_v15  ;;  %1739 = vmatprep.subr.bf16.mxu0 %v2179_v16  ;;  %v2218_v47 = vld [vmem:[%s2956_s1 + $0x110] sm:$0xff]   ;;  %v2216_v49 = vld [vmem:[%s2957_s0 + $0x68] ss:$24 sps:$4 sm:$0xff]   ;;  %v2225_v52 = vld [vmem:[%s2956_s1 + $0x158] sm:$0xff]  }
  0x12   :  { %1803 = vmatprep.subr.bf16.mxu1 %v2180_v17  ;;  %v2219_v50 = vld [vmem:[%s2957_s0 + $0x94] ss:$24 sps:$4 sm:$0xff]   ;;  %v2226_v53 = vld [vmem:[%s2956_s1 + $0x118] sm:$0xff]   ;;  %v2233_v54 = vld [vmem:[%s2956_s1 + $0x160] sm:$0xff]  }
  0x13   :  { %v2221_v51 = vld [vmem:[%s2957_s0 + $0x9c] ss:$24 sps:$4 sm:$0xff]   ;;  %v2234_v55 = vld [vmem:[%s2956_s1 + $0x120] sm:$0xff]   ;;  %v2223_v56 = vld [vmem:[%s2957_s0 + $0x90] ss:$24 sps:$4 sm:$0xff]  }
  0x14   :  { %1740 = vmatpush3.bf16.msra.mxu0 %v2181_v18  ;;  %v2224_v57 = vld [vmem:[%s2957_s0 + $0x98] ss:$24 sps:$4 sm:$0xff]   ;;  %v2227_v58 = vld [vmem:[%s2957_s0 + $0xc4] ss:$24 sps:$4 sm:$0xff]   ;;  %v2241_v60 = vld [vmem:[%s2956_s1 + $0x168] sm:$0xff]  }
  0x15   :  { %1804 = vmatpush3.bf16.msra.mxu1 %v2182_v19  ;;  %1741 = vmatprep.subr.bf16.mxu0 %v2183_v20  ;;  %v2229_v59 = vld [vmem:[%s2957_s0 + $0xcc] ss:$24 sps:$4 sm:$0xff]   ;;  %v2231_v62 = vld [vmem:[%s2957_s0 + $0xc0] ss:$24 sps:$4 sm:$0xff]   ;;  %v2249_v0 = vld [vmem:[%s2956_s1 + $0x170] sm:$0xff]  }
  0x16   :  { %1805 = vmatprep.subr.bf16.mxu1 %v2184_v21  ;;  %v2242_v61 = vld [vmem:[%s2956_s1 + $0x128] sm:$0xff]   ;;  %v2250_v1 = vld [vmem:[%s2956_s1 + $0x130] sm:$0xff]   ;;  %v2257_v4 = vld [vmem:[%s2956_s1 + $0x178] sm:$0xff]  }
  0x17   :  { %v2232_v63 = vld [vmem:[%s2957_s0 + $0xc8] ss:$24 sps:$4 sm:$0xff]   ;;  %v2235_v2 = vld [vmem:[%s2957_s0 + $0xf4] ss:$24 sps:$4 sm:$0xff]   ;;  %v2258_v5 = vld [vmem:[%s2956_s1 + $0x138] sm:$0xff]  }
  0x18   :  { %1742 = vmatpush3.bf16.msra.mxu0 %v2185_v22  ;;  %v2237_v3 = vld [vmem:[%s2957_s0 + $0xfc] ss:$24 sps:$4 sm:$0xff]   ;;  %v2239_v6 = vld [vmem:[%s2957_s0 + $0xf0] ss:$24 sps:$4 sm:$0xff]   ;;  %v2245_v9 = vld [vmem:[%s2957_s0 + $0x12c] ss:$24 sps:$4 sm:$0xff]  }
  0x19   :  { %1806 = vmatpush3.bf16.msra.mxu1 %v2186_v23  ;;  %1743 = vmatprep.subr.bf16.mxu0 %v2187_v24  ;;  %v2240_v7 = vld [vmem:[%s2957_s0 + $0xf8] ss:$24 sps:$4 sm:$0xff]   ;;  %v2243_v8 = vld [vmem:[%s2957_s0 + $0x124] ss:$24 sps:$4 sm:$0xff]   ;;  %v2248_v11 = vld [vmem:[%s2957_s0 + $0x128] ss:$24 sps:$4 sm:$0xff]  }
  0x1a   :  { %1807 = vmatprep.subr.bf16.mxu1 %v2188_v25  ;;  %v2247_v10 = vld [vmem:[%s2957_s0 + $0x120] ss:$24 sps:$4 sm:$0xff]   ;;  %v2251_v12 = vld [vmem:[%s2957_s0 + $0x154] ss:$24 sps:$4 sm:$0xff]   ;;  %v2255_v14 = vld [vmem:[%s2957_s0 + $0x150] ss:$24 sps:$4 sm:$0xff]  }
  0x1b   :  { %v2253_v13 = vld [vmem:[%s2957_s0 + $0x15c] ss:$24 sps:$4 sm:$0xff]   ;;  %v2256_v15 = vld [vmem:[%s2957_s0 + $0x158] ss:$24 sps:$4 sm:$0xff]   ;;  %v988_v33 = vld [vmem:[%s2958_s2 + $0x8] sm:$0xff] }
  0x1c   :  { %1744 = vmatpush3.bf16.msra.mxu0 %v2189_v26  ;;  %v2261_v16 = vld [vmem:[%s2957_s0 + $0x14] ss:$24 sps:$4 sm:$0xff]   ;;  %v2259_v17 = vld [vmem:[%s2957_s0 + $0x10] ss:$24 sps:$4 sm:$0xff]   ;;  %v2262_v18 = vld [vmem:[%s2957_s0 + $0x44] ss:$24 sps:$4 sm:$0xff]  }
  0x1d   :  { %1808 = vmatpush3.bf16.msra.mxu1 %v2190_v27  ;;  %1745 = vmatprep.subr.bf16.mxu0 %v2191_v28  ;;  %v2264_v19 = vld [vmem:[%s2957_s0 + $0x40] ss:$24 sps:$4 sm:$0xff]   ;;  %v2265_v20 = vld [vmem:[%s2957_s0 + $0x74] ss:$24 sps:$4 sm:$0xff]   ;;  %v2267_v21 = vld [vmem:[%s2957_s0 + $0x70] ss:$24 sps:$4 sm:$0xff]  }
  0x1e   :  { %1809 = vmatprep.subr.bf16.mxu1 %v2192_v29  ;;  %v2268_v22 = vld [vmem:[%s2957_s0 + $0xa4] ss:$24 sps:$4 sm:$0xff]   ;;  %v2270_v23 = vld [vmem:[%s2957_s0 + $0xa0] ss:$24 sps:$4 sm:$0xff]   ;;  %v2271_v24 = vld [vmem:[%s2957_s0 + $0xd4] ss:$24 sps:$4 sm:$0xff]  }
  0x1f   :  { %v2273_v25 = vld [vmem:[%s2957_s0 + $0xd0] ss:$24 sps:$4 sm:$0xff]   ;;  %v2274_v26 = vld [vmem:[%s2957_s0 + $0x104] ss:$24 sps:$4 sm:$0xff]   ;;  %v2276_v27 = vld [vmem:[%s2957_s0 + $0x100] ss:$24 sps:$4 sm:$0xff]  }
  0x20   :  { %1746 = vmatpush3.bf16.msra.mxu0 %v2193_v30  ;;  %v2277_v28 = vld [vmem:[%s2957_s0 + $0x134] ss:$24 sps:$4 sm:$0xff]   ;;  %v2279_v29 = vld [vmem:[%s2957_s0 + $0x130] ss:$24 sps:$4 sm:$0xff]   ;;  %v2280_v30 = vld [vmem:[%s2957_s0 + $0x164] ss:$24 sps:$4 sm:$0xff]  }
  0x21   :  { %1810 = vmatpush3.bf16.msra.mxu1 %v2194_v31  ;;  %1859 = vmatprep.subr.bf16.mxu0 %v2201_v36  ;;  %v2282_v31 = vld [vmem:[%s2957_s0 + $0x160] ss:$24 sps:$4 sm:$0xff]   ;;  %v989_v35 = vld [vmem:[%s2958_s2 + $0x10] sm:$0xff] }
  0x22   :  { %v990_v36 = vld [vmem:[%s2958_s2 + $0x18] sm:$0xff] }
  0x23   :  { %729 = vmatmul.mubr.bf16.vlgmr.msra.gmra.mrb[0].mxu0 %v2195_v32  ;;  %v987_v32 = vld [vmem:[%s2958_s2] sm:$0xff] }
  0x24   :  { %826 = vmatmul.mubr.bf16.vlgmr.msra.gmra.mrb[0].mxu1 %v2198_v34  ;;  %1860 = vmatpush3.bf16.msra.mxu0 %v2202_v37  ;;  %v2614_v34 = vpack.c.bf16 %v988_v33, %v987_v32  ;;  %v2624_v37 = vpack.c.bf16 %v990_v36, %v989_v35 }
  0x25   :  { %736 = vmatprep.mubr.bf16.mxu0 %v2203_v38  ;;  %833 = vmatprep.mubr.bf16.mxu1 %v2205_v39  ;;  %v991_v38 = vld [vmem:[%s2958_s2 + $0x20] sm:$0xff]  ;;  %v992_v39 = vld [vmem:[%s2958_s2 + $0x28] sm:$0xff] }
  0x26   :  { %1861 = vmatprep.subr.bf16.mxu0 %v2209_v42  ;;  %2100 = vmatprep.subr.bf16.mxu1 %v2614_v34  ;;  %v994_v42 = vld [vmem:[%s2958_s2 + $0x38] sm:$0xff] }
  0x27   :  { %2102 = vmatpush3.bf16.msra.mxu1 %v2614_v34 }
  0x28   :  { %1862 = vmatpush3.bf16.msra.mxu0 %v2210_v43  ;;  %2104 = vmatprep.subr.bf16.mxu1 %v2624_v37 }
  0x29   :  { %1863 = vmatprep.subr.bf16.mxu0 %v2217_v46 }
  0x2b   :  { %737 = vmatmul.mubr.bf16.gmra.mrb[4].mxu0 %v2207_v40  ;;  %2106 = vmatpush3.bf16.msra.mxu1 %v2624_v37  ;;  %v2634_v40 = vpack.c.bf16 %v992_v39, %v991_v38 }
  0x2c   :  { %834 = vmatmul.mubr.bf16.gmra.mrb[4].mxu1 %v2208_v41  ;;  %744 = vmatprep.mubr.bf16.mxu0 %v2211_v44  ;;  %v993_v41 = vld [vmem:[%s2958_s2 + $0x30] sm:$0xff]  ;;  %v995_v44 = vld [vmem:[%s2958_s2 + $0x40] sm:$0xff] }
  0x2d   :  { %841 = vmatprep.mubr.bf16.mxu1 %v2213_v45  ;;  %1864 = vmatpush3.bf16.msra.mxu0 %v2218_v47  ;;  %v2644_v43 = vpack.c.bf16 %v994_v42, %v993_v41  ;;  %v996_v45 = vld [vmem:[%s2958_s2 + $0x48] sm:$0xff]  ;;  %v997_v47 = vld [vmem:[%s2958_s2 + $0x50] sm:$0xff] }
  0x2e   :  { %1865 = vmatprep.subr.bf16.mxu0 %v2225_v52  ;;  %2108 = vmatprep.subr.bf16.mxu1 %v2634_v40  ;;  %v2654_v46 = vpack.c.bf16 %v996_v45, %v995_v44 }
  0x2f   :  { %2110 = vmatpush3.bf16.msra.mxu1 %v2634_v40 }
  0x30   :  { %2112 = vmatprep.subr.bf16.mxu1 %v2644_v43 }
  0x31   :  { %1866 = vmatpush3.bf16.msra.mxu0 %v2226_v53  ;;  %v1001_v53 = vld [vmem:[%s2958_s2 + $0x70] sm:$0xff] }
  0x32   :  { %1867 = vmatprep.subr.bf16.mxu0 %v2233_v54  ;;  %v1002_v54 = vld [vmem:[%s2958_s2 + $0x78] sm:$0xff] }
  0x33   :  { %745 = vmatmul.mubr.bf16.gmra.mrb[8].mxu0 %v2215_v48  ;;  %2114 = vmatpush3.bf16.msra.mxu1 %v2644_v43  ;;  %v998_v48 = vld [vmem:[%s2958_s2 + $0x58] sm:$0xff] }
  0x34   :  { %842 = vmatmul.mubr.bf16.gmra.mrb[8].mxu1 %v2216_v49  ;;  %752 = vmatprep.mubr.bf16.mxu0 %v2219_v50  ;;  %v2664_v49 = vpack.c.bf16 %v998_v48, %v997_v47  ;;  %v999_v50 = vld [vmem:[%s2958_s2 + $0x60] sm:$0xff] }
  0x35   :  { %849 = vmatprep.mubr.bf16.mxu1 %v2221_v51  ;;  %1868 = vmatpush3.bf16.msra.mxu0 %v2234_v55  ;;  %v1000_v51 = vld [vmem:[%s2958_s2 + $0x68] sm:$0xff]  ;;  %v2684_v55 = vpack.c.bf16 %v1002_v54, %v1001_v53 }
  0x36   :  { %1869 = vmatprep.subr.bf16.mxu0 %v2241_v60  ;;  %2116 = vmatprep.subr.bf16.mxu1 %v2654_v46  ;;  %v2674_v52 = vpack.c.bf16 %v1000_v51, %v999_v50 }
  0x37   :  { %2118 = vmatpush3.bf16.msra.mxu1 %v2654_v46 }
  0x38   :  { %2120 = vmatprep.subr.bf16.mxu1 %v2664_v49 }
  0x39   :  { %1870 = vmatpush3.bf16.msra.mxu0 %v2242_v61 }
  0x3a   :  { %1871 = vmatprep.subr.bf16.mxu0 %v2249_v0 }
  0x3b   :  { %753 = vmatmul.mubr.bf16.gmra.mrb[12].mxu0 %v2223_v56  ;;  %2122 = vmatpush3.bf16.msra.mxu1 %v2664_v49 }
  0x3c   :  { %850 = vmatmul.mubr.bf16.gmra.mrb[12].mxu1 %v2224_v57  ;;  %760 = vmatprep.mubr.bf16.mxu0 %v2227_v58 }
  0x3d   :  { %857 = vmatprep.mubr.bf16.mxu1 %v2229_v59  ;;  %1872 = vmatpush3.bf16.msra.mxu0 %v2250_v1 }
  0x3e   :  { %1873 = vmatprep.subr.bf16.mxu0 %v2257_v4  ;;  %2124 = vmatprep.subr.bf16.mxu1 %v2674_v52 }
  0x3f   :  { %2126 = vmatpush3.bf16.msra.mxu1 %v2674_v52 }
  0x40   :  { %2128 = vmatprep.subr.bf16.mxu1 %v2684_v55 }
  0x41   :  { %1874 = vmatpush3.bf16.msra.mxu0 %v2258_v5 }
  0x43   :  { %761 = vmatmul.mubr.bf16.gmra.mrb[16].mxu0 %v2231_v62  ;;  %2130 = vmatpush3.bf16.msra.mxu1 %v2684_v55 }
  0x44   :  { %858 = vmatmul.mubr.bf16.gmra.mrb[16].mxu1 %v2232_v63  ;;  %768 = vmatprep.mubr.bf16.mxu0 %v2235_v2 }
  0x45   :  { %865 = vmatprep.mubr.bf16.mxu1 %v2237_v3  ;;  %2132 = vmatprep.subr.bf16.mxu1 %v2614_v34 }
  0x4b   :  { %769 = vmatmul.mubr.bf16.gmra.mrb[20].mxu0 %v2239_v6 }
  0x4c   :  { %866 = vmatmul.mubr.bf16.gmra.mrb[20].mxu1 %v2240_v7  ;;  %776 = vmatprep.mubr.bf16.mxu0 %v2243_v8 }
  0x4d   :  { %873 = vmatprep.mubr.bf16.mxu1 %v2245_v9 }
  0x53   :  { %777 = vmatmul.mubr.bf16.gmra.mrb[24].mxu0 %v2247_v10 }
  0x54   :  { %874 = vmatmul.mubr.bf16.gmra.mrb[24].mxu1 %v2248_v11  ;;  %784 = vmatprep.mubr.bf16.mxu0 %v2251_v12 }
  0x55   :  { %881 = vmatprep.mubr.bf16.mxu1 %v2253_v13 }
  0x5b   :  { %785 = vmatmul.mubr.bf16.gmra.mrb[28].mxu0 %v2255_v14 }
  0x5c   :  { %882 = vmatmul.mubr.bf16.gmra.mrb[28].mxu1 %v2256_v15  ;;  %922 = vmatprep.mubr.bf16.mxu0 %v2261_v16 }
  0x63   :  { %923 = vmatmul.mubr.bf16.vlgmr.msra.gmra.mrb[32].mxu0 %v2259_v17 }
  0x64   :  { %930 = vmatprep.mubr.bf16.mxu0 %v2262_v18 }
  0x6b   :  { %931 = vmatmul.mubr.bf16.gmra.mrb[36].mxu0 %v2264_v19 }
  0x6c   :  { %938 = vmatprep.mubr.bf16.mxu0 %v2265_v20 }
  0x73   :  { %939 = vmatmul.mubr.bf16.gmra.mrb[40].mxu0 %v2267_v21 }
  0x74   :  { %946 = vmatprep.mubr.bf16.mxu0 %v2268_v22 }
  0x7b   :  { %947 = vmatmul.mubr.bf16.gmra.mrb[44].mxu0 %v2270_v23 }
  0x7c   :  { %954 = vmatprep.mubr.bf16.mxu0 %v2271_v24 }
  0x83   :  { %955 = vmatmul.mubr.bf16.gmra.mrb[48].mxu0 %v2273_v25 }
  0x84   :  { %962 = vmatprep.mubr.bf16.mxu0 %v2274_v26 }
  0x8b   :  { %963 = vmatmul.mubr.bf16.gmra.mrb[52].mxu0 %v2276_v27 }
  0x8c   :  { %970 = vmatprep.mubr.bf16.mxu0 %v2277_v28 }
  0x93   :  { %971 = vmatmul.mubr.bf16.gmra.mrb[56].mxu0 %v2279_v29 }
  0x94   :  { %978 = vmatprep.mubr.bf16.mxu0 %v2280_v30 }
  0x9b   :  { %979 = vmatmul.mubr.bf16.gmra.mrb[60].mxu0 %v2282_v31 }
  0xf6   :  { %v1747_v56 = vpop.f32.mrb[0].mxu0 }
  0xf7   :  { %v1811_v57 = vpop.f32.mrb[0].mxu1  ;;  %v1748_v58 = vpop.f32.mrb[1].mxu0 }
  0xf8   :  { %v1749_v59 = vadd.f32 %v1748_v58, %v1747_v56  ;;  %v1812_v60 = vpop.f32.mrb[1].mxu1  ;;  %v1750_v61 = vpop.f32.mrb[2].mxu0 }
  0xf9   :  { %v1813_v62 = vadd.f32 %v1812_v60, %v1811_v57  ;;  %v1814_v63 = vpop.f32.mrb[2].mxu1  ;;  %v1751_v0 = vpop.f32.mrb[3].mxu0 }
  0xfa   :  { %v1752_v1 = vadd.f32 %v1751_v0, %v1750_v61  ;;  %v1815_v2 = vpop.f32.mrb[3].mxu1 }
  0xfb   :  { %v2689_v3 = vadd.f32 %v1813_v62, %v1749_v59  ;;  %v1816_v4 = vadd.f32 %v1815_v2, %v1814_v63 }
  0xfd   :  { %v2691_v5 = vadd.f32 %v1816_v4, %v1752_v1 }
  0xfe   :  { %v1753_v6 = vpop.f32.mrb[4].mxu0 }
  0xff   :  { %v1817_v7 = vpop.f32.mrb[4].mxu1  ;;  %v1754_v8 = vpop.f32.mrb[5].mxu0 }
 0x100   :  { %v1755_v9 = vadd.f32 %v1754_v8, %v1753_v6  ;;  %v1818_v10 = vpop.f32.mrb[5].mxu1  ;;  %v1756_v11 = vpop.f32.mrb[6].mxu0 }
 0x101   :  { %v1819_v12 = vadd.f32 %v1818_v10, %v1817_v7  ;;  %v1820_v13 = vpop.f32.mrb[6].mxu1  ;;  %v1757_v14 = vpop.f32.mrb[7].mxu0 }
 0x102   :  { %v1758_v15 = vadd.f32 %v1757_v14, %v1756_v11  ;;  %v1821_v16 = vpop.f32.mrb[7].mxu1 }
 0x103   :  { %v2693_v17 = vadd.f32 %v1819_v12, %v1755_v9  ;;  %v1822_v18 = vadd.f32 %v1821_v16, %v1820_v13 }
 0x105   :  { %v2695_v19 = vadd.f32 %v1822_v18, %v1758_v15 }
 0x106   :  { %v1759_v20 = vpop.f32.mrb[8].mxu0 }
 0x107   :  { %v1823_v21 = vpop.f32.mrb[8].mxu1  ;;  %v1760_v22 = vpop.f32.mrb[9].mxu0 }
 0x108   :  { %v1761_v23 = vadd.f32 %v1760_v22, %v1759_v20  ;;  %v1824_v24 = vpop.f32.mrb[9].mxu1  ;;  %v1762_v25 = vpop.f32.mrb[10].mxu0 }
 0x109   :  { %v1825_v26 = vadd.f32 %v1824_v24, %v1823_v21  ;;  %v1826_v27 = vpop.f32.mrb[10].mxu1  ;;  %v1763_v28 = vpop.f32.mrb[11].mxu0 }
 0x10a   :  { %v1764_v29 = vadd.f32 %v1763_v28, %v1762_v25  ;;  %v1827_v30 = vpop.f32.mrb[11].mxu1 }
 0x10b   :  { %v2697_v31 = vadd.f32 %v1825_v26, %v1761_v23  ;;  %v1828_v32 = vadd.f32 %v1827_v30, %v1826_v27 }
 0x10d   :  { %v2699_v33 = vadd.f32 %v1828_v32, %v1764_v29 }
 0x10e   :  { %v1765_v35 = vpop.f32.mrb[12].mxu0 }
 0x10f   :  { %v1829_v36 = vpop.f32.mrb[12].mxu1  ;;  %v1766_v38 = vpop.f32.mrb[13].mxu0 }
 0x110   :  { %v1767_v39 = vadd.f32 %v1766_v38, %v1765_v35  ;;  %v1830_v41 = vpop.f32.mrb[13].mxu1  ;;  %v1768_v42 = vpop.f32.mrb[14].mxu0 }
 0x111   :  { %v1831_v44 = vadd.f32 %v1830_v41, %v1829_v36  ;;  %v1832_v45 = vpop.f32.mrb[14].mxu1  ;;  %v1769_v47 = vpop.f32.mrb[15].mxu0 }
 0x112   :  { %v1770_v48 = vadd.f32 %v1769_v47, %v1768_v42  ;;  %v1833_v50 = vpop.f32.mrb[15].mxu1 }
 0x113   :  { %v2701_v51 = vadd.f32 %v1831_v44, %v1767_v39  ;;  %v1834_v53 = vadd.f32 %v1833_v50, %v1832_v45 }
 0x115   :  { %v2703_v54 = vadd.f32 %v1834_v53, %v1770_v48 }
 0x116   :  { %v1771_v56 = vpop.f32.mrb[16].mxu0 }
 0x117   :  { %v1835_v57 = vpop.f32.mrb[16].mxu1  ;;  %v1772_v58 = vpop.f32.mrb[17].mxu0 }
 0x118   :  { %v1773_v59 = vadd.f32 %v1772_v58, %v1771_v56  ;;  %v1836_v60 = vpop.f32.mrb[17].mxu1  ;;  %v1774_v61 = vpop.f32.mrb[18].mxu0 }
 0x119   :  { %v1837_v62 = vadd.f32 %v1836_v60, %v1835_v57  ;;  %v1838_v63 = vpop.f32.mrb[18].mxu1  ;;  %v1775_v0 = vpop.f32.mrb[19].mxu0 }
 0x11a   :  { %v1776_v1 = vadd.f32 %v1775_v0, %v1774_v61  ;;  %v1839_v2 = vpop.f32.mrb[19].mxu1 }
 0x11b   :  { %v2705_v4 = vadd.f32 %v1837_v62, %v1773_v59  ;;  %v1840_v6 = vadd.f32 %v1839_v2, %v1838_v63 }
 0x11d   :  { %v2707_v7 = vadd.f32 %v1840_v6, %v1776_v1 }
 0x11e   :  { %v1777_v8 = vpop.f32.mrb[20].mxu0 }
 0x11f   :  { %v1841_v9 = vpop.f32.mrb[20].mxu1  ;;  %v1778_v10 = vpop.f32.mrb[21].mxu0 }
 0x120   :  { %v1779_v11 = vadd.f32 %v1778_v10, %v1777_v8  ;;  %v1842_v12 = vpop.f32.mrb[21].mxu1  ;;  %v1780_v13 = vpop.f32.mrb[22].mxu0 }
 0x121   :  { %v1843_v14 = vadd.f32 %v1842_v12, %v1841_v9  ;;  %v1844_v15 = vpop.f32.mrb[22].mxu1  ;;  %v1781_v16 = vpop.f32.mrb[23].mxu0 }
 0x122   :  { %v1782_v18 = vadd.f32 %v1781_v16, %v1780_v13  ;;  %v1845_v20 = vpop.f32.mrb[23].mxu1 }
 0x123   :  { %v2709_v21 = vadd.f32 %v1843_v14, %v1779_v11  ;;  %v1846_v22 = vadd.f32 %v1845_v20, %v1844_v15 }
 0x125   :  { %v2711_v23 = vadd.f32 %v1846_v22, %v1782_v18 }
 0x126   :  { %v1783_v24 = vpop.f32.mrb[24].mxu0 }
 0x127   :  { %v1847_v25 = vpop.f32.mrb[24].mxu1  ;;  %v1784_v26 = vpop.f32.mrb[25].mxu0 }
 0x128   :  { %v1785_v27 = vadd.f32 %v1784_v26, %v1783_v24  ;;  %v1848_v28 = vpop.f32.mrb[25].mxu1  ;;  %v1786_v29 = vpop.f32.mrb[26].mxu0 }
 0x129   :  { %v1849_v30 = vadd.f32 %v1848_v28, %v1847_v25  ;;  %v1850_v32 = vpop.f32.mrb[26].mxu1  ;;  %v1787_v35 = vpop.f32.mrb[27].mxu0 }
 0x12a   :  { %v1788_v36 = vadd.f32 %v1787_v35, %v1786_v29  ;;  %v1851_v38 = vpop.f32.mrb[27].mxu1 }
 0x12b   :  { %v2713_v39 = vadd.f32 %v1849_v30, %v1785_v27  ;;  %v1852_v41 = vadd.f32 %v1851_v38, %v1850_v32 }
 0x12d   :  { %v2715_v42 = vadd.f32 %v1852_v41, %v1788_v36 }
 0x12e   :  { %v1789_v44 = vpop.f32.mrb[28].mxu0 }
 0x12f   :  { %v1853_v45 = vpop.f32.mrb[28].mxu1  ;;  %v1790_v47 = vpop.f32.mrb[29].mxu0 }
 0x130   :  { %v1791_v48 = vadd.f32 %v1790_v47, %v1789_v44  ;;  %v1854_v50 = vpop.f32.mrb[29].mxu1  ;;  %v1792_v53 = vpop.f32.mrb[30].mxu0 }
 0x131   :  { %v1855_v56 = vadd.f32 %v1854_v50, %v1853_v45  ;;  %v1856_v57 = vpop.f32.mrb[30].mxu1  ;;  %v1793_v58 = vpop.f32.mrb[31].mxu0 }
 0x132   :  { %v1794_v59 = vadd.f32 %v1793_v58, %v1792_v53  ;;  %v1857_v60 = vpop.f32.mrb[31].mxu1 }
 0x133   :  { %v2717_v61 = vadd.f32 %v1855_v56, %v1791_v48  ;;  %v1858_v62 = vadd.f32 %v1857_v60, %v1856_v57 }
 0x135   :  { %v2719_v63 = vadd.f32 %v1858_v62, %v1794_v59 }
 0x136   :  { %v1875_v0 = vpop.f32.mrb[32].mxu0 }
 0x137   :  { %v1876_v1 = vpop.f32.mrb[33].mxu0 }
 0x138   :  { %v1877_v2 = vadd.f32 %v1876_v1, %v1875_v0  ;;  %v1878_v6 = vpop.f32.mrb[34].mxu0 }
 0x139   :  { %v1879_v8 = vpop.f32.mrb[35].mxu0 }
 0x13a   :  { %v2722_v9 = vadd.f32 %v1877_v2, %v2689_v3  ;;  %v1880_v10 = vadd.f32 %v1879_v8, %v1878_v6 }
 0x13c   :  { %v2725_v11 = vadd.f32 %v1880_v10, %v2691_v5  ;;  %2019 = vmatprep.mubr.f32.mxu1 %v2722_v9 }
 0x13e   :  { %v1881_v12 = vpop.f32.mrb[36].mxu0  ;;  %2020 = vmatmul.mubr.f32.vlgmr.msra.gmra.mrb[32].mxu1 %v2725_v11 }
 0x13f   :  { %v1882_v13 = vpop.f32.mrb[37].mxu0  ;;  %2134 = vmatpush3.bf16.msra.mxu1 %v2614_v34 }
 0x140   :  { %v1883_v14 = vadd.f32 %v1882_v13, %v1881_v12  ;;  %v1884_v15 = vpop.f32.mrb[38].mxu0  ;;  %2136 = vmatprep.subr.bf16.mxu1 %v2624_v37 }
 0x141   :  { %v1885_v16 = vpop.f32.mrb[39].mxu0 }
 0x142   :  { %v2732_v3 = vadd.f32 %v1883_v14, %v2693_v17  ;;  %v1886_v18 = vadd.f32 %v1885_v16, %v1884_v15 }
 0x143   :  { %2138 = vmatpush3.bf16.msra.mxu1 %v2624_v37 }
 0x144   :  { %v2736_v5 = vadd.f32 %v1886_v18, %v2695_v19  ;;  %2022 = vmatprep.mubr.f32.mxu1 %v2732_v3  ;;  %2140 = vmatprep.subr.bf16.mxu1 %v2634_v40 }
 0x146   :  { %v1887_v20 = vpop.f32.mrb[40].mxu0  ;;  %2023 = vmatmul.mubr.f32.gmra.mrb[34].mxu1 %v2736_v5 }
 0x147   :  { %v1888_v34 = vpop.f32.mrb[41].mxu0  ;;  %2142 = vmatpush3.bf16.msra.mxu1 %v2634_v40 }
 0x148   :  { %v1889_v22 = vadd.f32 %v1888_v34, %v1887_v20  ;;  %v1890_v24 = vpop.f32.mrb[42].mxu0  ;;  %2144 = vmatprep.subr.bf16.mxu1 %v2644_v43 }
 0x149   :  { %v1891_v17 = vpop.f32.mrb[43].mxu0 }
 0x14a   :  { %v2744_v37 = vadd.f32 %v1889_v22, %v2697_v31  ;;  %v1892_v19 = vadd.f32 %v1891_v17, %v1890_v24 }
 0x14b   :  { %2146 = vmatpush3.bf16.msra.mxu1 %v2644_v43 }
 0x14c   :  { %v2748_v25 = vadd.f32 %v1892_v19, %v2699_v33  ;;  %2025 = vmatprep.mubr.f32.mxu1 %v2744_v37  ;;  %2148 = vmatprep.subr.bf16.mxu1 %v2654_v46 }
 0x14e   :  { %v1893_v26 = vpop.f32.mrb[44].mxu0  ;;  %2026 = vmatmul.mubr.f32.gmra.mrb[36].mxu1 %v2748_v25 }
 0x14f   :  { %v1894_v40 = vpop.f32.mrb[45].mxu0  ;;  %2150 = vmatpush3.bf16.msra.mxu1 %v2654_v46 }
 0x150   :  { %v1895_v27 = vadd.f32 %v1894_v40, %v1893_v26  ;;  %v1896_v28 = vpop.f32.mrb[46].mxu0  ;;  %2152 = vmatprep.subr.bf16.mxu1 %v2664_v49 }
 0x151   :  { %v1897_v31 = vpop.f32.mrb[47].mxu0 }
 0x152   :  { %v2756_v43 = vadd.f32 %v1895_v27, %v2701_v51  ;;  %v1898_v33 = vadd.f32 %v1897_v31, %v1896_v28 }
 0x153   :  { %2154 = vmatpush3.bf16.msra.mxu1 %v2664_v49 }
 0x154   :  { %v2760_v29 = vadd.f32 %v1898_v33, %v2703_v54  ;;  %2028 = vmatprep.mubr.f32.mxu1 %v2756_v43  ;;  %2156 = vmatprep.subr.bf16.mxu1 %v2674_v52 }
 0x156   :  { %v1899_v30 = vpop.f32.mrb[48].mxu0  ;;  %2029 = vmatmul.mubr.f32.gmra.mrb[38].mxu1 %v2760_v29 }
 0x157   :  { %v1900_v46 = vpop.f32.mrb[49].mxu0  ;;  %2158 = vmatpush3.bf16.msra.mxu1 %v2674_v52 }
 0x158   :  { %v1901_v32 = vadd.f32 %v1900_v46, %v1899_v30  ;;  %v1902_v35 = vpop.f32.mrb[50].mxu0  ;;  %2160 = vmatprep.subr.bf16.mxu1 %v2684_v55 }
 0x159   :  { %v1903_v51 = vpop.f32.mrb[51].mxu0 }
 0x15a   :  { %v2768_v49 = vadd.f32 %v1901_v32, %v2705_v4  ;;  %v1904_v54 = vadd.f32 %v1903_v51, %v1902_v35 }
 0x15b   :  { %2162 = vmatpush3.bf16.msra.mxu1 %v2684_v55 }
 0x15c   :  { %v2772_v36 = vadd.f32 %v1904_v54, %v2707_v7  ;;  %2031 = vmatprep.mubr.f32.mxu1 %v2768_v49 }
 0x15e   :  { %v1905_v38 = vpop.f32.mrb[52].mxu0  ;;  %2032 = vmatmul.mubr.f32.gmra.mrb[40].mxu1 %v2772_v36 }
 0x15f   :  { %v1906_v52 = vpop.f32.mrb[53].mxu0 }
 0x160   :  { %v1907_v41 = vadd.f32 %v1906_v52, %v1905_v38  ;;  %v1908_v44 = vpop.f32.mrb[54].mxu0 }
 0x161   :  { %v1909_v45 = vpop.f32.mrb[55].mxu0 }
 0x162   :  { %v2777_v47 = vadd.f32 %v1907_v41, %v2709_v21  ;;  %v1910_v4 = vadd.f32 %v1909_v45, %v1908_v44  ;;  %v1171_v44 = vlaneseq }
 0x164   :  { %v2780_v48 = vadd.f32 %v1910_v4, %v2711_v23  ;;  %2034 = vmatprep.mubr.f32.mxu1 %v2777_v47 }
 0x166   :  { %v1911_v55 = vpop.f32.mrb[56].mxu0  ;;  %2035 = vmatmul.mubr.f32.gmra.mrb[42].mxu1 %v2780_v48 }
 0x167   :  { %v1912_v7 = vpop.f32.mrb[57].mxu0 }
 0x168   :  { %v1913_v50 = vadd.f32 %v1912_v7, %v1911_v55  ;;  %v1914_v53 = vpop.f32.mrb[58].mxu0  ;;  %v2800_v55 = vshrl.u32 %v1171_v44, 7 }
 0x169   :  { %v1915_v56 = vpop.f32.mrb[59].mxu0 }
 0x16a   :  { %v2785_v57 = vadd.f32 %v1913_v50, %v2713_v39  ;;  %v1916_v58 = vadd.f32 %v1915_v56, %v1914_v53  ;;  %v2805_v50 = vld [vmem:[%s2959_s3] sm:$0x1]  ;;  %v1173_v56 = vsub.s32 0, %v2800_v55 }
 0x16b   :  { %v1651_v55 = vld [vmem:[%s2961_s5] ss:$0 sm:$0xff] }
 0x16c   :  { %v2788_v21 = vadd.f32 %v1916_v58, %v2715_v42  ;;  %2037 = vmatprep.mubr.f32.mxu1 %v2785_v57 }
 0x16e   :  { %v1917_v23 = vpop.f32.mrb[60].mxu0  ;;  %2038 = vmatmul.mubr.f32.gmra.mrb[44].mxu1 %v2788_v21 }
 0x16f   :  { %v1918_v59 = vpop.f32.mrb[61].mxu0 }
 0x170   :  { %v1919_v60 = vadd.f32 %v1918_v59, %v1917_v23  ;;  %v1920_v62 = vpop.f32.mrb[62].mxu0 }
 0x171   :  { %v1921_v0 = vpop.f32.mrb[63].mxu0 }
 0x172   :  { %v2793_v1 = vadd.f32 %v1919_v60, %v2717_v61  ;;  %v1922_v2 = vadd.f32 %v1921_v0, %v1920_v62 }
 0x174   :  { %v2796_v39 = vadd.f32 %v1922_v2, %v2719_v63  ;;  %2040 = vmatprep.mubr.f32.mxu1 %v2793_v1 }
 0x176   :  { %2041 = vmatmul.mubr.f32.gmra.mrb[46].mxu1 %v2796_v39 }
 0x211   :  { %v2021_v42 = vpop.f32.mrb[32].mxu1 }
 0x212   :  { %v1070_v6 = vpop.f32.mrb[33].mxu1 }
 0x213   :  { %v1149_v8 = vadd.f32 %v2021_v42, %v1070_v6 }
 0x219   :  { %v2024_v10 = vpop.f32.mrb[34].mxu1 }
 0x21a   :  { %v1080_v12 = vpop.f32.mrb[35].mxu1 }
 0x21b   :  { %v1150_v13 = vadd.f32 %v1149_v8, %v1080_v12 }
 0x21d   :  { %v1151_v14 = vadd.f32 %v2024_v10, %v1150_v13 }
 0x221   :  { %v2027_v15 = vpop.f32.mrb[36].mxu1 }
 0x222   :  { %v1090_v16 = vpop.f32.mrb[37].mxu1 }
 0x223   :  { %v1152_v18 = vadd.f32 %v1151_v14, %v1090_v16 }
 0x225   :  { %v1153_v61 = vadd.f32 %v2027_v15, %v1152_v18 }
 0x229   :  { %v2030_v20 = vpop.f32.mrb[38].mxu1 }
 0x22a   :  { %v1100_v34 = vpop.f32.mrb[39].mxu1 }
 0x22b   :  { %v1154_v22 = vadd.f32 %v1153_v61, %v1100_v34 }
 0x22d   :  { %v1155_v63 = vadd.f32 %v2030_v20, %v1154_v22 }
 0x231   :  { %v2033_v24 = vpop.f32.mrb[40].mxu1 }
 0x232   :  { %v1110_v17 = vpop.f32.mrb[41].mxu1 }
 0x233   :  { %v1156_v19 = vadd.f32 %v1155_v63, %v1110_v17 }
 0x235   :  { %v1157_v26 = vadd.f32 %v2033_v24, %v1156_v19 }
 0x239   :  { %v2036_v40 = vpop.f32.mrb[42].mxu1 }
 0x23a   :  { %v1120_v27 = vpop.f32.mrb[43].mxu1 }
 0x23b   :  { %v1158_v28 = vadd.f32 %v1157_v26, %v1120_v27 }
 0x23d   :  { %v1159_v31 = vadd.f32 %v2036_v40, %v1158_v28 }
 0x241   :  { %v2039_v33 = vpop.f32.mrb[44].mxu1 }
 0x242   :  { %v1130_v30 = vpop.f32.mrb[45].mxu1 }
 0x243   :  { %v1160_v46 = vadd.f32 %v1159_v31, %v1130_v30 }
 0x245   :  { %v1161_v32 = vadd.f32 %v2039_v33, %v1160_v46 }
 0x249   :  { %v2042_v35 = vpop.f32.mrb[46].mxu1 }
 0x24a   :  { %v1140_v51 = vpop.f32.mrb[47].mxu1 }
 0x24b   :  { %v1162_v54 = vadd.f32 %v1161_v32, %v1140_v51 }
 0x24d   :  { %v1163_v38 = vadd.f32 %v2042_v35, %v1162_v54 }
 0x24f   :  { %v1164_v52 = vrot.slane %v1163_v38, 4 }
 0x251   :  { %v1165_v41 = vadd.f32 %v1164_v52, %v1163_v38 }
 0x253   :  { %v1166_v45 = vrot.slane %v1165_v41, 2 }
 0x255   :  { %v1167_v4 = vadd.f32 %v1166_v45, %v1165_v41 }
 0x257   :  { %v1168_v7 = vrot.slane %v1167_v4, 1 }
 0x259   :  { %v1169_v53 = vadd.f32 %v1168_v7, %v1167_v4 }
 0x25b   :  { %v1170_v58 = vmul.f32 %v1169_v53, %v2805_v50 }
 0x25d   :  { %v1174_v23 = vrot.slane %v1170_v58, %v1173_v56 }
 0x25f   :  { %v2812_v59 = vsub.f32 %v2722_v9, %v1174_v23  ;;  %v2815_v60 = vsub.f32 %v2725_v11, %v1174_v23  ;;  %v2818_v62 = vsub.f32 %v2732_v3, %v1174_v23  ;;  %v2825_v42 = vsub.f32 %v2736_v5, %v1174_v23 }
 0x260   :  { %v2830_v6 = vsub.f32 %v2744_v37, %v1174_v23  ;;  %v2835_v3 = vsub.f32 %v2748_v25, %v1174_v23  ;;  %v2840_v5 = vsub.f32 %v2756_v43, %v1174_v23  ;;  %v2845_v10 = vsub.f32 %v2760_v29, %v1174_v23 }
 0x261   :  { %v1191_v0 = vmul.f32 %v2812_v59, %v2812_v59  ;;  %v1192_v2 = vmul.f32 %v2815_v60, %v2815_v60  ;;  %v1193_v9 = vmul.f32 %v2818_v62, %v2818_v62  ;;  %v1194_v11 = vmul.f32 %v2825_v42, %v2825_v42 }
 0x262   :  { %v1195_v8 = vmul.f32 %v2830_v6, %v2830_v6  ;;  %v1196_v37 = vmul.f32 %v2835_v3, %v2835_v3  ;;  %v1197_v12 = vmul.f32 %v2840_v5, %v2840_v5  ;;  %v2850_v25 = vsub.f32 %v2768_v49, %v1174_v23 }
 0x263   :  { %2075 = vmatprep.mubr.f32.mxu1 %v1191_v0  ;;  %v1198_v43 = vmul.f32 %v2845_v10, %v2845_v10  ;;  %v2855_v13 = vsub.f32 %v2772_v36, %v1174_v23  ;;  %v2860_v29 = vsub.f32 %v2777_v47, %v1174_v23  ;;  %v2865_v15 = vsub.f32 %v2780_v48, %v1174_v23 }
 0x264   :  { %2076 = vmatmul.mubr.f32.vlgmr.msra.gmra.mrb[48].mxu1 %v1192_v2  ;;  %v1199_v14 = vmul.f32 %v2850_v25, %v2850_v25  ;;  %v2870_v36 = vsub.f32 %v2785_v57, %v1174_v23  ;;  %v2875_v18 = vsub.f32 %v2788_v21, %v1174_v23  ;;  %v2880_v48 = vsub.f32 %v2793_v1, %v1174_v23 }
 0x265   :  { %2078 = vmatprep.mubr.f32.mxu1 %v1193_v9  ;;  %v1200_v49 = vmul.f32 %v2855_v13, %v2855_v13  ;;  %v1201_v16 = vmul.f32 %v2860_v29, %v2860_v29  ;;  %v1202_v47 = vmul.f32 %v2865_v15, %v2865_v15  ;;  %v2885_v20 = vsub.f32 %v2796_v39, %v1174_v23 }
 0x266   :  { %v1203_v61 = vmul.f32 %v2870_v36, %v2870_v36  ;;  %v1204_v57 = vmul.f32 %v2875_v18, %v2875_v18  ;;  %v1205_v34 = vmul.f32 %v2880_v48, %v2880_v48 }
 0x267   :  { %v1206_v21 = vmul.f32 %v2885_v20, %v2885_v20 }
 0x268   :  { %2079 = vmatmul.mubr.f32.gmra.mrb[50].mxu1 %v1194_v11 }
 0x269   :  { %2081 = vmatprep.mubr.f32.mxu1 %v1195_v8 }
 0x26c   :  { %2082 = vmatmul.mubr.f32.gmra.mrb[52].mxu1 %v1196_v37 }
 0x26d   :  { %2084 = vmatprep.mubr.f32.mxu1 %v1197_v12 }
 0x270   :  { %2085 = vmatmul.mubr.f32.gmra.mrb[54].mxu1 %v1198_v43 }
 0x271   :  { %2087 = vmatprep.mubr.f32.mxu1 %v1199_v14 }
 0x274   :  { %2088 = vmatmul.mubr.f32.gmra.mrb[56].mxu1 %v1200_v49 }
 0x275   :  { %2090 = vmatprep.mubr.f32.mxu1 %v1201_v16  ;;  %v1374_v16 = vld [vmem:[%s2960_s4] sm:$0x1] }
 0x278   :  { %2091 = vmatmul.mubr.f32.gmra.mrb[58].mxu1 %v1202_v47 }
 0x279   :  { %2093 = vmatprep.mubr.f32.mxu1 %v1203_v61 }
 0x27c   :  { %2094 = vmatmul.mubr.f32.gmra.mrb[60].mxu1 %v1204_v57 }
 0x27d   :  { %2096 = vmatprep.mubr.f32.mxu1 %v1205_v34 }
 0x280   :  { %2097 = vmatmul.mubr.f32.gmra.mrb[62].mxu1 %v1206_v21 }
 0x337   :  { %v2077_v22 = vpop.f32.mrb[48].mxu1 }
 0x338   :  { %v1273_v1 = vpop.f32.mrb[49].mxu1 }
 0x339   :  { %v1352_v63 = vadd.f32 %v2077_v22, %v1273_v1 }
 0x33b   :  { %v2080_v24 = vpop.f32.mrb[50].mxu1 }
 0x33c   :  { %v1283_v17 = vpop.f32.mrb[51].mxu1 }
 0x33d   :  { %v1353_v19 = vadd.f32 %v1352_v63, %v1283_v17 }
 0x33f   :  { %v2083_v26 = vpop.f32.mrb[52].mxu1  ;;  %v1354_v40 = vadd.f32 %v2080_v24, %v1353_v19 }
 0x340   :  { %v1293_v27 = vpop.f32.mrb[53].mxu1 }
 0x341   :  { %v1355_v39 = vadd.f32 %v1354_v40, %v1293_v27 }
 0x343   :  { %v2086_v28 = vpop.f32.mrb[54].mxu1  ;;  %v1356_v31 = vadd.f32 %v2083_v26, %v1355_v39 }
 0x344   :  { %v1303_v33 = vpop.f32.mrb[55].mxu1 }
 0x345   :  { %v1357_v30 = vadd.f32 %v1356_v31, %v1303_v33 }
 0x347   :  { %v2089_v46 = vpop.f32.mrb[56].mxu1  ;;  %v1358_v32 = vadd.f32 %v2086_v28, %v1357_v30 }
 0x348   :  { %v1313_v35 = vpop.f32.mrb[57].mxu1 }
 0x349   :  { %v1359_v51 = vadd.f32 %v1358_v32, %v1313_v35 }
 0x34b   :  { %v2092_v54 = vpop.f32.mrb[58].mxu1  ;;  %v1360_v38 = vadd.f32 %v2089_v46, %v1359_v51 }
 0x34c   :  { %v1323_v52 = vpop.f32.mrb[59].mxu1 }
 0x34d   :  { %v1361_v41 = vadd.f32 %v1360_v38, %v1323_v52 }
 0x34f   :  { %v2095_v44 = vpop.f32.mrb[60].mxu1  ;;  %v1362_v45 = vadd.f32 %v2092_v54, %v1361_v41 }
 0x350   :  { %v1333_v4 = vpop.f32.mrb[61].mxu1 }
 0x351   :  { %v1363_v7 = vadd.f32 %v1362_v45, %v1333_v4 }
 0x353   :  { %v2098_v53 = vpop.f32.mrb[62].mxu1  ;;  %v1364_v58 = vadd.f32 %v2095_v44, %v1363_v7 }
 0x354   :  { %v1343_v23 = vpop.f32.mrb[63].mxu1 }
 0x355   :  { %v1365_v0 = vadd.f32 %v1364_v58, %v1343_v23 }
 0x357   :  { %v1366_v2 = vadd.f32 %v2098_v53, %v1365_v0 }
 0x359   :  { %v1367_v9 = vrot.slane %v1366_v2, 4 }
 0x35b   :  { %v1368_v11 = vadd.f32 %v1367_v9, %v1366_v2 }
 0x35d   :  { %v1369_v8 = vrot.slane %v1368_v11, 2 }
 0x35f   :  { %v1370_v37 = vadd.f32 %v1369_v8, %v1368_v11 }
 0x361   :  { %v1371_v12 = vrot.slane %v1370_v37, 1 }
 0x363   :  { %v1372_v43 = vadd.f32 %v1371_v12, %v1370_v37 }
 0x365   :  { %v1373_v14 = vmul.f32 %v1372_v43, %v2805_v50 }
 0x367   :  { %v1375_v49 = vadd.f32 1e-05, %v1373_v14 }
 0x369   :  { %2283 = vrsqrt.f32 %v1375_v49 }
 0x373   :  { %v2284_v47 = vpop.eup %2283 }
 0x374   :  { %v1377_v61 = vmul.f32 %v2284_v47, %v1374_v16 }
 0x376   :  { %v1382_v57 = vrot.slane %v1377_v61, %v1173_v56 }
 0x378   :  { %v1384_v34 = vmul.f32 %v1382_v57, %v2812_v59  ;;  %v1385_v21 = vmul.f32 %v1382_v57, %v2815_v60  ;;  %v1386_v22 = vmul.f32 %v1382_v57, %v2818_v62  ;;  %v1387_v1 = vmul.f32 %v1382_v57, %v2825_v42 }
 0x379   :  { %v1388_v50 = vmul.f32 %v1382_v57, %v2830_v6  ;;  %v1389_v63 = vmul.f32 %v1382_v57, %v2835_v3  ;;  %v1390_v24 = vmul.f32 %v1382_v57, %v2840_v5  ;;  %v1391_v17 = vmul.f32 %v1382_v57, %v2845_v10 }
 0x37a   :  { %v1392_v56 = vmul.f32 %v1382_v57, %v2850_v25  ;;  %v1393_v59 = vmul.f32 %v1382_v57, %v2855_v13  ;;  %v1394_v60 = vmul.f32 %v1382_v57, %v2860_v29  ;;  %v1395_v62 = vmul.f32 %v1382_v57, %v2865_v15 }
 0x37b   :  { %v1396_v42 = vmul.f32 %v1382_v57, %v2870_v36  ;;  %v1397_v6 = vmul.f32 %v1382_v57, %v2875_v18  ;;  %v1398_v3 = vmul.f32 %v1382_v57, %v2880_v48  ;;  %v1399_v5 = vmul.f32 %v1382_v57, %v2885_v20 }
 0x37c   :  { %v1407_v10 = vadd.f32 %v1651_v55, %v1384_v34  ;;  %v1408_v19 = vadd.f32 %v1651_v55, %v1385_v21  ;;  %v1409_v26 = vadd.f32 %v1651_v55, %v1386_v22  ;;  %v1410_v40 = vadd.f32 %v1651_v55, %v1387_v1 }
 0x37d   :  { %v1411_v27 = vadd.f32 %v1651_v55, %v1388_v50  ;;  %v1412_v25 = vadd.f32 %v1651_v55, %v1389_v63  ;;  %v1413_v39 = vadd.f32 %v1651_v55, %v1390_v24  ;;  %v1414_v13 = vadd.f32 %v1651_v55, %v1391_v17 }
 0x37e   :  { %v1415_v28 = vadd.f32 %v1651_v55, %v1392_v56  ;;  %v1416_v29 = vadd.f32 %v1651_v55, %v1393_v59  ;;  %v1417_v31 = vadd.f32 %v1651_v55, %v1394_v60  ;;  %v1418_v15 = vadd.f32 %v1651_v55, %v1395_v62 }
 0x37f   :  { %v1419_v33 = vadd.f32 %v1651_v55, %v1396_v42  ;;  %v1420_v36 = vadd.f32 %v1651_v55, %v1397_v6  ;;  %v1421_v30 = vadd.f32 %v1651_v55, %v1398_v3  ;;  %v1422_v18 = vadd.f32 %v1651_v55, %v1399_v5 }
 0x380   :  { %vm1423_vm0 = vcmp.gt.f32.partialorder %v1407_v10, 0.0  ;;  %vm1424_vm1 = vcmp.gt.f32.partialorder %v1408_v19, 0.0  ;;  %vm1425_vm2 = vcmp.gt.f32.partialorder %v1409_v26, 0.0  ;;  %vm1426_vm3 = vcmp.gt.f32.partialorder %v1410_v40, 0.0 }
 0x381   :  { %vm1427_vm4 = vcmp.gt.f32.partialorder %v1411_v27, 0.0  ;;  %vm1428_vm5 = vcmp.gt.f32.partialorder %v1412_v25, 0.0  ;;  %vm1429_vm6 = vcmp.gt.f32.partialorder %v1413_v39, 0.0  ;;  %vm1430_vm7 = vcmp.gt.f32.partialorder %v1414_v13, 0.0 }
 0x382   :  { %vm1431_vm8 = vcmp.gt.f32.partialorder %v1415_v28, 0.0  ;;  %vm1432_vm9 = vcmp.gt.f32.partialorder %v1416_v29, 0.0  ;;  %vm1433_vm10 = vcmp.gt.f32.partialorder %v1417_v31, 0.0  ;;  %vm1434_vm11 = vcmp.gt.f32.partialorder %v1418_v15, 0.0 }
 0x383   :  { %vm1435_vm12 = vcmp.gt.f32.partialorder %v1419_v33, 0.0  ;;  %vm1436_vm13 = vcmp.gt.f32.partialorder %v1420_v36, 0.0  ;;  %vm1437_vm14 = vcmp.gt.f32.partialorder %v1421_v30, 0.0  ;;  %vm1438_vm15 = vcmp.gt.f32.partialorder %v1422_v18, 0.0 }
 0x384   :  { %v1439_v48 = vmul.f32 0.2, %v1407_v10  ;;  %v1440_v20 = vmul.f32 0.2, %v1408_v19  ;;  %v1441_v46 = vmul.f32 0.2, %v1409_v26 }
 0x385   :  { %v1442_v32 = vmul.f32 0.2, %v1410_v40  ;;  %v1443_v35 = vmul.f32 0.2, %v1411_v27  ;;  %v1444_v51 = vmul.f32 0.2, %v1412_v25 }
 0x386   :  { %v1445_v54 = vmul.f32 0.2, %v1413_v39  ;;  %v1446_v38 = vmul.f32 0.2, %v1414_v13  ;;  %v1447_v52 = vmul.f32 0.2, %v1415_v28  ;;  %v1455_v41 = vsel %vm1423_vm0, %v1407_v10, %v1439_v48 }
 0x387   :  { %v1448_v44 = vmul.f32 0.2, %v1416_v29  ;;  %v1449_v45 = vmul.f32 0.2, %v1417_v31  ;;  %v1450_v4 = vmul.f32 0.2, %v1418_v15  ;;  %v1456_v7 = vsel %vm1424_vm1, %v1408_v19, %v1440_v20 }
 0x388   :  { %v1451_v53 = vmul.f32 0.2, %v1419_v33  ;;  %v1452_v58 = vmul.f32 0.2, %v1420_v36  ;;  %v1453_v23 = vmul.f32 0.2, %v1421_v30  ;;  %v1457_v0 = vsel %vm1425_vm2, %v1409_v26, %v1441_v46 }
 0x389   :  { %v1454_v2 = vmul.f32 0.2, %v1422_v18  ;;  %v1458_v9 = vsel %vm1426_vm3, %v1410_v40, %v1442_v32  ;;  %v1459_v11 = vsel %vm1427_vm4, %v1411_v27, %v1443_v35  ;;  %v1460_v8 = vsel %vm1428_vm5, %v1412_v25, %v1444_v51 }
 0x38a   :  { %v1461_v37 = vsel %vm1429_vm6, %v1413_v39, %v1445_v54  ;;  %v1462_v12 = vsel %vm1430_vm7, %v1414_v13, %v1446_v38  ;;  %v1463_v43 = vsel %vm1431_vm8, %v1415_v28, %v1447_v52  ;;  %v1464_v14 = vsel %vm1432_vm9, %v1416_v29, %v1448_v44 }
 0x38b   :  { %v1465_v49 = vsel %vm1433_vm10, %v1417_v31, %v1449_v45  ;;  %v1466_v16 = vsel %vm1434_vm11, %v1418_v15, %v1450_v4  ;;  %v1467_v47 = vsel %vm1435_vm12, %v1419_v33, %v1451_v53  ;;  %v1468_v61 = vsel %vm1436_vm13, %v1420_v36, %v1452_v58 }
 0x38c   :  { %v1469_v57 = vsel %vm1437_vm14, %v1421_v30, %v1453_v23  ;;  %v1470_v34 = vsel %vm1438_vm15, %v1422_v18, %v1454_v2  ;;  %v1687_v21 = vpack.c.bf16 %v1456_v7, %v1455_v41  ;;  %v1692_v22 = vpack.c.bf16 %v1458_v9, %v1457_v0 }
 0x38d   :  { %v1697_v1 = vpack.c.bf16 %v1460_v8, %v1459_v11  ;;  %v1702_v50 = vpack.c.bf16 %v1462_v12, %v1461_v37  ;;  %v1707_v63 = vpack.c.bf16 %v1464_v14, %v1463_v43  ;;  %v1712_v24 = vpack.c.bf16 %v1466_v16, %v1465_v49 }
 0x38e   :  { %1688 = vst [vmem:[%s2962_s6] sm:$0xff] %v1687_v21   ;;  %1724 = vst [vmem:[%s2962_s6 + $0x8] sm:$0xff] %v1692_v22   ;;  %v1717_v17 = vpack.c.bf16 %v1468_v61, %v1467_v47  ;;  %v1722_v55 = vpack.c.bf16 %v1470_v34, %v1469_v57 }
 0x38f   :  { %1725 = vst [vmem:[%s2962_s6 + $0x10] sm:$0xff] %v1697_v1   ;;  %1726 = vst [vmem:[%s2962_s6 + $0x18] sm:$0xff] %v1702_v50  }
 0x390   :  { %1727 = vst [vmem:[%s2962_s6 + $0x20] sm:$0xff] %v1707_v63   ;;  %1728 = vst [vmem:[%s2962_s6 + $0x28] sm:$0xff] %v1712_v24  }
 0x391   :  { %1729 = vst [vmem:[%s2962_s6 + $0x30] sm:$0xff] %v1717_v17   ;;  %1730 = vst [vmem:[%s2962_s6 + $0x38] sm:$0xff] %v1722_v55  }

// kernel: autoenc_forward.7
= control target key start
LH: loop header
LB: loop body
LE: loop exit
PB: predicated region body
PF: predicated region fallthrough
CT: control target
= control target key end

     0   :  { %s2354_s1 = inlined_call_operand.vmem [shape: bf16[1024,128], index: 1, kind: input, shape index: {}]   ;;  %s2355_s0 = inlined_call_operand.vmem [shape: bf16[64,1024], index: 0, kind: input, shape index: {}]   ;;  %s2356_s2 = inlined_call_operand.vmem [shape: f32[128,128], index: 2, kind: input, shape index: {}]   ;;  %s2357_s3 = inlined_call_operand.vmem [shape: f32[1,128], index: 3, kind: input, shape index: {}]   ;;  %s2358_s4 = inlined_call_operand.vmem [shape: f32[1,128], index: 4, kind: input, shape index: {}]   ;;  %s2359_s5 = inlined_call_operand.vmem [shape: f32[1,128], index: 5, kind: input, shape index: {}]   ;;  %s2360_s6 = inlined_call_operand.vmem [shape: bf16[64,128], index: 6, kind: output, shape index: {}]  }
   0x1   :  { %v1860_v0 = vld [vmem:[%s2354_s1 + $0x40] sm:$0xff]   ;;  %v1864_v4 = vld [vmem:[%s2354_s1 + $0x48] sm:$0xff]   ;;  %v1868_v8 = vld [vmem:[%s2354_s1 + $0x50] sm:$0xff]  }
   0x2   :  { %v1861_v1 = vld [vmem:[%s2354_s1 + $0xc0] sm:$0xff]   ;;  %1500 = vmatprep.subr.bf16.mxu0 %v1860_v0  ;;  %v1865_v5 = vld [vmem:[%s2354_s1 + $0xc8] sm:$0xff]   ;;  %v1869_v9 = vld [vmem:[%s2354_s1 + $0xd0] sm:$0xff]  }
   0x3   :  { %v1862_v2 = vld [vmem:[%s2354_s1] sm:$0xff]   ;;  %1540 = vmatprep.subr.bf16.mxu1 %v1861_v1  ;;  %v1866_v6 = vld [vmem:[%s2354_s1 + $0x8] sm:$0xff]   ;;  %v1870_v10 = vld [vmem:[%s2354_s1 + $0x10] sm:$0xff]  }
   0x4   :  { %v1863_v3 = vld [vmem:[%s2354_s1 + $0x80] sm:$0xff]   ;;  %1501 = vmatpush3.bf16.msra.mxu0 %v1862_v2  ;;  %v1867_v7 = vld [vmem:[%s2354_s1 + $0x88] sm:$0xff]   ;;  %v1871_v11 = vld [vmem:[%s2354_s1 + $0x90] sm:$0xff]  }
   0x5   :  { %1541 = vmatpush3.bf16.msra.mxu1 %v1863_v3  ;;  %1502 = vmatprep.subr.bf16.mxu0 %v1864_v4  ;;  %v1872_v12 = vld [vmem:[%s2354_s1 + $0x58] sm:$0xff]   ;;  %v1876_v16 = vld [vmem:[%s2354_s1 + $0x60] sm:$0xff]   ;;  %v1880_v20 = vld [vmem:[%s2354_s1 + $0x68] sm:$0xff]  }
   0x6   :  { %1542 = vmatprep.subr.bf16.mxu1 %v1865_v5  ;;  %v1873_v13 = vld [vmem:[%s2354_s1 + $0xd8] sm:$0xff]   ;;  %v1877_v17 = vld [vmem:[%s2354_s1 + $0xe0] sm:$0xff]   ;;  %v1881_v21 = vld [vmem:[%s2354_s1 + $0xe8] sm:$0xff]  }
   0x7   :  { %v1874_v14 = vld [vmem:[%s2354_s1 + $0x18] sm:$0xff]   ;;  %v1878_v18 = vld [vmem:[%s2354_s1 + $0x20] sm:$0xff]   ;;  %v1882_v22 = vld [vmem:[%s2354_s1 + $0x28] sm:$0xff]  }
   0x8   :  { %1503 = vmatpush3.bf16.msra.mxu0 %v1866_v6  ;;  %v1875_v15 = vld [vmem:[%s2354_s1 + $0x98] sm:$0xff]   ;;  %v1879_v19 = vld [vmem:[%s2354_s1 + $0xa0] sm:$0xff]   ;;  %v1883_v23 = vld [vmem:[%s2354_s1 + $0xa8] sm:$0xff]  }
   0x9   :  { %1543 = vmatpush3.bf16.msra.mxu1 %v1867_v7  ;;  %1504 = vmatprep.subr.bf16.mxu0 %v1868_v8  ;;  %v1884_v24 = vld [vmem:[%s2354_s1 + $0x70] sm:$0xff]   ;;  %v1888_v28 = vld [vmem:[%s2354_s1 + $0x78] sm:$0xff]   ;;  %v24_v32 = vld [vmem:[%s2355_s0] sm:$0xff] }
   0xa   :  { %1544 = vmatprep.subr.bf16.mxu1 %v1869_v9  ;;  %v1885_v25 = vld [vmem:[%s2354_s1 + $0xf0] sm:$0xff]   ;;  %v1889_v29 = vld [vmem:[%s2354_s1 + $0xf8] sm:$0xff]   ;;  %v28_v33 = vld [vmem:[%s2355_s0 + $0x20] sm:$0xff] }
   0xb   :  { %v1886_v26 = vld [vmem:[%s2354_s1 + $0x30] sm:$0xff]   ;;  %v1890_v30 = vld [vmem:[%s2354_s1 + $0x38] sm:$0xff]   ;;  %v25_v34 = vld [vmem:[%s2355_s0 + $0x8] sm:$0xff]  ;;  %v1364_v35 = vcombine.low %v24_v32, %v28_v33  ;;  %v1365_v36 = vcombine.high %v24_v32, %v28_v33 }
   0xc   :  { %1505 = vmatpush3.bf16.msra.mxu0 %v1870_v10  ;;  %v1887_v27 = vld [vmem:[%s2354_s1 + $0xb0] sm:$0xff]   ;;  %v1891_v31 = vld [vmem:[%s2354_s1 + $0xb8] sm:$0xff]   ;;  %v29_v37 = vld [vmem:[%s2355_s0 + $0x28] sm:$0xff] }
   0xd   :  { %1545 = vmatpush3.bf16.msra.mxu1 %v1871_v11  ;;  %1506 = vmatprep.subr.bf16.mxu0 %v1872_v12  ;;  %v1366_v38 = vcombine.low %v25_v34, %v29_v37  ;;  %v1367_v39 = vcombine.high %v25_v34, %v29_v37  ;;  %v1892_v40 = vld [vmem:[%s2354_s1 + $0x140] sm:$0xff]   ;;  %v1896_v44 = vld [vmem:[%s2354_s1 + $0x148] sm:$0xff]   ;;  %v1900_v56 = vld [vmem:[%s2354_s1 + $0x150] sm:$0xff]  }
   0xe   :  { %1546 = vmatprep.subr.bf16.mxu1 %v1873_v13  ;;  %760 = vmatprep.mubr.bf16.mxu0 %v1365_v36  ;;  %v1893_v41 = vld [vmem:[%s2354_s1 + $0x1c0] sm:$0xff]   ;;  %v1897_v45 = vld [vmem:[%s2354_s1 + $0x1c8] sm:$0xff]   ;;  %v1901_v57 = vld [vmem:[%s2354_s1 + $0x1d0] sm:$0xff]  }
   0xf   :  { %825 = vmatprep.mubr.bf16.mxu1 %v1367_v39  ;;  %v1894_v42 = vld [vmem:[%s2354_s1 + $0x100] sm:$0xff]   ;;  %v1898_v46 = vld [vmem:[%s2354_s1 + $0x108] sm:$0xff]   ;;  %v1902_v58 = vld [vmem:[%s2354_s1 + $0x110] sm:$0xff]  }
  0x10   :  { %1507 = vmatpush3.bf16.msra.mxu0 %v1874_v14  ;;  %v1895_v43 = vld [vmem:[%s2354_s1 + $0x180] sm:$0xff]   ;;  %v1899_v47 = vld [vmem:[%s2354_s1 + $0x188] sm:$0xff]   ;;  %v1903_v59 = vld [vmem:[%s2354_s1 + $0x190] sm:$0xff]  }
  0x11   :  { %1547 = vmatpush3.bf16.msra.mxu1 %v1875_v15  ;;  %1508 = vmatprep.subr.bf16.mxu0 %v1876_v16  ;;  %v32_v48 = vld [vmem:[%s2355_s0 + $0x40] sm:$0xff]  ;;  %v33_v51 = vld [vmem:[%s2355_s0 + $0x48] sm:$0xff]  ;;  %v1904_v60 = vld [vmem:[%s2354_s1 + $0x158] sm:$0xff]  }
  0x12   :  { %1548 = vmatprep.subr.bf16.mxu1 %v1877_v17  ;;  %v36_v49 = vld [vmem:[%s2355_s0 + $0x60] sm:$0xff]  ;;  %v37_v52 = vld [vmem:[%s2355_s0 + $0x68] sm:$0xff]  ;;  %v1905_v61 = vld [vmem:[%s2354_s1 + $0x1d8] sm:$0xff]  }
  0x13   :  { %v1373_v50 = vcombine.high %v32_v48, %v36_v49  ;;  %v1372_v53 = vcombine.low %v32_v48, %v36_v49  ;;  %v1375_v54 = vcombine.high %v33_v51, %v37_v52  ;;  %v1374_v55 = vcombine.low %v33_v51, %v37_v52  ;;  %v1906_v62 = vld [vmem:[%s2354_s1 + $0x118] sm:$0xff]   ;;  %v40_v0 = vld [vmem:[%s2355_s0 + $0x80] sm:$0xff]  ;;  %v41_v2 = vld [vmem:[%s2355_s0 + $0x88] sm:$0xff] }
  0x14   :  { %1509 = vmatpush3.bf16.msra.mxu0 %v1878_v18  ;;  %v1907_v63 = vld [vmem:[%s2354_s1 + $0x198] sm:$0xff]   ;;  %v44_v1 = vld [vmem:[%s2355_s0 + $0xa0] sm:$0xff]  ;;  %v45_v3 = vld [vmem:[%s2355_s0 + $0xa8] sm:$0xff] }
  0x15   :  { %1549 = vmatpush3.bf16.msra.mxu1 %v1879_v19  ;;  %1510 = vmatprep.subr.bf16.mxu0 %v1880_v20  ;;  %v1381_v4 = vcombine.high %v40_v0, %v44_v1  ;;  %v1383_v5 = vcombine.high %v41_v2, %v45_v3  ;;  %v1380_v6 = vcombine.low %v40_v0, %v44_v1  ;;  %v1908_v8 = vld [vmem:[%s2354_s1 + $0x160] sm:$0xff]   ;;  %v1912_v12 = vld [vmem:[%s2354_s1 + $0x168] sm:$0xff]   ;;  %v26_v32 = vld [vmem:[%s2355_s0 + $0x10] sm:$0xff] }
  0x16   :  { %1550 = vmatprep.subr.bf16.mxu1 %v1881_v21  ;;  %v1382_v7 = vcombine.low %v41_v2, %v45_v3  ;;  %v1909_v9 = vld [vmem:[%s2354_s1 + $0x1e0] sm:$0xff]   ;;  %v1913_v13 = vld [vmem:[%s2354_s1 + $0x1e8] sm:$0xff]   ;;  %v30_v33 = vld [vmem:[%s2355_s0 + $0x30] sm:$0xff] }
  0x17   :  { %v1910_v10 = vld [vmem:[%s2354_s1 + $0x120] sm:$0xff]   ;;  %v1914_v14 = vld [vmem:[%s2354_s1 + $0x128] sm:$0xff]   ;;  %v1368_v34 = vcombine.low %v26_v32, %v30_v33  ;;  %v27_v36 = vld [vmem:[%s2355_s0 + $0x18] sm:$0xff] }
  0x18   :  { %1511 = vmatpush3.bf16.msra.mxu0 %v1882_v22  ;;  %v1911_v11 = vld [vmem:[%s2354_s1 + $0x1a0] sm:$0xff]   ;;  %v1915_v15 = vld [vmem:[%s2354_s1 + $0x1a8] sm:$0xff]   ;;  %v31_v37 = vld [vmem:[%s2355_s0 + $0x38] sm:$0xff] }
  0x19   :  { %1551 = vmatpush3.bf16.msra.mxu1 %v1883_v23  ;;  %1512 = vmatprep.subr.bf16.mxu0 %v1884_v24  ;;  %v48_v16 = vld [vmem:[%s2355_s0 + $0xc0] sm:$0xff]  ;;  %v49_v18 = vld [vmem:[%s2355_s0 + $0xc8] sm:$0xff]  ;;  %v1916_v24 = vld [vmem:[%s2354_s1 + $0x170] sm:$0xff]   ;;  %v1370_v39 = vcombine.low %v27_v36, %v31_v37 }
  0x1a   :  { %1552 = vmatprep.subr.bf16.mxu1 %v1885_v25  ;;  %v52_v17 = vld [vmem:[%s2355_s0 + $0xe0] sm:$0xff]  ;;  %v53_v20 = vld [vmem:[%s2355_s0 + $0xe8] sm:$0xff]  ;;  %v1917_v25 = vld [vmem:[%s2354_s1 + $0x1f0] sm:$0xff]  }
  0x1b   :  { %v1389_v19 = vcombine.high %v48_v16, %v52_v17  ;;  %v1388_v21 = vcombine.low %v48_v16, %v52_v17  ;;  %v1391_v22 = vcombine.high %v49_v18, %v53_v20  ;;  %v1390_v23 = vcombine.low %v49_v18, %v53_v20  ;;  %v43_v48 = vld [vmem:[%s2355_s0 + $0x98] sm:$0xff]  ;;  %v988_v0 = vld [vmem:[%s2356_s2] sm:$0xff]  ;;  %v989_v1 = vld [vmem:[%s2356_s2 + $0x8] sm:$0xff] }
  0x1c   :  { %1513 = vmatpush3.bf16.msra.mxu0 %v1886_v26  ;;  %v1918_v26 = vld [vmem:[%s2354_s1 + $0x130] sm:$0xff]   ;;  %v47_v49 = vld [vmem:[%s2355_s0 + $0xb8] sm:$0xff]  ;;  %v1796_v2 = vpack.c.bf16 %v989_v1, %v988_v0  ;;  %v1000_v18 = vld [vmem:[%s2356_s2 + $0x60] sm:$0xff] }
  0x1d   :  { %1553 = vmatpush3.bf16.msra.mxu1 %v1887_v27  ;;  %1514 = vmatprep.subr.bf16.mxu0 %v1888_v28  ;;  %v1919_v27 = vld [vmem:[%s2354_s1 + $0x1b0] sm:$0xff]   ;;  %v1920_v28 = vld [vmem:[%s2354_s1 + $0x178] sm:$0xff]  }
  0x1e   :  { %1554 = vmatprep.subr.bf16.mxu1 %v1889_v29  ;;  %v1921_v29 = vld [vmem:[%s2354_s1 + $0x1f8] sm:$0xff]   ;;  %v990_v3 = vld [vmem:[%s2356_s2 + $0x10] sm:$0xff] }
  0x1f   :  { %v999_v16 = vld [vmem:[%s2356_s2 + $0x58] sm:$0xff] }
  0x20   :  { %1515 = vmatpush3.bf16.msra.mxu0 %v1890_v30  ;;  %v1922_v30 = vld [vmem:[%s2354_s1 + $0x138] sm:$0xff]  }
  0x21   :  { %1555 = vmatpush3.bf16.msra.mxu1 %v1891_v31  ;;  %1580 = vmatprep.subr.bf16.mxu0 %v1892_v40  ;;  %v1923_v31 = vld [vmem:[%s2354_s1 + $0x1b8] sm:$0xff]   ;;  %v1371_v40 = vcombine.high %v27_v36, %v31_v37 }
  0x22   :  { %1620 = vmatprep.subr.bf16.mxu1 %v1893_v41  ;;  %v38_v41 = vld [vmem:[%s2355_s0 + $0x70] sm:$0xff] }
  0x23   :  { %761 = vmatmul.mubr.bf16.vlgmr.msra.gmra.mrb[0].mxu0 %v1364_v35  ;;  %v1369_v35 = vcombine.high %v26_v32, %v30_v33 }
  0x24   :  { %826 = vmatmul.mubr.bf16.vlgmr.msra.gmra.mrb[0].mxu1 %v1366_v38  ;;  %1581 = vmatpush3.bf16.msra.mxu0 %v1894_v42  ;;  %v34_v38 = vld [vmem:[%s2355_s0 + $0x50] sm:$0xff]  ;;  %v35_v42 = vld [vmem:[%s2355_s0 + $0x58] sm:$0xff] }
  0x25   :  { %1621 = vmatpush3.bf16.msra.mxu1 %v1895_v43  ;;  %1582 = vmatprep.subr.bf16.mxu0 %v1896_v44  ;;  %v39_v43 = vld [vmem:[%s2355_s0 + $0x78] sm:$0xff]  ;;  %v1377_v44 = vcombine.high %v34_v38, %v38_v41 }
  0x26   :  { %1622 = vmatprep.subr.bf16.mxu1 %v1897_v45  ;;  %768 = vmatprep.mubr.bf16.mxu0 %v1373_v50  ;;  %v1379_v45 = vcombine.high %v35_v42, %v39_v43  ;;  %v1376_v50 = vcombine.low %v34_v38, %v38_v41  ;;  %v1378_v51 = vcombine.low %v35_v42, %v39_v43 }
  0x27   :  { %833 = vmatprep.mubr.bf16.mxu1 %v1375_v54  ;;  %v50_v54 = vld [vmem:[%s2355_s0 + $0xd0] sm:$0xff] }
  0x28   :  { %1583 = vmatpush3.bf16.msra.mxu0 %v1898_v46  ;;  %v42_v46 = vld [vmem:[%s2355_s0 + $0x90] sm:$0xff] }
  0x29   :  { %1623 = vmatpush3.bf16.msra.mxu1 %v1899_v47  ;;  %1584 = vmatprep.subr.bf16.mxu0 %v1900_v56  ;;  %v46_v47 = vld [vmem:[%s2355_s0 + $0xb0] sm:$0xff]  ;;  %v51_v56 = vld [vmem:[%s2355_s0 + $0xd8] sm:$0xff] }
  0x2a   :  { %1624 = vmatprep.subr.bf16.mxu1 %v1901_v57  ;;  %v1385_v52 = vcombine.high %v42_v46, %v46_v47  ;;  %v55_v57 = vld [vmem:[%s2355_s0 + $0xf8] sm:$0xff] }
  0x2b   :  { %769 = vmatmul.mubr.bf16.gmra.mrb[4].mxu0 %v1372_v53  ;;  %v1387_v53 = vcombine.high %v43_v48, %v47_v49 }
  0x2c   :  { %834 = vmatmul.mubr.bf16.gmra.mrb[4].mxu1 %v1374_v55  ;;  %1585 = vmatpush3.bf16.msra.mxu0 %v1902_v58  ;;  %v54_v55 = vld [vmem:[%s2355_s0 + $0xf0] sm:$0xff]  ;;  %v1384_v58 = vcombine.low %v42_v46, %v46_v47 }
  0x2d   :  { %1625 = vmatpush3.bf16.msra.mxu1 %v1903_v59  ;;  %1586 = vmatprep.subr.bf16.mxu0 %v1904_v60  ;;  %v1386_v59 = vcombine.low %v43_v48, %v47_v49  ;;  %v1393_v60 = vcombine.high %v50_v54, %v54_v55 }
  0x2e   :  { %1626 = vmatprep.subr.bf16.mxu1 %v1905_v61  ;;  %776 = vmatprep.mubr.bf16.mxu0 %v1381_v4  ;;  %v1395_v61 = vcombine.high %v51_v56, %v55_v57  ;;  %v991_v4 = vld [vmem:[%s2356_s2 + $0x18] sm:$0xff] }
  0x2f   :  { %841 = vmatprep.mubr.bf16.mxu1 %v1383_v5  ;;  %v1800_v5 = vpack.c.bf16 %v991_v4, %v990_v3 }
  0x30   :  { %1587 = vmatpush3.bf16.msra.mxu0 %v1906_v62  ;;  %v1392_v62 = vcombine.low %v50_v54, %v54_v55 }
  0x31   :  { %1627 = vmatpush3.bf16.msra.mxu1 %v1907_v63  ;;  %1588 = vmatprep.subr.bf16.mxu0 %v1908_v8  ;;  %v1394_v63 = vcombine.low %v51_v56, %v55_v57 }
  0x32   :  { %1628 = vmatprep.subr.bf16.mxu1 %v1909_v9  ;;  %v994_v9 = vld [vmem:[%s2356_s2 + $0x30] sm:$0xff] }
  0x33   :  { %777 = vmatmul.mubr.bf16.gmra.mrb[8].mxu0 %v1380_v6  ;;  %v992_v6 = vld [vmem:[%s2356_s2 + $0x20] sm:$0xff] }
  0x34   :  { %842 = vmatmul.mubr.bf16.gmra.mrb[8].mxu1 %v1382_v7  ;;  %1589 = vmatpush3.bf16.msra.mxu0 %v1910_v10  ;;  %v993_v7 = vld [vmem:[%s2356_s2 + $0x28] sm:$0xff]  ;;  %v995_v10 = vld [vmem:[%s2356_s2 + $0x38] sm:$0xff] }
  0x35   :  { %1629 = vmatpush3.bf16.msra.mxu1 %v1911_v11  ;;  %1590 = vmatprep.subr.bf16.mxu0 %v1912_v12  ;;  %v1804_v8 = vpack.c.bf16 %v993_v7, %v992_v6  ;;  %v1808_v11 = vpack.c.bf16 %v995_v10, %v994_v9  ;;  %v996_v12 = vld [vmem:[%s2356_s2 + $0x40] sm:$0xff] }
  0x36   :  { %1630 = vmatprep.subr.bf16.mxu1 %v1913_v13  ;;  %784 = vmatprep.mubr.bf16.mxu0 %v1389_v19  ;;  %v997_v13 = vld [vmem:[%s2356_s2 + $0x48] sm:$0xff] }
  0x37   :  { %849 = vmatprep.mubr.bf16.mxu1 %v1391_v22  ;;  %v1001_v19 = vld [vmem:[%s2356_s2 + $0x68] sm:$0xff]  ;;  %v1003_v22 = vld [vmem:[%s2356_s2 + $0x78] sm:$0xff] }
  0x38   :  { %1591 = vmatpush3.bf16.msra.mxu0 %v1914_v14  ;;  %v1812_v14 = vpack.c.bf16 %v997_v13, %v996_v12  ;;  %v1820_v20 = vpack.c.bf16 %v1001_v19, %v1000_v18 }
  0x39   :  { %1631 = vmatpush3.bf16.msra.mxu1 %v1915_v15  ;;  %1592 = vmatprep.subr.bf16.mxu0 %v1916_v24  ;;  %v998_v15 = vld [vmem:[%s2356_s2 + $0x50] sm:$0xff] }
  0x3a   :  { %1632 = vmatprep.subr.bf16.mxu1 %v1917_v25  ;;  %v1816_v17 = vpack.c.bf16 %v999_v16, %v998_v15 }
  0x3b   :  { %785 = vmatmul.mubr.bf16.gmra.mrb[12].mxu0 %v1388_v21  ;;  %v1002_v21 = vld [vmem:[%s2356_s2 + $0x70] sm:$0xff] }
  0x3c   :  { %850 = vmatmul.mubr.bf16.gmra.mrb[12].mxu1 %v1390_v23  ;;  %1593 = vmatpush3.bf16.msra.mxu0 %v1918_v26  ;;  %v1824_v23 = vpack.c.bf16 %v1003_v22, %v1002_v21 }
  0x3d   :  { %1633 = vmatpush3.bf16.msra.mxu1 %v1919_v27  ;;  %1594 = vmatprep.subr.bf16.mxu0 %v1920_v28 }
  0x3e   :  { %1634 = vmatprep.subr.bf16.mxu1 %v1921_v29  ;;  %890 = vmatprep.mubr.bf16.mxu0 %v1369_v35 }
  0x3f   :  { %955 = vmatprep.mubr.bf16.mxu1 %v1371_v40 }
  0x40   :  { %1595 = vmatpush3.bf16.msra.mxu0 %v1922_v30 }
  0x41   :  { %1635 = vmatpush3.bf16.msra.mxu1 %v1923_v31  ;;  %1797 = vmatprep.subr.bf16.mxu0 %v1796_v2 }
  0x42   :  { %1829 = vmatprep.subr.bf16.mxu1 %v1796_v2 }
  0x43   :  { %891 = vmatmul.mubr.bf16.vlgmr.msra.gmra.mrb[16].mxu0 %v1368_v34 }
  0x44   :  { %956 = vmatmul.mubr.bf16.vlgmr.msra.gmra.mrb[16].mxu1 %v1370_v39  ;;  %898 = vmatprep.mubr.bf16.mxu0 %v1377_v44 }
  0x45   :  { %963 = vmatprep.mubr.bf16.mxu1 %v1379_v45  ;;  %1799 = vmatpush3.bf16.msra.mxu0 %v1796_v2 }
  0x46   :  { %1831 = vmatpush3.bf16.msra.mxu1 %v1796_v2  ;;  %1801 = vmatprep.subr.bf16.mxu0 %v1800_v5 }
  0x47   :  { %1833 = vmatprep.subr.bf16.mxu1 %v1800_v5 }
  0x49   :  { %1803 = vmatpush3.bf16.msra.mxu0 %v1800_v5 }
  0x4a   :  { %1835 = vmatpush3.bf16.msra.mxu1 %v1800_v5  ;;  %1805 = vmatprep.subr.bf16.mxu0 %v1804_v8 }
  0x4b   :  { %899 = vmatmul.mubr.bf16.gmra.mrb[20].mxu0 %v1376_v50  ;;  %1837 = vmatprep.subr.bf16.mxu1 %v1804_v8 }
  0x4c   :  { %964 = vmatmul.mubr.bf16.gmra.mrb[20].mxu1 %v1378_v51  ;;  %906 = vmatprep.mubr.bf16.mxu0 %v1385_v52 }
  0x4d   :  { %971 = vmatprep.mubr.bf16.mxu1 %v1387_v53  ;;  %1807 = vmatpush3.bf16.msra.mxu0 %v1804_v8 }
  0x4e   :  { %1839 = vmatpush3.bf16.msra.mxu1 %v1804_v8  ;;  %1809 = vmatprep.subr.bf16.mxu0 %v1808_v11 }
  0x4f   :  { %1841 = vmatprep.subr.bf16.mxu1 %v1808_v11 }
  0x51   :  { %1811 = vmatpush3.bf16.msra.mxu0 %v1808_v11 }
  0x52   :  { %1843 = vmatpush3.bf16.msra.mxu1 %v1808_v11  ;;  %1813 = vmatprep.subr.bf16.mxu0 %v1812_v14 }
  0x53   :  { %907 = vmatmul.mubr.bf16.gmra.mrb[24].mxu0 %v1384_v58  ;;  %1845 = vmatprep.subr.bf16.mxu1 %v1812_v14 }
  0x54   :  { %972 = vmatmul.mubr.bf16.gmra.mrb[24].mxu1 %v1386_v59  ;;  %914 = vmatprep.mubr.bf16.mxu0 %v1393_v60 }
  0x55   :  { %979 = vmatprep.mubr.bf16.mxu1 %v1395_v61  ;;  %1815 = vmatpush3.bf16.msra.mxu0 %v1812_v14 }
  0x56   :  { %1847 = vmatpush3.bf16.msra.mxu1 %v1812_v14  ;;  %1817 = vmatprep.subr.bf16.mxu0 %v1816_v17 }
  0x57   :  { %1849 = vmatprep.subr.bf16.mxu1 %v1816_v17 }
  0x59   :  { %1819 = vmatpush3.bf16.msra.mxu0 %v1816_v17 }
  0x5a   :  { %1851 = vmatpush3.bf16.msra.mxu1 %v1816_v17  ;;  %1821 = vmatprep.subr.bf16.mxu0 %v1820_v20 }
  0x5b   :  { %915 = vmatmul.mubr.bf16.gmra.mrb[28].mxu0 %v1392_v62  ;;  %1853 = vmatprep.subr.bf16.mxu1 %v1820_v20 }
  0x5c   :  { %980 = vmatmul.mubr.bf16.gmra.mrb[28].mxu1 %v1394_v63 }
  0x5d   :  { %1823 = vmatpush3.bf16.msra.mxu0 %v1820_v20 }
  0x5e   :  { %1855 = vmatpush3.bf16.msra.mxu1 %v1820_v20  ;;  %1825 = vmatprep.subr.bf16.mxu0 %v1824_v23 }
  0x5f   :  { %1857 = vmatprep.subr.bf16.mxu1 %v1824_v23 }
  0x61   :  { %1827 = vmatpush3.bf16.msra.mxu0 %v1824_v23 }
  0x62   :  { %1859 = vmatpush3.bf16.msra.mxu1 %v1824_v23 }
  0xf6   :  { %v1516_v24 = vpop.f32.mrb[0].mxu0 }
  0xf7   :  { %v1556_v25 = vpop.f32.mrb[0].mxu1  ;;  %v1517_v26 = vpop.f32.mrb[1].mxu0 }
  0xf8   :  { %v1518_v27 = vadd.f32 %v1517_v26, %v1516_v24  ;;  %v1557_v28 = vpop.f32.mrb[1].mxu1  ;;  %v1519_v29 = vpop.f32.mrb[2].mxu0 }
  0xf9   :  { %v1558_v30 = vadd.f32 %v1557_v28, %v1556_v25  ;;  %v1559_v31 = vpop.f32.mrb[2].mxu1  ;;  %v1520_v32 = vpop.f32.mrb[3].mxu0 }
  0xfa   :  { %v1521_v33 = vadd.f32 %v1520_v32, %v1519_v29  ;;  %v1560_v34 = vpop.f32.mrb[3].mxu1 }
  0xfb   :  { %v828_v35 = vadd.f32 %v1558_v30, %v1518_v27  ;;  %v1561_v36 = vadd.f32 %v1560_v34, %v1559_v31 }
  0xfd   :  { %v831_v37 = vadd.f32 %v1561_v36, %v1521_v33 }
  0xfe   :  { %v1522_v38 = vpop.f32.mrb[4].mxu0 }
  0xff   :  { %v1562_v39 = vpop.f32.mrb[4].mxu1  ;;  %v1523_v40 = vpop.f32.mrb[5].mxu0 }
 0x100   :  { %v1524_v41 = vadd.f32 %v1523_v40, %v1522_v38  ;;  %v1563_v42 = vpop.f32.mrb[5].mxu1  ;;  %v1525_v43 = vpop.f32.mrb[6].mxu0 }
 0x101   :  { %v1564_v44 = vadd.f32 %v1563_v42, %v1562_v39  ;;  %v1565_v45 = vpop.f32.mrb[6].mxu1  ;;  %v1526_v46 = vpop.f32.mrb[7].mxu0 }
 0x102   :  { %v1527_v47 = vadd.f32 %v1526_v46, %v1525_v43  ;;  %v1566_v48 = vpop.f32.mrb[7].mxu1 }
 0x103   :  { %v836_v49 = vadd.f32 %v1564_v44, %v1524_v41  ;;  %v1567_v50 = vadd.f32 %v1566_v48, %v1565_v45 }
 0x105   :  { %v839_v51 = vadd.f32 %v1567_v50, %v1527_v47 }
 0x106   :  { %v1528_v52 = vpop.f32.mrb[8].mxu0 }
 0x107   :  { %v1568_v53 = vpop.f32.mrb[8].mxu1  ;;  %v1529_v54 = vpop.f32.mrb[9].mxu0 }
 0x108   :  { %v1569_v55 = vpop.f32.mrb[9].mxu1  ;;  %v1530_v56 = vadd.f32 %v1529_v54, %v1528_v52  ;;  %v1531_v58 = vpop.f32.mrb[10].mxu0 }
 0x109   :  { %v1570_v57 = vadd.f32 %v1569_v55, %v1568_v53  ;;  %v1571_v59 = vpop.f32.mrb[10].mxu1  ;;  %v1532_v60 = vpop.f32.mrb[11].mxu0 }
 0x10a   :  { %v1572_v61 = vpop.f32.mrb[11].mxu1  ;;  %v1533_v63 = vadd.f32 %v1532_v60, %v1531_v58 }
 0x10b   :  { %v2297_v62 = vadd.f32 %v1570_v57, %v1530_v56  ;;  %v1573_v0 = vadd.f32 %v1572_v61, %v1571_v59 }
 0x10d   :  { %v2299_v1 = vadd.f32 %v1573_v0, %v1533_v63 }
 0x10e   :  { %v1534_v2 = vpop.f32.mrb[12].mxu0 }
 0x10f   :  { %v1574_v3 = vpop.f32.mrb[12].mxu1  ;;  %v1535_v4 = vpop.f32.mrb[13].mxu0 }
 0x110   :  { %v1536_v5 = vadd.f32 %v1535_v4, %v1534_v2  ;;  %v1575_v6 = vpop.f32.mrb[13].mxu1  ;;  %v1537_v7 = vpop.f32.mrb[14].mxu0 }
 0x111   :  { %v1576_v8 = vadd.f32 %v1575_v6, %v1574_v3  ;;  %v1577_v9 = vpop.f32.mrb[14].mxu1  ;;  %v1538_v10 = vpop.f32.mrb[15].mxu0 }
 0x112   :  { %v1539_v11 = vadd.f32 %v1538_v10, %v1537_v7  ;;  %v1578_v12 = vpop.f32.mrb[15].mxu1 }
 0x113   :  { %v2301_v13 = vadd.f32 %v1576_v8, %v1536_v5  ;;  %v1579_v14 = vadd.f32 %v1578_v12, %v1577_v9 }
 0x115   :  { %v2303_v15 = vadd.f32 %v1579_v14, %v1539_v11 }
 0x116   :  { %v1596_v16 = vpop.f32.mrb[16].mxu0 }
 0x117   :  { %v1636_v17 = vpop.f32.mrb[16].mxu1  ;;  %v1597_v18 = vpop.f32.mrb[17].mxu0 }
 0x118   :  { %v1598_v19 = vadd.f32 %v1597_v18, %v1596_v16  ;;  %v1637_v20 = vpop.f32.mrb[17].mxu1  ;;  %v1599_v21 = vpop.f32.mrb[18].mxu0 }
 0x119   :  { %v1638_v22 = vadd.f32 %v1637_v20, %v1636_v17  ;;  %v1639_v23 = vpop.f32.mrb[18].mxu1  ;;  %v1600_v24 = vpop.f32.mrb[19].mxu0 }
 0x11a   :  { %v893_v25 = vadd.f32 %v1598_v19, %v828_v35  ;;  %v1601_v26 = vadd.f32 %v1600_v24, %v1599_v21  ;;  %v1640_v27 = vpop.f32.mrb[19].mxu1 }
 0x11b   :  { %v1641_v28 = vadd.f32 %v1640_v27, %v1639_v23 }
 0x11c   :  { %v2305_v29 = vadd.f32 %v1638_v22, %v893_v25  ;;  %v896_v30 = vadd.f32 %v1601_v26, %v831_v37 }
 0x11e   :  { %v2307_v31 = vadd.f32 %v1641_v28, %v896_v30  ;;  %v1602_v32 = vpop.f32.mrb[20].mxu0  ;;  %1740 = vmatprep.mubr.f32.mxu0 %v2305_v29 }
 0x11f   :  { %v1642_v33 = vpop.f32.mrb[20].mxu1  ;;  %v1603_v34 = vpop.f32.mrb[21].mxu0 }
 0x120   :  { %v1604_v36 = vadd.f32 %v1603_v34, %v1602_v32  ;;  %v1643_v38 = vpop.f32.mrb[21].mxu1  ;;  %v1605_v39 = vpop.f32.mrb[22].mxu0  ;;  %1741 = vmatmul.mubr.f32.vlgmr.msra.gmra.mrb[32].mxu0 %v2307_v31 }
 0x121   :  { %v1644_v40 = vadd.f32 %v1643_v38, %v1642_v33  ;;  %v1645_v35 = vpop.f32.mrb[22].mxu1  ;;  %v1606_v41 = vpop.f32.mrb[23].mxu0 }
 0x122   :  { %v901_v42 = vadd.f32 %v1604_v36, %v836_v49  ;;  %v1607_v43 = vadd.f32 %v1606_v41, %v1605_v39  ;;  %v1646_v44 = vpop.f32.mrb[23].mxu1  ;;  %v1124_v36 = vlaneseq  ;;  %v1004_v41 = vld [vmem:[%s2357_s3] sm:$0x1] }
 0x123   :  { %v1647_v45 = vadd.f32 %v1646_v44, %v1645_v35 }
 0x124   :  { %v2311_v37 = vadd.f32 %v1644_v40, %v901_v42  ;;  %v904_v46 = vadd.f32 %v1607_v43, %v839_v51  ;;  %v1125_v40 = vshrl.u32 %v1124_v36, 7 }
 0x126   :  { %v2313_v47 = vadd.f32 %v1647_v45, %v904_v46  ;;  %v1608_v48 = vpop.f32.mrb[24].mxu0  ;;  %1743 = vmatprep.mubr.f32.mxu0 %v2311_v37  ;;  %v1126_v43 = vsub.s32 0, %v1125_v40 }
 0x127   :  { %v1648_v50 = vpop.f32.mrb[24].mxu1  ;;  %v1609_v52 = vpop.f32.mrb[25].mxu0 }
 0x128   :  { %v1610_v53 = vadd.f32 %v1609_v52, %v1608_v48  ;;  %v1649_v54 = vpop.f32.mrb[25].mxu1  ;;  %v1611_v55 = vpop.f32.mrb[26].mxu0  ;;  %1744 = vmatmul.mubr.f32.gmra.mrb[34].mxu0 %v2313_v47 }
 0x129   :  { %v1650_v56 = vadd.f32 %v1649_v54, %v1648_v50  ;;  %v1651_v49 = vpop.f32.mrb[26].mxu1  ;;  %v1612_v57 = vpop.f32.mrb[27].mxu0 }
 0x12a   :  { %v909_v58 = vadd.f32 %v1610_v53, %v2297_v62  ;;  %v1613_v59 = vadd.f32 %v1612_v57, %v1611_v55  ;;  %v1652_v60 = vpop.f32.mrb[27].mxu1 }
 0x12b   :  { %v1653_v51 = vadd.f32 %v1652_v60, %v1651_v49 }
 0x12c   :  { %v974_v61 = vadd.f32 %v1650_v56, %v909_v58  ;;  %v912_v63 = vadd.f32 %v1613_v59, %v2299_v1 }
 0x12e   :  { %v977_v0 = vadd.f32 %v1653_v51, %v912_v63  ;;  %v1614_v2 = vpop.f32.mrb[28].mxu0  ;;  %1746 = vmatprep.mubr.f32.mxu0 %v974_v61 }
 0x12f   :  { %v1654_v3 = vpop.f32.mrb[28].mxu1  ;;  %v1615_v4 = vpop.f32.mrb[29].mxu0 }
 0x130   :  { %v1616_v5 = vadd.f32 %v1615_v4, %v1614_v2  ;;  %v1655_v6 = vpop.f32.mrb[29].mxu1  ;;  %v1617_v7 = vpop.f32.mrb[30].mxu0  ;;  %1747 = vmatmul.mubr.f32.gmra.mrb[36].mxu0 %v977_v0 }
 0x131   :  { %v1656_v8 = vadd.f32 %v1655_v6, %v1654_v3  ;;  %v1657_v9 = vpop.f32.mrb[30].mxu1  ;;  %v1618_v10 = vpop.f32.mrb[31].mxu0 }
 0x132   :  { %v917_v62 = vadd.f32 %v1616_v5, %v2301_v13  ;;  %v1619_v11 = vadd.f32 %v1618_v10, %v1617_v7  ;;  %v1658_v12 = vpop.f32.mrb[31].mxu1 }
 0x133   :  { %v1659_v14 = vadd.f32 %v1658_v12, %v1657_v9 }
 0x134   :  { %v982_v16 = vadd.f32 %v1656_v8, %v917_v62  ;;  %v920_v1 = vadd.f32 %v1619_v11, %v2303_v15 }
 0x136   :  { %v985_v17 = vadd.f32 %v1659_v14, %v920_v1  ;;  %1749 = vmatprep.mubr.f32.mxu0 %v982_v16 }
 0x138   :  { %1750 = vmatmul.mubr.f32.gmra.mrb[38].mxu0 %v985_v17 }
 0x1f3   :  { %v1742_v18 = vpop.f32.mrb[32].mxu0 }
 0x1f4   :  { %v1071_v19 = vpop.f32.mrb[33].mxu0 }
 0x1f5   :  { %v1110_v20 = vadd.f32 %v1742_v18, %v1071_v19 }
 0x1fb   :  { %v1745_v21 = vpop.f32.mrb[34].mxu0 }
 0x1fc   :  { %v1081_v22 = vpop.f32.mrb[35].mxu0 }
 0x1fd   :  { %v1111_v23 = vadd.f32 %v1110_v20, %v1081_v22  ;;  %v1263_v20 = vld [vmem:[%s2358_s4] sm:$0x1] }
 0x1ff   :  { %v1112_v24 = vadd.f32 %v1745_v21, %v1111_v23 }
 0x203   :  { %v1748_v25 = vpop.f32.mrb[36].mxu0 }
 0x204   :  { %v1091_v26 = vpop.f32.mrb[37].mxu0 }
 0x205   :  { %v1113_v27 = vadd.f32 %v1112_v24, %v1091_v26  ;;  %v1460_v24 = vld [vmem:[%s2359_s5] ss:$0 sm:$0xff] }
 0x207   :  { %v1114_v13 = vadd.f32 %v1748_v25, %v1113_v27 }
 0x20b   :  { %v1751_v28 = vpop.f32.mrb[38].mxu0 }
 0x20c   :  { %v1101_v30 = vpop.f32.mrb[39].mxu0 }
 0x20d   :  { %v1115_v32 = vadd.f32 %v1114_v13, %v1101_v30 }
 0x20f   :  { %v1116_v33 = vadd.f32 %v1751_v28, %v1115_v32 }
 0x211   :  { %v1117_v34 = vrot.slane %v1116_v33, 4 }
 0x213   :  { %v1118_v15 = vadd.f32 %v1117_v34, %v1116_v33 }
 0x215   :  { %v1119_v38 = vrot.slane %v1118_v15, 2 }
 0x217   :  { %v1120_v39 = vadd.f32 %v1119_v38, %v1118_v15 }
 0x219   :  { %v1121_v35 = vrot.slane %v1120_v39, 1 }
 0x21b   :  { %v1122_v42 = vadd.f32 %v1121_v35, %v1120_v39 }
 0x21d   :  { %v1123_v44 = vmul.f32 %v1122_v42, %v1004_v41 }
 0x21f   :  { %v1127_v45 = vrot.slane %v1123_v44, %v1126_v43 }
 0x221   :  { %v1128_v46 = vsub.f32 %v2305_v29, %v1127_v45  ;;  %v1129_v48 = vsub.f32 %v2307_v31, %v1127_v45  ;;  %v1130_v50 = vsub.f32 %v2311_v37, %v1127_v45  ;;  %v1131_v54 = vsub.f32 %v2313_v47, %v1127_v45 }
 0x222   :  { %v1132_v56 = vsub.f32 %v974_v61, %v1127_v45  ;;  %v1133_v57 = vsub.f32 %v977_v0, %v1127_v45  ;;  %v1134_v59 = vsub.f32 %v982_v16, %v1127_v45  ;;  %v1135_v60 = vsub.f32 %v985_v17, %v1127_v45 }
 0x223   :  { %v1136_v52 = vmul.f32 %v1128_v46, %v1128_v46  ;;  %v1137_v53 = vmul.f32 %v1129_v48, %v1129_v48  ;;  %v1138_v55 = vmul.f32 %v1130_v50, %v1130_v50  ;;  %v1139_v49 = vmul.f32 %v1131_v54, %v1131_v54 }
 0x224   :  { %v1140_v58 = vmul.f32 %v1132_v56, %v1132_v56  ;;  %v1141_v29 = vmul.f32 %v1133_v57, %v1133_v57  ;;  %v1142_v31 = vmul.f32 %v1134_v59, %v1134_v59  ;;  %v1143_v37 = vmul.f32 %v1135_v60, %v1135_v60 }
 0x225   :  { %1784 = vmatprep.mubr.f32.mxu1 %v1136_v52 }
 0x226   :  { %1785 = vmatmul.mubr.f32.vlgmr.msra.gmra.mrb[32].mxu1 %v1137_v53 }
 0x227   :  { %1787 = vmatprep.mubr.f32.mxu1 %v1138_v55 }
 0x22a   :  { %1788 = vmatmul.mubr.f32.gmra.mrb[34].mxu1 %v1139_v49 }
 0x22b   :  { %1790 = vmatprep.mubr.f32.mxu1 %v1140_v58 }
 0x22e   :  { %1791 = vmatmul.mubr.f32.gmra.mrb[36].mxu1 %v1141_v29 }
 0x22f   :  { %1793 = vmatprep.mubr.f32.mxu1 %v1142_v31 }
 0x232   :  { %1794 = vmatmul.mubr.f32.gmra.mrb[38].mxu1 %v1143_v37 }
 0x2f9   :  { %v1786_v51 = vpop.f32.mrb[32].mxu1 }
 0x2fa   :  { %v1210_v47 = vpop.f32.mrb[33].mxu1 }
 0x2fb   :  { %v1249_v63 = vadd.f32 %v1786_v51, %v1210_v47 }
 0x2fd   :  { %v1789_v2 = vpop.f32.mrb[34].mxu1 }
 0x2fe   :  { %v1220_v61 = vpop.f32.mrb[35].mxu1 }
 0x2ff   :  { %v1250_v3 = vadd.f32 %v1249_v63, %v1220_v61 }
 0x301   :  { %v1792_v4 = vpop.f32.mrb[36].mxu1  ;;  %v1251_v5 = vadd.f32 %v1789_v2, %v1250_v3 }
 0x302   :  { %v1230_v0 = vpop.f32.mrb[37].mxu1 }
 0x303   :  { %v1252_v6 = vadd.f32 %v1251_v5, %v1230_v0 }
 0x305   :  { %v1795_v7 = vpop.f32.mrb[38].mxu1  ;;  %v1253_v8 = vadd.f32 %v1792_v4, %v1252_v6 }
 0x306   :  { %v1240_v9 = vpop.f32.mrb[39].mxu1 }
 0x307   :  { %v1254_v10 = vadd.f32 %v1253_v8, %v1240_v9 }
 0x309   :  { %v1255_v62 = vadd.f32 %v1795_v7, %v1254_v10 }
 0x30b   :  { %v1256_v11 = vrot.slane %v1255_v62, 4 }
 0x30d   :  { %v1257_v12 = vadd.f32 %v1256_v11, %v1255_v62 }
 0x30f   :  { %v1258_v14 = vrot.slane %v1257_v12, 2 }
 0x311   :  { %v1259_v16 = vadd.f32 %v1258_v14, %v1257_v12 }
 0x313   :  { %v1260_v1 = vrot.slane %v1259_v16, 1 }
 0x315   :  { %v1261_v17 = vadd.f32 %v1260_v1, %v1259_v16 }
 0x317   :  { %v1262_v18 = vmul.f32 %v1261_v17, %v1004_v41 }
 0x319   :  { %v1264_v19 = vadd.f32 1e-05, %v1262_v18 }
 0x31b   :  { %1924 = vrsqrt.f32 %v1264_v19 }
 0x325   :  { %v1925_v21 = vpop.eup %1924 }
 0x326   :  { %v1266_v22 = vmul.f32 %v1925_v21, %v1263_v20 }
 0x328   :  { %v1271_v23 = vrot.slane %v1266_v22, %v1126_v43 }
 0x32a   :  { %v1273_v25 = vmul.f32 %v1271_v23, %v1128_v46  ;;  %v1274_v26 = vmul.f32 %v1271_v23, %v1129_v48  ;;  %v1275_v27 = vmul.f32 %v1271_v23, %v1130_v50  ;;  %v1276_v13 = vmul.f32 %v1271_v23, %v1131_v54 }
 0x32b   :  { %v1277_v28 = vmul.f32 %v1271_v23, %v1132_v56  ;;  %v1278_v30 = vmul.f32 %v1271_v23, %v1133_v57  ;;  %v1279_v32 = vmul.f32 %v1271_v23, %v1134_v59  ;;  %v1280_v33 = vmul.f32 %v1271_v23, %v1135_v60 }
 0x32c   :  { %v1288_v34 = vadd.f32 %v1460_v24, %v1273_v25  ;;  %v1289_v15 = vadd.f32 %v1460_v24, %v1274_v26  ;;  %v1290_v36 = vadd.f32 %v1460_v24, %v1275_v27  ;;  %v1291_v38 = vadd.f32 %v1460_v24, %v1276_v13 }
 0x32d   :  { %v1292_v39 = vadd.f32 %v1460_v24, %v1277_v28  ;;  %v1293_v40 = vadd.f32 %v1460_v24, %v1278_v30  ;;  %v1294_v35 = vadd.f32 %v1460_v24, %v1279_v32  ;;  %v1295_v41 = vadd.f32 %v1460_v24, %v1280_v33 }
 0x32e   :  { %vm1296_vm0 = vcmp.gt.f32.partialorder %v1288_v34, 0.0  ;;  %vm1297_vm1 = vcmp.gt.f32.partialorder %v1289_v15, 0.0  ;;  %vm1298_vm2 = vcmp.gt.f32.partialorder %v1290_v36, 0.0  ;;  %vm1299_vm3 = vcmp.gt.f32.partialorder %v1291_v38, 0.0 }
 0x32f   :  { %vm1300_vm4 = vcmp.gt.f32.partialorder %v1292_v39, 0.0  ;;  %vm1301_vm5 = vcmp.gt.f32.partialorder %v1293_v40, 0.0  ;;  %vm1302_vm6 = vcmp.gt.f32.partialorder %v1294_v35, 0.0  ;;  %vm1303_vm7 = vcmp.gt.f32.partialorder %v1295_v41, 0.0 }
 0x330   :  { %v1304_v42 = vmul.f32 0.2, %v1288_v34  ;;  %v1305_v43 = vmul.f32 0.2, %v1289_v15  ;;  %v1306_v44 = vmul.f32 0.2, %v1290_v36 }
 0x331   :  { %v1307_v45 = vmul.f32 0.2, %v1291_v38  ;;  %v1308_v46 = vmul.f32 0.2, %v1292_v39  ;;  %v1309_v48 = vmul.f32 0.2, %v1293_v40 }
 0x332   :  { %v1310_v50 = vmul.f32 0.2, %v1294_v35  ;;  %v1311_v52 = vmul.f32 0.2, %v1295_v41  ;;  %v1312_v53 = vsel %vm1296_vm0, %v1288_v34, %v1304_v42  ;;  %v1313_v54 = vsel %vm1297_vm1, %v1289_v15, %v1305_v43 }
 0x333   :  { %v1314_v55 = vsel %vm1298_vm2, %v1290_v36, %v1306_v44  ;;  %v1315_v56 = vsel %vm1299_vm3, %v1291_v38, %v1307_v45  ;;  %v1316_v49 = vsel %vm1300_vm4, %v1292_v39, %v1308_v46  ;;  %v1317_v57 = vsel %vm1301_vm5, %v1293_v40, %v1309_v48 }
 0x334   :  { %v1318_v58 = vsel %vm1302_vm6, %v1294_v35, %v1310_v50  ;;  %v1319_v59 = vsel %vm1303_vm7, %v1295_v41, %v1311_v52  ;;  %v1480_v29 = vpack.c.bf16 %v1313_v54, %v1312_v53  ;;  %v1485_v60 = vpack.c.bf16 %v1315_v56, %v1314_v55 }
 0x335   :  { %v1490_v31 = vpack.c.bf16 %v1317_v57, %v1316_v49  ;;  %v1495_v37 = vpack.c.bf16 %v1319_v59, %v1318_v58 }
 0x336   :  { %1481 = vst [vmem:[%s2360_s6] sm:$0xff] %v1480_v29   ;;  %1497 = vst [vmem:[%s2360_s6 + $0x8] sm:$0xff] %v1485_v60  }
 0x337   :  { %1498 = vst [vmem:[%s2360_s6 + $0x10] sm:$0xff] %v1490_v31   ;;  %1499 = vst [vmem:[%s2360_s6 + $0x18] sm:$0xff] %v1495_v37  }

// kernel: autoenc_forward.8
= control target key start
LH: loop header
LB: loop body
LE: loop exit
PB: predicated region body
PF: predicated region fallthrough
CT: control target
= control target key end

     0   :  { %s1376_s1 = inlined_call_operand.vmem [shape: bf16[1024,128], index: 1, kind: input, shape index: {}]   ;;  %s1377_s0 = inlined_call_operand.vmem [shape: bf16[32,1024], index: 0, kind: input, shape index: {}]   ;;  %s1378_s2 = inlined_call_operand.vmem [shape: bf16[32,128], index: 2, kind: output, shape index: {}]  }
   0x1   :  { %v1051_v0 = vld [vmem:[%s1376_s1 + $0x40] sm:$0xff]   ;;  %v1055_v4 = vld [vmem:[%s1376_s1 + $0x48] sm:$0xff]   ;;  %v1059_v8 = vld [vmem:[%s1376_s1 + $0x50] sm:$0xff]  }
   0x2   :  { %v1052_v1 = vld [vmem:[%s1376_s1 + $0xc0] sm:$0xff]   ;;  %939 = vmatprep.subr.bf16.mxu0 %v1051_v0  ;;  %v1056_v5 = vld [vmem:[%s1376_s1 + $0xc8] sm:$0xff]   ;;  %v1060_v9 = vld [vmem:[%s1376_s1 + $0xd0] sm:$0xff]  }
   0x3   :  { %v1053_v2 = vld [vmem:[%s1376_s1] sm:$0xff]   ;;  %967 = vmatprep.subr.bf16.mxu1 %v1052_v1  ;;  %v1057_v6 = vld [vmem:[%s1376_s1 + $0x8] sm:$0xff]   ;;  %v1061_v10 = vld [vmem:[%s1376_s1 + $0x10] sm:$0xff]  }
   0x4   :  { %v1054_v3 = vld [vmem:[%s1376_s1 + $0x80] sm:$0xff]   ;;  %940 = vmatpush3.bf16.msra.mxu0 %v1053_v2  ;;  %v1058_v7 = vld [vmem:[%s1376_s1 + $0x88] sm:$0xff]   ;;  %v1062_v11 = vld [vmem:[%s1376_s1 + $0x90] sm:$0xff]  }
   0x5   :  { %968 = vmatpush3.bf16.msra.mxu1 %v1054_v3  ;;  %941 = vmatprep.subr.bf16.mxu0 %v1055_v4  ;;  %v1063_v12 = vld [vmem:[%s1376_s1 + $0x58] sm:$0xff]   ;;  %v1067_v16 = vld [vmem:[%s1376_s1 + $0x60] sm:$0xff]   ;;  %v1071_v20 = vld [vmem:[%s1376_s1 + $0x68] sm:$0xff]  }
   0x6   :  { %969 = vmatprep.subr.bf16.mxu1 %v1056_v5  ;;  %v1064_v13 = vld [vmem:[%s1376_s1 + $0xd8] sm:$0xff]   ;;  %v1068_v17 = vld [vmem:[%s1376_s1 + $0xe0] sm:$0xff]   ;;  %v1072_v21 = vld [vmem:[%s1376_s1 + $0xe8] sm:$0xff]  }
   0x7   :  { %v1065_v14 = vld [vmem:[%s1376_s1 + $0x18] sm:$0xff]   ;;  %v1069_v18 = vld [vmem:[%s1376_s1 + $0x20] sm:$0xff]   ;;  %v1073_v22 = vld [vmem:[%s1376_s1 + $0x28] sm:$0xff]  }
   0x8   :  { %942 = vmatpush3.bf16.msra.mxu0 %v1057_v6  ;;  %v1066_v15 = vld [vmem:[%s1376_s1 + $0x98] sm:$0xff]   ;;  %v1070_v19 = vld [vmem:[%s1376_s1 + $0xa0] sm:$0xff]   ;;  %v1074_v23 = vld [vmem:[%s1376_s1 + $0xa8] sm:$0xff]  }
   0x9   :  { %970 = vmatpush3.bf16.msra.mxu1 %v1058_v7  ;;  %943 = vmatprep.subr.bf16.mxu0 %v1059_v8  ;;  %v1075_v24 = vld [vmem:[%s1376_s1 + $0x70] sm:$0xff]   ;;  %v1079_v28 = vld [vmem:[%s1376_s1 + $0x78] sm:$0xff]   ;;  %v12_v32 = vld [vmem:[%s1377_s0] sm:$0xff] }
   0xa   :  { %971 = vmatprep.subr.bf16.mxu1 %v1060_v9  ;;  %v1076_v25 = vld [vmem:[%s1376_s1 + $0xf0] sm:$0xff]   ;;  %v1080_v29 = vld [vmem:[%s1376_s1 + $0xf8] sm:$0xff]   ;;  %v16_v33 = vld [vmem:[%s1377_s0 + $0x20] sm:$0xff] }
   0xb   :  { %v1077_v26 = vld [vmem:[%s1376_s1 + $0x30] sm:$0xff]   ;;  %v1081_v30 = vld [vmem:[%s1376_s1 + $0x38] sm:$0xff]   ;;  %v13_v34 = vld [vmem:[%s1377_s0 + $0x8] sm:$0xff]  ;;  %v840_v35 = vcombine.low %v12_v32, %v16_v33  ;;  %v841_v36 = vcombine.high %v12_v32, %v16_v33 }
   0xc   :  { %944 = vmatpush3.bf16.msra.mxu0 %v1061_v10  ;;  %v1078_v27 = vld [vmem:[%s1376_s1 + $0xb0] sm:$0xff]   ;;  %v1082_v31 = vld [vmem:[%s1376_s1 + $0xb8] sm:$0xff]   ;;  %v17_v37 = vld [vmem:[%s1377_s0 + $0x28] sm:$0xff] }
   0xd   :  { %972 = vmatpush3.bf16.msra.mxu1 %v1062_v11  ;;  %945 = vmatprep.subr.bf16.mxu0 %v1063_v12  ;;  %v842_v38 = vcombine.low %v13_v34, %v17_v37  ;;  %v843_v39 = vcombine.high %v13_v34, %v17_v37  ;;  %v1083_v40 = vld [vmem:[%s1376_s1 + $0x140] sm:$0xff]   ;;  %v1087_v44 = vld [vmem:[%s1376_s1 + $0x148] sm:$0xff]   ;;  %v1091_v48 = vld [vmem:[%s1376_s1 + $0x150] sm:$0xff]  }
   0xe   :  { %973 = vmatprep.subr.bf16.mxu1 %v1064_v13  ;;  %652 = vmatprep.mubr.bf16.mxu0 %v841_v36  ;;  %v1084_v41 = vld [vmem:[%s1376_s1 + $0x1c0] sm:$0xff]   ;;  %v1088_v45 = vld [vmem:[%s1376_s1 + $0x1c8] sm:$0xff]   ;;  %v1092_v49 = vld [vmem:[%s1376_s1 + $0x1d0] sm:$0xff]  }
   0xf   :  { %701 = vmatprep.mubr.bf16.mxu1 %v843_v39  ;;  %v1085_v42 = vld [vmem:[%s1376_s1 + $0x100] sm:$0xff]   ;;  %v1089_v46 = vld [vmem:[%s1376_s1 + $0x108] sm:$0xff]   ;;  %v1093_v50 = vld [vmem:[%s1376_s1 + $0x110] sm:$0xff]  }
  0x10   :  { %946 = vmatpush3.bf16.msra.mxu0 %v1065_v14  ;;  %v1086_v43 = vld [vmem:[%s1376_s1 + $0x180] sm:$0xff]   ;;  %v1090_v47 = vld [vmem:[%s1376_s1 + $0x188] sm:$0xff]   ;;  %v1094_v51 = vld [vmem:[%s1376_s1 + $0x190] sm:$0xff]  }
  0x11   :  { %974 = vmatpush3.bf16.msra.mxu1 %v1066_v15  ;;  %947 = vmatprep.subr.bf16.mxu0 %v1067_v16  ;;  %v1095_v52 = vld [vmem:[%s1376_s1 + $0x158] sm:$0xff]   ;;  %v1099_v56 = vld [vmem:[%s1376_s1 + $0x160] sm:$0xff]   ;;  %v21_v63 = vld [vmem:[%s1377_s0 + $0x48] sm:$0xff] }
  0x12   :  { %975 = vmatprep.subr.bf16.mxu1 %v1068_v17  ;;  %v1096_v53 = vld [vmem:[%s1376_s1 + $0x1d8] sm:$0xff]   ;;  %v1100_v57 = vld [vmem:[%s1376_s1 + $0x1e0] sm:$0xff]   ;;  %v25_v0 = vld [vmem:[%s1377_s0 + $0x68] sm:$0xff] }
  0x13   :  { %v1097_v54 = vld [vmem:[%s1376_s1 + $0x118] sm:$0xff]   ;;  %v1101_v58 = vld [vmem:[%s1376_s1 + $0x120] sm:$0xff]   ;;  %v851_v2 = vcombine.high %v21_v63, %v25_v0  ;;  %v1103_v3 = vld [vmem:[%s1376_s1 + $0x168] sm:$0xff]   ;;  %v850_v4 = vcombine.low %v21_v63, %v25_v0 }
  0x14   :  { %948 = vmatpush3.bf16.msra.mxu0 %v1069_v18  ;;  %v1098_v55 = vld [vmem:[%s1376_s1 + $0x198] sm:$0xff]   ;;  %v1102_v59 = vld [vmem:[%s1376_s1 + $0x1a0] sm:$0xff]   ;;  %v1104_v5 = vld [vmem:[%s1376_s1 + $0x1e8] sm:$0xff]  }
  0x15   :  { %976 = vmatpush3.bf16.msra.mxu1 %v1070_v19  ;;  %949 = vmatprep.subr.bf16.mxu0 %v1071_v20  ;;  %v20_v60 = vld [vmem:[%s1377_s0 + $0x40] sm:$0xff]  ;;  %v1105_v6 = vld [vmem:[%s1376_s1 + $0x128] sm:$0xff]   ;;  %v1107_v8 = vld [vmem:[%s1376_s1 + $0x170] sm:$0xff]  }
  0x16   :  { %977 = vmatprep.subr.bf16.mxu1 %v1072_v21  ;;  %v24_v61 = vld [vmem:[%s1377_s0 + $0x60] sm:$0xff]  ;;  %v1106_v7 = vld [vmem:[%s1376_s1 + $0x1a8] sm:$0xff]   ;;  %v1108_v9 = vld [vmem:[%s1376_s1 + $0x1f0] sm:$0xff]  }
  0x17   :  { %v849_v62 = vcombine.high %v20_v60, %v24_v61  ;;  %v848_v1 = vcombine.low %v20_v60, %v24_v61  ;;  %v1109_v10 = vld [vmem:[%s1376_s1 + $0x130] sm:$0xff]   ;;  %v1111_v12 = vld [vmem:[%s1376_s1 + $0x178] sm:$0xff]  }
  0x18   :  { %950 = vmatpush3.bf16.msra.mxu0 %v1073_v22  ;;  %v1110_v11 = vld [vmem:[%s1376_s1 + $0x1b0] sm:$0xff]   ;;  %v1112_v13 = vld [vmem:[%s1376_s1 + $0x1f8] sm:$0xff]  }
  0x19   :  { %978 = vmatpush3.bf16.msra.mxu1 %v1074_v23  ;;  %951 = vmatprep.subr.bf16.mxu0 %v1075_v24  ;;  %v1113_v14 = vld [vmem:[%s1376_s1 + $0x138] sm:$0xff]   ;;  %v14_v16 = vld [vmem:[%s1377_s0 + $0x10] sm:$0xff] }
  0x1a   :  { %979 = vmatprep.subr.bf16.mxu1 %v1076_v25  ;;  %v1114_v15 = vld [vmem:[%s1376_s1 + $0x1b8] sm:$0xff]   ;;  %v18_v17 = vld [vmem:[%s1377_s0 + $0x30] sm:$0xff] }
  0x1b   :  { %v15_v18 = vld [vmem:[%s1377_s0 + $0x18] sm:$0xff]  ;;  %v844_v20 = vcombine.low %v14_v16, %v18_v17  ;;  %v845_v21 = vcombine.high %v14_v16, %v18_v17  ;;  %v22_v24 = vld [vmem:[%s1377_s0 + $0x50] sm:$0xff] }
  0x1c   :  { %952 = vmatpush3.bf16.msra.mxu0 %v1077_v26  ;;  %v19_v19 = vld [vmem:[%s1377_s0 + $0x38] sm:$0xff]  ;;  %v26_v25 = vld [vmem:[%s1377_s0 + $0x70] sm:$0xff] }
  0x1d   :  { %980 = vmatpush3.bf16.msra.mxu1 %v1078_v27  ;;  %953 = vmatprep.subr.bf16.mxu0 %v1079_v28  ;;  %v846_v22 = vcombine.low %v15_v18, %v19_v19  ;;  %v847_v23 = vcombine.high %v15_v18, %v19_v19  ;;  %v23_v26 = vld [vmem:[%s1377_s0 + $0x58] sm:$0xff]  ;;  %v853_v27 = vcombine.high %v22_v24, %v26_v25 }
  0x1e   :  { %981 = vmatprep.subr.bf16.mxu1 %v1080_v29  ;;  %v27_v28 = vld [vmem:[%s1377_s0 + $0x78] sm:$0xff] }
  0x1f   :  { %v855_v29 = vcombine.high %v23_v26, %v27_v28 }
  0x20   :  { %954 = vmatpush3.bf16.msra.mxu0 %v1081_v30  ;;  %v852_v30 = vcombine.low %v22_v24, %v26_v25 }
  0x21   :  { %982 = vmatpush3.bf16.msra.mxu1 %v1082_v31  ;;  %995 = vmatprep.subr.bf16.mxu0 %v1083_v40  ;;  %v854_v31 = vcombine.low %v23_v26, %v27_v28 }
  0x22   :  { %1023 = vmatprep.subr.bf16.mxu1 %v1084_v41 }
  0x23   :  { %653 = vmatmul.mubr.bf16.vlgmr.msra.gmra.mrb[0].mxu0 %v840_v35 }
  0x24   :  { %702 = vmatmul.mubr.bf16.vlgmr.msra.gmra.mrb[0].mxu1 %v842_v38  ;;  %996 = vmatpush3.bf16.msra.mxu0 %v1085_v42 }
  0x25   :  { %1024 = vmatpush3.bf16.msra.mxu1 %v1086_v43  ;;  %997 = vmatprep.subr.bf16.mxu0 %v1087_v44 }
  0x26   :  { %1025 = vmatprep.subr.bf16.mxu1 %v1088_v45  ;;  %660 = vmatprep.mubr.bf16.mxu0 %v849_v62 }
  0x27   :  { %709 = vmatprep.mubr.bf16.mxu1 %v851_v2 }
  0x28   :  { %998 = vmatpush3.bf16.msra.mxu0 %v1089_v46 }
  0x29   :  { %1026 = vmatpush3.bf16.msra.mxu1 %v1090_v47  ;;  %999 = vmatprep.subr.bf16.mxu0 %v1091_v48 }
  0x2a   :  { %1027 = vmatprep.subr.bf16.mxu1 %v1092_v49 }
  0x2b   :  { %661 = vmatmul.mubr.bf16.gmra.mrb[4].mxu0 %v848_v1 }
  0x2c   :  { %1000 = vmatpush3.bf16.msra.mxu0 %v1093_v50  ;;  %710 = vmatmul.mubr.bf16.gmra.mrb[4].mxu1 %v850_v4 }
  0x2d   :  { %1028 = vmatpush3.bf16.msra.mxu1 %v1094_v51  ;;  %1001 = vmatprep.subr.bf16.mxu0 %v1095_v52 }
  0x2e   :  { %1029 = vmatprep.subr.bf16.mxu1 %v1096_v53  ;;  %750 = vmatprep.mubr.bf16.mxu0 %v845_v21 }
  0x2f   :  { %799 = vmatprep.mubr.bf16.mxu1 %v847_v23 }
  0x30   :  { %1002 = vmatpush3.bf16.msra.mxu0 %v1097_v54 }
  0x31   :  { %1030 = vmatpush3.bf16.msra.mxu1 %v1098_v55  ;;  %1003 = vmatprep.subr.bf16.mxu0 %v1099_v56 }
  0x32   :  { %1031 = vmatprep.subr.bf16.mxu1 %v1100_v57 }
  0x34   :  { %1004 = vmatpush3.bf16.msra.mxu0 %v1101_v58 }
  0x35   :  { %1032 = vmatpush3.bf16.msra.mxu1 %v1102_v59  ;;  %1005 = vmatprep.subr.bf16.mxu0 %v1103_v3 }
  0x36   :  { %1033 = vmatprep.subr.bf16.mxu1 %v1104_v5 }
  0x38   :  { %1006 = vmatpush3.bf16.msra.mxu0 %v1105_v6 }
  0x39   :  { %1034 = vmatpush3.bf16.msra.mxu1 %v1106_v7  ;;  %1007 = vmatprep.subr.bf16.mxu0 %v1107_v8 }
  0x3a   :  { %1035 = vmatprep.subr.bf16.mxu1 %v1108_v9 }
  0x3c   :  { %1008 = vmatpush3.bf16.msra.mxu0 %v1109_v10 }
  0x3d   :  { %1036 = vmatpush3.bf16.msra.mxu1 %v1110_v11  ;;  %1009 = vmatprep.subr.bf16.mxu0 %v1111_v12 }
  0x3e   :  { %1037 = vmatprep.subr.bf16.mxu1 %v1112_v13 }
  0x40   :  { %1010 = vmatpush3.bf16.msra.mxu0 %v1113_v14 }
  0x41   :  { %1038 = vmatpush3.bf16.msra.mxu1 %v1114_v15 }
  0x43   :  { %751 = vmatmul.mubr.bf16.vlgmr.msra.gmra.mrb[8].mxu0 %v844_v20 }
  0x44   :  { %800 = vmatmul.mubr.bf16.vlgmr.msra.gmra.mrb[8].mxu1 %v846_v22  ;;  %758 = vmatprep.mubr.bf16.mxu0 %v853_v27 }
  0x45   :  { %807 = vmatprep.mubr.bf16.mxu1 %v855_v29 }
  0x4b   :  { %759 = vmatmul.mubr.bf16.gmra.mrb[12].mxu0 %v852_v30 }
  0x4c   :  { %808 = vmatmul.mubr.bf16.gmra.mrb[12].mxu1 %v854_v31 }
  0xf6   :  { %v955_v32 = vpop.f32.mrb[0].mxu0 }
  0xf7   :  { %v983_v33 = vpop.f32.mrb[0].mxu1  ;;  %v956_v34 = vpop.f32.mrb[1].mxu0 }
  0xf8   :  { %v957_v35 = vadd.f32 %v956_v34, %v955_v32  ;;  %v984_v36 = vpop.f32.mrb[1].mxu1  ;;  %v958_v37 = vpop.f32.mrb[2].mxu0 }
  0xf9   :  { %v985_v38 = vadd.f32 %v984_v36, %v983_v33  ;;  %v986_v39 = vpop.f32.mrb[2].mxu1  ;;  %v959_v40 = vpop.f32.mrb[3].mxu0 }
  0xfa   :  { %v960_v41 = vadd.f32 %v959_v40, %v958_v37  ;;  %v987_v42 = vpop.f32.mrb[3].mxu1 }
  0xfb   :  { %v704_v43 = vadd.f32 %v985_v38, %v957_v35  ;;  %v988_v44 = vadd.f32 %v987_v42, %v986_v39 }
  0xfd   :  { %v707_v45 = vadd.f32 %v988_v44, %v960_v41 }
  0xfe   :  { %v961_v46 = vpop.f32.mrb[4].mxu0 }
  0xff   :  { %v989_v47 = vpop.f32.mrb[4].mxu1  ;;  %v962_v48 = vpop.f32.mrb[5].mxu0 }
 0x100   :  { %v963_v49 = vadd.f32 %v962_v48, %v961_v46  ;;  %v990_v50 = vpop.f32.mrb[5].mxu1  ;;  %v964_v51 = vpop.f32.mrb[6].mxu0 }
 0x101   :  { %v991_v52 = vadd.f32 %v990_v50, %v989_v47  ;;  %v992_v53 = vpop.f32.mrb[6].mxu1  ;;  %v965_v54 = vpop.f32.mrb[7].mxu0 }
 0x102   :  { %v966_v55 = vadd.f32 %v965_v54, %v964_v51  ;;  %v993_v56 = vpop.f32.mrb[7].mxu1 }
 0x103   :  { %v712_v57 = vadd.f32 %v991_v52, %v963_v49  ;;  %v994_v58 = vadd.f32 %v993_v56, %v992_v53 }
 0x105   :  { %v715_v59 = vadd.f32 %v994_v58, %v966_v55 }
 0x116   :  { %v1011_v60 = vpop.f32.mrb[8].mxu0 }
 0x117   :  { %v1039_v61 = vpop.f32.mrb[8].mxu1  ;;  %v1012_v62 = vpop.f32.mrb[9].mxu0 }
 0x118   :  { %v1040_v63 = vpop.f32.mrb[9].mxu1  ;;  %v1013_v0 = vadd.f32 %v1012_v62, %v1011_v60  ;;  %v1014_v2 = vpop.f32.mrb[10].mxu0 }
 0x119   :  { %v1041_v1 = vadd.f32 %v1040_v63, %v1039_v61  ;;  %v1042_v3 = vpop.f32.mrb[10].mxu1  ;;  %v1015_v4 = vpop.f32.mrb[11].mxu0 }
 0x11a   :  { %v1043_v5 = vpop.f32.mrb[11].mxu1  ;;  %v753_v6 = vadd.f32 %v1013_v0, %v704_v43  ;;  %v1016_v7 = vadd.f32 %v1015_v4, %v1014_v2 }
 0x11b   :  { %v1044_v8 = vadd.f32 %v1043_v5, %v1042_v3 }
 0x11c   :  { %v802_v9 = vadd.f32 %v1041_v1, %v753_v6  ;;  %v756_v10 = vadd.f32 %v1016_v7, %v707_v45 }
 0x11e   :  { %v805_v11 = vadd.f32 %v1044_v8, %v756_v10  ;;  %v1017_v12 = vpop.f32.mrb[12].mxu0 }
 0x11f   :  { %v1045_v13 = vpop.f32.mrb[12].mxu1  ;;  %v1018_v14 = vpop.f32.mrb[13].mxu0 }
 0x120   :  { %v1046_v15 = vpop.f32.mrb[13].mxu1  ;;  %v931_v16 = vpack.c.bf16 %v805_v11, %v802_v9  ;;  %v1019_v17 = vadd.f32 %v1018_v14, %v1017_v12  ;;  %v1020_v19 = vpop.f32.mrb[14].mxu0 }
 0x121   :  { %v1047_v18 = vadd.f32 %v1046_v15, %v1045_v13  ;;  %v1048_v20 = vpop.f32.mrb[14].mxu1  ;;  %v1021_v21 = vpop.f32.mrb[15].mxu0 }
 0x122   :  { %v1049_v22 = vpop.f32.mrb[15].mxu1  ;;  %932 = vst [vmem:[%s1378_s2] sm:$0xff] %v931_v16   ;;  %v761_v23 = vadd.f32 %v1019_v17, %v712_v57  ;;  %v1022_v24 = vadd.f32 %v1021_v21, %v1020_v19 }
 0x123   :  { %v1050_v25 = vadd.f32 %v1049_v22, %v1048_v20 }
 0x124   :  { %v810_v26 = vadd.f32 %v1047_v18, %v761_v23  ;;  %v764_v27 = vadd.f32 %v1022_v24, %v715_v59 }
 0x126   :  { %v813_v28 = vadd.f32 %v1050_v25, %v764_v27 }
 0x128   :  { %v936_v29 = vpack.c.bf16 %v813_v28, %v810_v26 }
 0x12a   :  { %938 = vst [vmem:[%s1378_s2 + $0x8] sm:$0xff] %v936_v29  }

// kernel: autoenc_forward.9
= control target key start
LH: loop header
LB: loop body
LE: loop exit
PB: predicated region body
PF: predicated region fallthrough
CT: control target
= control target key end

     0   :  { %vm436_vm0 = vcmask 523264   ;;  %s1838_s1 = inlined_call_operand.vmem [shape: bf16[576,128], index: 1, kind: input, shape index: {}]   ;;  %s1839_s0 = inlined_call_operand.vmem [shape: bf16[64,576], index: 0, kind: input, shape index: {}]   ;;  %s1840_s2 = inlined_call_operand.vmem [shape: f32[128,128], index: 2, kind: input, shape index: {}]   ;;  %s1841_s3 = inlined_call_operand.vmem [shape: f32[1,128], index: 3, kind: input, shape index: {}]   ;;  %s1842_s4 = inlined_call_operand.vmem [shape: f32[1,128], index: 4, kind: input, shape index: {}]   ;;  %s1843_s5 = inlined_call_operand.vmem [shape: f32[1,128], index: 5, kind: input, shape index: {}]   ;;  %s1844_s6 = inlined_call_operand.vmem [shape: bf16[64,128], index: 6, kind: output, shape index: {}]  }
   0x1   :  { %v1424_v0 = vld [vmem:[%s1838_s1 + $0x40] sm:$0xff]   ;;  %v1428_v4 = vld [vmem:[%s1838_s1 + $0x48] sm:$0xff]   ;;  %v1432_v8 = vld [vmem:[%s1838_s1 + $0x50] sm:$0xff]  }
   0x2   :  { %v1425_v1 = vld [vmem:[%s1838_s1 + $0xc0] sm:$0xff]   ;;  %1104 = vmatprep.subr.bf16.mxu0 %v1424_v0  ;;  %v1429_v5 = vld [vmem:[%s1838_s1 + $0xc8] sm:$0xff]   ;;  %v1433_v9 = vld [vmem:[%s1838_s1 + $0xd0] sm:$0xff]  }
   0x3   :  { %v1426_v2 = vld [vmem:[%s1838_s1] sm:$0xff]   ;;  %1144 = vmatprep.subr.bf16.mxu1 %v1425_v1  ;;  %v1430_v6 = vld [vmem:[%s1838_s1 + $0x8] sm:$0xff]   ;;  %v1434_v10 = vld [vmem:[%s1838_s1 + $0x10] sm:$0xff]  }
   0x4   :  { %v1427_v3 = vld [vmem:[%s1838_s1 + $0x80] sm:$0xff]   ;;  %1105 = vmatpush3.bf16.msra.mxu0 %v1426_v2  ;;  %v1431_v7 = vld [vmem:[%s1838_s1 + $0x88] sm:$0xff]   ;;  %v1435_v11 = vld [vmem:[%s1838_s1 + $0x90] sm:$0xff]  }
   0x5   :  { %1145 = vmatpush3.bf16.msra.mxu1 %v1427_v3  ;;  %1106 = vmatprep.subr.bf16.mxu0 %v1428_v4  ;;  %v1436_v12 = vld [vmem:[%s1838_s1 + $0x58] sm:$0xff]   ;;  %v1440_v16 = vld [vmem:[%s1838_s1 + $0x60] sm:$0xff]   ;;  %v1444_v20 = vld [vmem:[%s1838_s1 + $0x68] sm:$0xff]  }
   0x6   :  { %1146 = vmatprep.subr.bf16.mxu1 %v1429_v5  ;;  %v1437_v13 = vld [vmem:[%s1838_s1 + $0xd8] sm:$0xff]   ;;  %v1441_v17 = vld [vmem:[%s1838_s1 + $0xe0] sm:$0xff]   ;;  %v1445_v21 = vld [vmem:[%s1838_s1 + $0xe8] sm:$0xff]  }
   0x7   :  { %v1438_v14 = vld [vmem:[%s1838_s1 + $0x18] sm:$0xff]   ;;  %v1442_v18 = vld [vmem:[%s1838_s1 + $0x20] sm:$0xff]   ;;  %v1446_v22 = vld [vmem:[%s1838_s1 + $0x28] sm:$0xff]  }
   0x8   :  { %1107 = vmatpush3.bf16.msra.mxu0 %v1430_v6  ;;  %v1439_v15 = vld [vmem:[%s1838_s1 + $0x98] sm:$0xff]   ;;  %v1443_v19 = vld [vmem:[%s1838_s1 + $0xa0] sm:$0xff]   ;;  %v1447_v23 = vld [vmem:[%s1838_s1 + $0xa8] sm:$0xff]  }
   0x9   :  { %1147 = vmatpush3.bf16.msra.mxu1 %v1431_v7  ;;  %1108 = vmatprep.subr.bf16.mxu0 %v1432_v8  ;;  %v1448_v24 = vld [vmem:[%s1838_s1 + $0x70] sm:$0xff]   ;;  %v1452_v28 = vld [vmem:[%s1838_s1 + $0x78] sm:$0xff]   ;;  %v1461_v35 = vld [vmem:[%s1839_s0 + $0xc] ss:$20 sps:$4 sm:$0xff]  }
   0xa   :  { %1148 = vmatprep.subr.bf16.mxu1 %v1433_v9  ;;  %v1449_v25 = vld [vmem:[%s1838_s1 + $0xf0] sm:$0xff]   ;;  %v1453_v29 = vld [vmem:[%s1838_s1 + $0xf8] sm:$0xff]   ;;  %v1462_v36 = vld [vmem:[%s1838_s1 + $0x100] sm:$0xff]   ;;  %546 = vmatprep.mubr.bf16.mxu1 %v1461_v35 }
   0xb   :  { %v1450_v26 = vld [vmem:[%s1838_s1 + $0x30] sm:$0xff]   ;;  %v1454_v30 = vld [vmem:[%s1838_s1 + $0x38] sm:$0xff]   ;;  %v1463_v37 = vld [vmem:[%s1839_s0 + $0x2c] ss:$20 sps:$4 sm:$0xff]  }
   0xc   :  { %1109 = vmatpush3.bf16.msra.mxu0 %v1434_v10  ;;  %v1451_v27 = vld [vmem:[%s1838_s1 + $0xb0] sm:$0xff]   ;;  %v1455_v31 = vld [vmem:[%s1838_s1 + $0xb8] sm:$0xff]   ;;  %v1469_v39 = vld [vmem:[%s1838_s1 + $0x108] sm:$0xff]  }
   0xd   :  { %1149 = vmatpush3.bf16.msra.mxu1 %v1435_v11  ;;  %1110 = vmatprep.subr.bf16.mxu0 %v1436_v12  ;;  %v1456_v32 = vld [vmem:[%s1839_s0] ss:$20 sps:$4 sm:$0xff]   ;;  %v1458_v33 = vld [vmem:[%s1839_s0 + $0x4] ss:$20 sps:$4 sm:$0xff]   ;;  %v1459_v34 = vld [vmem:[%s1839_s0 + $0x8] ss:$20 sps:$4 sm:$0xff]  }
   0xe   :  { %1150 = vmatprep.subr.bf16.mxu1 %v1437_v13  ;;  %481 = vmatprep.mubr.bf16.mxu0 %v1458_v33  ;;  %v1465_v38 = vld [vmem:[%s1839_s0 + $0x34] ss:$20 sps:$4 sm:$0xff]   ;;  %v1468_v41 = vld [vmem:[%s1839_s0 + $0x30] ss:$20 sps:$4 sm:$0xff]   ;;  %v1483_v45 = vld [vmem:[%s1838_s1 + $0x118] sm:$0xff]  }
   0xf   :  { %v1467_v40 = vld [vmem:[%s1839_s0 + $0x28] ss:$20 sps:$4 sm:$0xff]   ;;  %v1476_v44 = vld [vmem:[%s1838_s1 + $0x110] sm:$0xff]   ;;  %v1475_v47 = vld [vmem:[%s1839_s0 + $0x58] ss:$20 sps:$4 sm:$0xff]  }
  0x10   :  { %1111 = vmatpush3.bf16.msra.mxu0 %v1438_v14  ;;  %v1470_v42 = vld [vmem:[%s1839_s0 + $0x54] ss:$20 sps:$4 sm:$0xff]   ;;  %v1472_v43 = vld [vmem:[%s1839_s0 + $0x5c] ss:$20 sps:$4 sm:$0xff]   ;;  %v1479_v49 = vld [vmem:[%s1839_s0 + $0x84] ss:$20 sps:$4 sm:$0xff]  }
  0x11   :  { %1151 = vmatpush3.bf16.msra.mxu1 %v1439_v15  ;;  %1112 = vmatprep.subr.bf16.mxu0 %v1440_v16  ;;  %v1474_v46 = vld [vmem:[%s1839_s0 + $0x50] ss:$20 sps:$4 sm:$0xff]   ;;  %v1481_v50 = vld [vmem:[%s1839_s0 + $0x78] ss:$20 sps:$4 sm:$0xff]   ;;  %v1482_v51 = vld [vmem:[%s1839_s0 + $0x80] ss:$20 sps:$4 sm:$0xff]  }
  0x12   :  { %1152 = vmatprep.subr.bf16.mxu1 %v1441_v17  ;;  %v1477_v48 = vld [vmem:[%s1839_s0 + $0x7c] ss:$20 sps:$4 sm:$0xff]   ;;  %v1485_v53 = vld [vmem:[%s1839_s0 + $0x38] ss:$20 sps:$4 sm:$0xff]   ;;  %v1486_v54 = vld [vmem:[%s1839_s0 + $0x60] ss:$20 sps:$4 sm:$0xff]  }
  0x13   :  { %v1484_v52 = vld [vmem:[%s1839_s0 + $0x10] ss:$20 sps:$4 sm:$0xff]   ;;  %v1487_v55 = vld [vmem:[%s1839_s0 + $0x88] ss:$20 sps:$4 sm:$0xff]  }
  0x14   :  { %1113 = vmatpush3.bf16.msra.mxu0 %v1442_v18  ;;  %v644_v56 = vld [vmem:[%s1840_s2] sm:$0xff]  ;;  %v645_v57 = vld [vmem:[%s1840_s2 + $0x8] sm:$0xff]  ;;  %v646_v59 = vld [vmem:[%s1840_s2 + $0x10] sm:$0xff] }
  0x15   :  { %1153 = vmatpush3.bf16.msra.mxu1 %v1443_v19  ;;  %1114 = vmatprep.subr.bf16.mxu0 %v1444_v20  ;;  %v1699_v58 = vpack.c.bf16 %v645_v57, %v644_v56  ;;  %v647_v60 = vld [vmem:[%s1840_s2 + $0x18] sm:$0xff]  ;;  %v648_v62 = vld [vmem:[%s1840_s2 + $0x20] sm:$0xff]  ;;  %v649_v63 = vld [vmem:[%s1840_s2 + $0x28] sm:$0xff] }
  0x16   :  { %1154 = vmatprep.subr.bf16.mxu1 %v1445_v21  ;;  %v1711_v61 = vpack.c.bf16 %v647_v60, %v646_v59  ;;  %v1723_v0 = vpack.c.bf16 %v649_v63, %v648_v62  ;;  %v650_v1 = vld [vmem:[%s1840_s2 + $0x30] sm:$0xff]  ;;  %v651_v2 = vld [vmem:[%s1840_s2 + $0x38] sm:$0xff]  ;;  %v652_v4 = vld [vmem:[%s1840_s2 + $0x40] sm:$0xff] }
  0x17   :  { %v1735_v3 = vpack.c.bf16 %v651_v2, %v650_v1  ;;  %v653_v5 = vld [vmem:[%s1840_s2 + $0x48] sm:$0xff]  ;;  %v654_v7 = vld [vmem:[%s1840_s2 + $0x50] sm:$0xff]  ;;  %v655_v8 = vld [vmem:[%s1840_s2 + $0x58] sm:$0xff] }
  0x18   :  { %1115 = vmatpush3.bf16.msra.mxu0 %v1446_v22  ;;  %v1747_v6 = vpack.c.bf16 %v653_v5, %v652_v4  ;;  %v1759_v9 = vpack.c.bf16 %v655_v8, %v654_v7  ;;  %v656_v10 = vld [vmem:[%s1840_s2 + $0x60] sm:$0xff]  ;;  %v657_v11 = vld [vmem:[%s1840_s2 + $0x68] sm:$0xff]  ;;  %v658_v13 = vld [vmem:[%s1840_s2 + $0x70] sm:$0xff] }
  0x19   :  { %1155 = vmatpush3.bf16.msra.mxu1 %v1447_v23  ;;  %1116 = vmatprep.subr.bf16.mxu0 %v1448_v24  ;;  %v1771_v12 = vpack.c.bf16 %v657_v11, %v656_v10  ;;  %v659_v14 = vld [vmem:[%s1840_s2 + $0x78] sm:$0xff] }
  0x1a   :  { %1156 = vmatprep.subr.bf16.mxu1 %v1449_v25  ;;  %v1783_v15 = vpack.c.bf16 %v659_v14, %v658_v13 }
  0x1c   :  { %1117 = vmatpush3.bf16.msra.mxu0 %v1450_v26 }
  0x1d   :  { %1157 = vmatpush3.bf16.msra.mxu1 %v1451_v27  ;;  %1118 = vmatprep.subr.bf16.mxu0 %v1452_v28 }
  0x1e   :  { %1158 = vmatprep.subr.bf16.mxu1 %v1453_v29 }
  0x20   :  { %1119 = vmatpush3.bf16.msra.mxu0 %v1454_v30 }
  0x21   :  { %1159 = vmatpush3.bf16.msra.mxu1 %v1455_v31  ;;  %1240 = vmatprep.subr.bf16.mxu0 %v1462_v36 }
  0x22   :  { %1345 = vmatprep.subr.bf16.mxu1 %v1699_v58 }
  0x23   :  { %482 = vmatmul.mubr.bf16.vlgmr.msra.gmra.mrb[0].mxu0 %v1456_v32 }
  0x24   :  { %547 = vmatmul.mubr.bf16.vlgmr.msra.gmra.mrb[0].mxu1 %v1459_v34  ;;  %1241 = vmatpush3.bf16.msra.mxu0 %v1462_v36 }
  0x25   :  { %489 = vmatprep.mubr.bf16.mxu0 %v1463_v37  ;;  %554 = vmatprep.mubr.bf16.mxu1 %v1465_v38 }
  0x26   :  { %1242 = vmatprep.subr.bf16.mxu0 %v1469_v39  ;;  %1347 = vmatpush3.bf16.msra.mxu1 %v1699_v58 }
  0x27   :  { %1349 = vmatprep.subr.bf16.mxu1 %v1711_v61 }
  0x28   :  { %1243 = vmatpush3.bf16.msra.mxu0 %v1469_v39 }
  0x29   :  { %1244 = vmatprep.subr.bf16.mxu0 %v1476_v44 }
  0x2a   :  { %1351 = vmatpush3.bf16.msra.mxu1 %v1711_v61 }
  0x2b   :  { %490 = vmatmul.mubr.bf16.gmra.mrb[4].mxu0 %v1467_v40  ;;  %1353 = vmatprep.subr.bf16.mxu1 %v1723_v0 }
  0x2c   :  { %555 = vmatmul.mubr.bf16.gmra.mrb[4].mxu1 %v1468_v41  ;;  %497 = vmatprep.mubr.bf16.mxu0 %v1470_v42 }
  0x2d   :  { %562 = vmatprep.mubr.bf16.mxu1 %v1472_v43  ;;  %1245 = vmatpush3.bf16.msra.mxu0 %v1476_v44 }
  0x2e   :  { %1246 = vmatprep.subr.bf16.mxu0 %v1483_v45  ;;  %1355 = vmatpush3.bf16.msra.mxu1 %v1723_v0 }
  0x2f   :  { %1357 = vmatprep.subr.bf16.mxu1 %v1735_v3 }
  0x31   :  { %1247 = vmatpush3.bf16.msra.mxu0 %v1483_v45 }
  0x32   :  { %1377 = vmatprep.subr.bf16.mxu0 %v1699_v58  ;;  %1359 = vmatpush3.bf16.msra.mxu1 %v1735_v3 }
  0x33   :  { %498 = vmatmul.mubr.bf16.gmra.mrb[8].mxu0 %v1474_v46  ;;  %1361 = vmatprep.subr.bf16.mxu1 %v1747_v6 }
  0x34   :  { %563 = vmatmul.mubr.bf16.gmra.mrb[8].mxu1 %v1475_v47  ;;  %505 = vmatprep.mubr.bf16.mxu0 %v1477_v48 }
  0x35   :  { %570 = vmatprep.mubr.bf16.mxu1 %v1479_v49 }
  0x36   :  { %1363 = vmatpush3.bf16.msra.mxu1 %v1747_v6 }
  0x37   :  { %1365 = vmatprep.subr.bf16.mxu1 %v1759_v9 }
  0x3a   :  { %1367 = vmatpush3.bf16.msra.mxu1 %v1759_v9 }
  0x3b   :  { %506 = vmatmul.mubr.bf16.gmra.mrb[12].mxu0 %v1481_v50  ;;  %1369 = vmatprep.subr.bf16.mxu1 %v1771_v12 }
  0x3c   :  { %571 = vmatmul.mubr.bf16.gmra.mrb[12].mxu1 %v1482_v51  ;;  %1248 = vmatprep.mubr.msk.bf16.mxu0 %vm436_vm0, %v1484_v52 }
  0x3e   :  { %1371 = vmatpush3.bf16.msra.mxu1 %v1771_v12 }
  0x3f   :  { %1373 = vmatprep.subr.bf16.mxu1 %v1783_v15 }
  0x42   :  { %1375 = vmatpush3.bf16.msra.mxu1 %v1783_v15 }
  0x43   :  { %1249 = vmatmul.mubr.msk.bf16.vlgmr.msra.gmra.mrb[16].mxu0 %vm436_vm0, %v1485_v53  ;;  %1408 = vmatprep.subr.bf16.mxu1 %v1699_v58 }
  0x44   :  { %1252 = vmatprep.mubr.msk.bf16.mxu0 %vm436_vm0, %v1486_v54  ;;  %1379 = vmatpush3.bf16.msra.mxu0 %v1699_v58 }
  0x45   :  { %1381 = vmatprep.subr.bf16.mxu0 %v1711_v61 }
  0x48   :  { %1383 = vmatpush3.bf16.msra.mxu0 %v1711_v61 }
  0x49   :  { %1385 = vmatprep.subr.bf16.mxu0 %v1723_v0 }
  0x4b   :  { %1253 = vmatmul.mubr.msk.bf16.gmra.mrb[20].mxu0 %vm436_vm0, %v1487_v55 }
  0x4c   :  { %1387 = vmatpush3.bf16.msra.mxu0 %v1723_v0 }
  0x4d   :  { %1389 = vmatprep.subr.bf16.mxu0 %v1735_v3 }
  0x50   :  { %1391 = vmatpush3.bf16.msra.mxu0 %v1735_v3 }
  0x51   :  { %1393 = vmatprep.subr.bf16.mxu0 %v1747_v6 }
  0x54   :  { %1395 = vmatpush3.bf16.msra.mxu0 %v1747_v6 }
  0x55   :  { %1397 = vmatprep.subr.bf16.mxu0 %v1759_v9 }
  0x58   :  { %1399 = vmatpush3.bf16.msra.mxu0 %v1759_v9 }
  0x59   :  { %1401 = vmatprep.subr.bf16.mxu0 %v1771_v12 }
  0x5c   :  { %1403 = vmatpush3.bf16.msra.mxu0 %v1771_v12 }
  0x5d   :  { %1405 = vmatprep.subr.bf16.mxu0 %v1783_v15 }
  0x60   :  { %1407 = vmatpush3.bf16.msra.mxu0 %v1783_v15 }
  0xf6   :  { %v1120_v16 = vpop.f32.mrb[0].mxu0 }
  0xf7   :  { %v1160_v17 = vpop.f32.mrb[0].mxu1  ;;  %v1121_v18 = vpop.f32.mrb[1].mxu0 }
  0xf8   :  { %v1122_v19 = vadd.f32 %v1121_v18, %v1120_v16  ;;  %v1161_v20 = vpop.f32.mrb[1].mxu1  ;;  %v1123_v21 = vpop.f32.mrb[2].mxu0 }
  0xf9   :  { %v1162_v22 = vadd.f32 %v1161_v20, %v1160_v17  ;;  %v1163_v23 = vpop.f32.mrb[2].mxu1  ;;  %v1124_v24 = vpop.f32.mrb[3].mxu0 }
  0xfa   :  { %v1125_v25 = vadd.f32 %v1124_v24, %v1123_v21  ;;  %v1164_v26 = vpop.f32.mrb[3].mxu1 }
  0xfb   :  { %v1165_v27 = vadd.f32 %v1164_v26, %v1163_v23  ;;  %v549_v28 = vadd.f32 %v1162_v22, %v1122_v19 }
  0xfd   :  { %v552_v29 = vadd.f32 %v1165_v27, %v1125_v25 }
  0xfe   :  { %v1126_v30 = vpop.f32.mrb[4].mxu0 }
  0xff   :  { %v1166_v31 = vpop.f32.mrb[4].mxu1  ;;  %v1127_v32 = vpop.f32.mrb[5].mxu0 }
 0x100   :  { %v1128_v33 = vadd.f32 %v1127_v32, %v1126_v30  ;;  %v1167_v34 = vpop.f32.mrb[5].mxu1  ;;  %v1129_v35 = vpop.f32.mrb[6].mxu0 }
 0x101   :  { %v1168_v36 = vadd.f32 %v1167_v34, %v1166_v31  ;;  %v1169_v37 = vpop.f32.mrb[6].mxu1  ;;  %v1130_v38 = vpop.f32.mrb[7].mxu0 }
 0x102   :  { %v1131_v39 = vadd.f32 %v1130_v38, %v1129_v35  ;;  %v1170_v40 = vpop.f32.mrb[7].mxu1 }
 0x103   :  { %v1171_v41 = vadd.f32 %v1170_v40, %v1169_v37  ;;  %v557_v42 = vadd.f32 %v1168_v36, %v1128_v33 }
 0x105   :  { %v560_v43 = vadd.f32 %v1171_v41, %v1131_v39 }
 0x106   :  { %v1132_v44 = vpop.f32.mrb[8].mxu0 }
 0x107   :  { %v1172_v45 = vpop.f32.mrb[8].mxu1  ;;  %v1133_v46 = vpop.f32.mrb[9].mxu0 }
 0x108   :  { %v1134_v47 = vadd.f32 %v1133_v46, %v1132_v44  ;;  %v1173_v48 = vpop.f32.mrb[9].mxu1  ;;  %v1135_v49 = vpop.f32.mrb[10].mxu0  ;;  %v660_v46 = vld [vmem:[%s1841_s3] sm:$0x1] }
 0x109   :  { %v1174_v50 = vadd.f32 %v1173_v48, %v1172_v45  ;;  %v1175_v51 = vpop.f32.mrb[10].mxu1  ;;  %v1136_v52 = vpop.f32.mrb[11].mxu0 }
 0x10a   :  { %v1137_v53 = vadd.f32 %v1136_v52, %v1135_v49  ;;  %v1176_v54 = vpop.f32.mrb[11].mxu1 }
 0x10b   :  { %v1177_v55 = vadd.f32 %v1176_v54, %v1175_v51  ;;  %v565_v56 = vadd.f32 %v1174_v50, %v1134_v47 }
 0x10d   :  { %v568_v57 = vadd.f32 %v1177_v55, %v1137_v53 }
 0x10e   :  { %v1138_v59 = vpop.f32.mrb[12].mxu0 }
 0x10f   :  { %v1178_v60 = vpop.f32.mrb[12].mxu1  ;;  %v1139_v62 = vpop.f32.mrb[13].mxu0 }
 0x110   :  { %v1140_v63 = vadd.f32 %v1139_v62, %v1138_v59  ;;  %v1179_v1 = vpop.f32.mrb[13].mxu1  ;;  %v1141_v2 = vpop.f32.mrb[14].mxu0 }
 0x111   :  { %v1180_v4 = vadd.f32 %v1179_v1, %v1178_v60  ;;  %v1181_v5 = vpop.f32.mrb[14].mxu1  ;;  %v1142_v7 = vpop.f32.mrb[15].mxu0 }
 0x112   :  { %v1143_v8 = vadd.f32 %v1142_v7, %v1141_v2  ;;  %v1182_v10 = vpop.f32.mrb[15].mxu1 }
 0x113   :  { %v1183_v11 = vadd.f32 %v1182_v10, %v1181_v5  ;;  %v573_v13 = vadd.f32 %v1180_v4, %v1140_v63 }
 0x115   :  { %v576_v14 = vadd.f32 %v1183_v11, %v1143_v8 }
 0x116   :  { %v1250_v16 = vpop.f32.mrb[16].mxu0 }
 0x117   :  { %v1790_v17 = vadd.f32 %v1250_v16, %v557_v42  ;;  %v613_v18 = vpop.f32.mrb[17].mxu0  ;;  %v780_v42 = vlaneseq }
 0x118   :  { %v1792_v19 = vadd.f32 %v613_v18, %v549_v28  ;;  %v1251_v20 = vpop.f32.mrb[18].mxu0 }
 0x119   :  { %v1794_v21 = vadd.f32 %v1251_v20, %v560_v43  ;;  %v616_v22 = vpop.f32.mrb[19].mxu0  ;;  %v781_v44 = vshrl.u32 %v780_v42, 7 }
 0x11a   :  { %v617_v23 = vadd.f32 %v616_v22, %v552_v29  ;;  %1288 = vmatprep.mubr.f32.mxu1 %v1792_v19 }
 0x11b   :  { %v782_v48 = vsub.s32 0, %v781_v44 }
 0x11c   :  { %1289 = vmatmul.mubr.f32.vlgmr.msra.gmra.mrb[16].mxu1 %v617_v23 }
 0x11d   :  { %1291 = vmatprep.mubr.f32.mxu1 %v1790_v17  ;;  %1416 = vmatpush3.bf16.msra.mxu1 %v1699_v58 }
 0x11e   :  { %v1254_v24 = vpop.f32.mrb[20].mxu0  ;;  %1409 = vmatprep.subr.bf16.mxu1 %v1711_v61 }
 0x11f   :  { %v638_v25 = vadd.f32 %v1254_v24, %v573_v13  ;;  %v629_v26 = vpop.f32.mrb[21].mxu0 }
 0x120   :  { %v630_v27 = vadd.f32 %v629_v26, %v565_v56  ;;  %v1255_v28 = vpop.f32.mrb[22].mxu0  ;;  %1292 = vmatmul.mubr.f32.gmra.mrb[18].mxu1 %v1794_v21 }
 0x121   :  { %v641_v30 = vadd.f32 %v1255_v28, %v576_v14  ;;  %v632_v31 = vpop.f32.mrb[23].mxu0  ;;  %1417 = vmatpush3.bf16.msra.mxu1 %v1711_v61 }
 0x122   :  { %v633_v29 = vadd.f32 %v632_v31, %v568_v57  ;;  %1294 = vmatprep.mubr.f32.mxu1 %v630_v27  ;;  %1410 = vmatprep.subr.bf16.mxu1 %v1723_v0 }
 0x124   :  { %1295 = vmatmul.mubr.f32.gmra.mrb[20].mxu1 %v633_v29 }
 0x125   :  { %1297 = vmatprep.mubr.f32.mxu1 %v638_v25  ;;  %1418 = vmatpush3.bf16.msra.mxu1 %v1723_v0 }
 0x126   :  { %1411 = vmatprep.subr.bf16.mxu1 %v1735_v3 }
 0x128   :  { %1298 = vmatmul.mubr.f32.gmra.mrb[22].mxu1 %v641_v30 }
 0x129   :  { %1419 = vmatpush3.bf16.msra.mxu1 %v1735_v3 }
 0x12a   :  { %1412 = vmatprep.subr.bf16.mxu1 %v1747_v6 }
 0x12d   :  { %1420 = vmatpush3.bf16.msra.mxu1 %v1747_v6 }
 0x12e   :  { %1413 = vmatprep.subr.bf16.mxu1 %v1759_v9 }
 0x131   :  { %1421 = vmatpush3.bf16.msra.mxu1 %v1759_v9 }
 0x132   :  { %1414 = vmatprep.subr.bf16.mxu1 %v1771_v12 }
 0x135   :  { %1422 = vmatpush3.bf16.msra.mxu1 %v1771_v12 }
 0x136   :  { %1415 = vmatprep.subr.bf16.mxu1 %v1783_v15 }
 0x139   :  { %1423 = vmatpush3.bf16.msra.mxu1 %v1783_v15 }
 0x1ef   :  { %v1290_v58 = vpop.f32.mrb[16].mxu1 }
 0x1f0   :  { %v727_v61 = vpop.f32.mrb[17].mxu1 }
 0x1f1   :  { %v766_v0 = vadd.f32 %v1290_v58, %v727_v61 }
 0x1f3   :  { %v1293_v3 = vpop.f32.mrb[18].mxu1 }
 0x1f4   :  { %v737_v32 = vpop.f32.mrb[19].mxu1 }
 0x1f5   :  { %v767_v33 = vadd.f32 %v766_v0, %v737_v32  ;;  %v919_v0 = vld [vmem:[%s1842_s4] sm:$0x1] }
 0x1f7   :  { %v1296_v34 = vpop.f32.mrb[20].mxu1  ;;  %v768_v6 = vadd.f32 %v1293_v3, %v767_v33 }
 0x1f8   :  { %v747_v35 = vpop.f32.mrb[21].mxu1 }
 0x1f9   :  { %v769_v36 = vadd.f32 %v768_v6, %v747_v35 }
 0x1fb   :  { %v1299_v37 = vpop.f32.mrb[22].mxu1  ;;  %v770_v9 = vadd.f32 %v1296_v34, %v769_v36  ;;  %v1064_v34 = vld [vmem:[%s1843_s5] ss:$0 sm:$0xff] }
 0x1fc   :  { %v757_v38 = vpop.f32.mrb[23].mxu1 }
 0x1fd   :  { %v771_v39 = vadd.f32 %v770_v9, %v757_v38 }
 0x1ff   :  { %v772_v40 = vadd.f32 %v1299_v37, %v771_v39 }
 0x201   :  { %v773_v12 = vrot.slane %v772_v40, 4 }
 0x203   :  { %v774_v41 = vadd.f32 %v773_v12, %v772_v40 }
 0x205   :  { %v775_v43 = vrot.slane %v774_v41, 2 }
 0x207   :  { %v776_v15 = vadd.f32 %v775_v43, %v774_v41 }
 0x209   :  { %v777_v45 = vrot.slane %v776_v15, 1 }
 0x20b   :  { %v778_v47 = vadd.f32 %v777_v45, %v776_v15 }
 0x20d   :  { %v779_v49 = vmul.f32 %v778_v47, %v660_v46 }
 0x20f   :  { %v783_v50 = vrot.slane %v779_v49, %v782_v48 }
 0x211   :  { %v784_v51 = vsub.f32 %v1792_v19, %v783_v50  ;;  %v788_v52 = vsub.f32 %v630_v27, %v783_v50  ;;  %v785_v53 = vsub.f32 %v617_v23, %v783_v50  ;;  %v789_v54 = vsub.f32 %v633_v29, %v783_v50 }
 0x212   :  { %v786_v55 = vsub.f32 %v1790_v17, %v783_v50  ;;  %v790_v56 = vsub.f32 %v638_v25, %v783_v50  ;;  %v787_v63 = vsub.f32 %v1794_v21, %v783_v50  ;;  %v791_v1 = vsub.f32 %v641_v30, %v783_v50 }
 0x213   :  { %v792_v57 = vmul.f32 %v784_v51, %v784_v51  ;;  %v796_v59 = vmul.f32 %v788_v52, %v788_v52  ;;  %v793_v60 = vmul.f32 %v785_v53, %v785_v53  ;;  %v797_v62 = vmul.f32 %v789_v54, %v789_v54 }
 0x214   :  { %v794_v2 = vmul.f32 %v786_v55, %v786_v55  ;;  %v798_v4 = vmul.f32 %v790_v56, %v790_v56  ;;  %v795_v5 = vmul.f32 %v787_v63, %v787_v63  ;;  %v799_v7 = vmul.f32 %v791_v1, %v791_v1 }
 0x215   :  { %1332 = vmatprep.mubr.f32.mxu0 %v792_v57  ;;  %1338 = vmatprep.mubr.f32.mxu1 %v796_v59 }
 0x216   :  { %1333 = vmatmul.mubr.f32.vlgmr.msra.gmra.mrb[24].mxu0 %v793_v60  ;;  %1339 = vmatmul.mubr.f32.vlgmr.msra.gmra.mrb[24].mxu1 %v797_v62 }
 0x217   :  { %1335 = vmatprep.mubr.f32.mxu0 %v794_v2  ;;  %1341 = vmatprep.mubr.f32.mxu1 %v798_v4 }
 0x21a   :  { %1336 = vmatmul.mubr.f32.gmra.mrb[26].mxu0 %v795_v5  ;;  %1342 = vmatmul.mubr.f32.gmra.mrb[26].mxu1 %v799_v7 }
 0x2e9   :  { %v1334_v8 = vpop.f32.mrb[24].mxu0  ;;  %v1340_v10 = vpop.f32.mrb[24].mxu1 }
 0x2ea   :  { %v866_v11 = vpop.f32.mrb[25].mxu0  ;;  %v886_v13 = vpop.f32.mrb[25].mxu1 }
 0x2eb   :  { %v905_v14 = vadd.f32 %v1334_v8, %v866_v11 }
 0x2ed   :  { %v1337_v16 = vpop.f32.mrb[26].mxu0  ;;  %v1343_v17 = vpop.f32.mrb[26].mxu1 }
 0x2ee   :  { %v876_v18 = vpop.f32.mrb[27].mxu0  ;;  %v896_v19 = vpop.f32.mrb[27].mxu1 }
 0x2ef   :  { %v906_v20 = vadd.f32 %v905_v14, %v876_v18 }
 0x2f1   :  { %v907_v21 = vadd.f32 %v1337_v16, %v906_v20 }
 0x2f3   :  { %v908_v22 = vadd.f32 %v907_v21, %v886_v13 }
 0x2f5   :  { %v909_v23 = vadd.f32 %v1340_v10, %v908_v22 }
 0x2f7   :  { %v910_v24 = vadd.f32 %v909_v23, %v896_v19 }
 0x2f9   :  { %v911_v25 = vadd.f32 %v1343_v17, %v910_v24 }
 0x2fb   :  { %v912_v26 = vrot.slane %v911_v25, 4 }
 0x2fd   :  { %v913_v27 = vadd.f32 %v912_v26, %v911_v25 }
 0x2ff   :  { %v914_v28 = vrot.slane %v913_v27, 2 }
 0x301   :  { %v915_v30 = vadd.f32 %v914_v28, %v913_v27 }
 0x303   :  { %v916_v31 = vrot.slane %v915_v30, 1 }
 0x305   :  { %v917_v29 = vadd.f32 %v916_v31, %v915_v30 }
 0x307   :  { %v918_v58 = vmul.f32 %v917_v29, %v660_v46 }
 0x309   :  { %v920_v61 = vadd.f32 1e-05, %v918_v58 }
 0x30b   :  { %1488 = vrsqrt.f32 %v920_v61 }
 0x315   :  { %v1489_v3 = vpop.eup %1488 }
 0x316   :  { %v922_v32 = vmul.f32 %v1489_v3, %v919_v0 }
 0x318   :  { %v927_v33 = vrot.slane %v922_v32, %v782_v48 }
 0x31a   :  { %v929_v6 = vmul.f32 %v927_v33, %v784_v51  ;;  %v930_v35 = vmul.f32 %v927_v33, %v785_v53  ;;  %v931_v36 = vmul.f32 %v927_v33, %v786_v55  ;;  %v932_v37 = vmul.f32 %v927_v33, %v787_v63 }
 0x31b   :  { %v933_v9 = vmul.f32 %v927_v33, %v788_v52  ;;  %v934_v38 = vmul.f32 %v927_v33, %v789_v54  ;;  %v935_v39 = vmul.f32 %v927_v33, %v790_v56  ;;  %v936_v40 = vmul.f32 %v927_v33, %v791_v1 }
 0x31c   :  { %v944_v12 = vadd.f32 %v1064_v34, %v929_v6  ;;  %v945_v41 = vadd.f32 %v1064_v34, %v930_v35  ;;  %v946_v42 = vadd.f32 %v1064_v34, %v931_v36  ;;  %v947_v43 = vadd.f32 %v1064_v34, %v932_v37 }
 0x31d   :  { %v948_v15 = vadd.f32 %v1064_v34, %v933_v9  ;;  %v949_v44 = vadd.f32 %v1064_v34, %v934_v38  ;;  %v950_v45 = vadd.f32 %v1064_v34, %v935_v39  ;;  %v951_v46 = vadd.f32 %v1064_v34, %v936_v40 }
 0x31e   :  { %v952_v47 = vmax.f32 %v944_v12, 0.0  ;;  %v953_v48 = vmax.f32 %v945_v41, 0.0  ;;  %v954_v49 = vmax.f32 %v946_v42, 0.0  ;;  %v955_v50 = vmax.f32 %v947_v43, 0.0 }
 0x31f   :  { %v956_v51 = vmax.f32 %v948_v15, 0.0  ;;  %v957_v53 = vmax.f32 %v949_v44, 0.0  ;;  %v958_v55 = vmax.f32 %v950_v45, 0.0  ;;  %v959_v57 = vmax.f32 %v951_v46, 0.0 }
 0x320   :  { %v1084_v52 = vpack.c.bf16 %v953_v48, %v952_v47  ;;  %v1089_v54 = vpack.c.bf16 %v955_v50, %v954_v49 }
 0x321   :  { %v1094_v56 = vpack.c.bf16 %v957_v53, %v956_v51  ;;  %v1099_v59 = vpack.c.bf16 %v959_v57, %v958_v55 }
 0x322   :  { %1085 = vst [vmem:[%s1844_s6] sm:$0xff] %v1084_v52   ;;  %1101 = vst [vmem:[%s1844_s6 + $0x8] sm:$0xff] %v1089_v54  }
 0x323   :  { %1102 = vst [vmem:[%s1844_s6 + $0x10] sm:$0xff] %v1094_v56   ;;  %1103 = vst [vmem:[%s1844_s6 + $0x18] sm:$0xff] %v1099_v59  }

// kernel: autoenc_forward.10
= control target key start
LH: loop header
LB: loop body
LE: loop exit
PB: predicated region body
PF: predicated region fallthrough
CT: control target
= control target key end

     0   :  { %vm560_vm0 = vcmask 523264   ;;  %s2700_s1 = inlined_call_operand.vmem [shape: bf16[576,128], index: 1, kind: input, shape index: {}]   ;;  %s2701_s0 = inlined_call_operand.vmem [shape: bf16[128,576], index: 0, kind: input, shape index: {}]   ;;  %s2702_s2 = inlined_call_operand.vmem [shape: f32[128,128], index: 2, kind: input, shape index: {}]   ;;  %s2703_s3 = inlined_call_operand.vmem [shape: f32[1,128], index: 3, kind: input, shape index: {}]   ;;  %s2704_s4 = inlined_call_operand.vmem [shape: f32[1,128], index: 4, kind: input, shape index: {}]   ;;  %s2705_s5 = inlined_call_operand.vmem [shape: f32[1,128], index: 5, kind: input, shape index: {}]   ;;  %s2706_s6 = inlined_call_operand.vmem [shape: bf16[128,128], index: 6, kind: output, shape index: {}]  }
   0x1   :  { %v1996_v0 = vld [vmem:[%s2700_s1 + $0x40] sm:$0xff]   ;;  %v2000_v4 = vld [vmem:[%s2700_s1 + $0x48] sm:$0xff]   ;;  %v2004_v8 = vld [vmem:[%s2700_s1 + $0x50] sm:$0xff]  }
   0x2   :  { %v1997_v1 = vld [vmem:[%s2700_s1 + $0xc0] sm:$0xff]   ;;  %1576 = vmatprep.subr.bf16.mxu0 %v1996_v0  ;;  %v2001_v5 = vld [vmem:[%s2700_s1 + $0xc8] sm:$0xff]   ;;  %v2005_v9 = vld [vmem:[%s2700_s1 + $0xd0] sm:$0xff]  }
   0x3   :  { %v1998_v2 = vld [vmem:[%s2700_s1] sm:$0xff]   ;;  %1640 = vmatprep.subr.bf16.mxu1 %v1997_v1  ;;  %v2002_v6 = vld [vmem:[%s2700_s1 + $0x8] sm:$0xff]   ;;  %v2006_v10 = vld [vmem:[%s2700_s1 + $0x10] sm:$0xff]  }
   0x4   :  { %v1999_v3 = vld [vmem:[%s2700_s1 + $0x80] sm:$0xff]   ;;  %1577 = vmatpush3.bf16.msra.mxu0 %v1998_v2  ;;  %v2003_v7 = vld [vmem:[%s2700_s1 + $0x88] sm:$0xff]   ;;  %v2007_v11 = vld [vmem:[%s2700_s1 + $0x90] sm:$0xff]  }
   0x5   :  { %1641 = vmatpush3.bf16.msra.mxu1 %v1999_v3  ;;  %1578 = vmatprep.subr.bf16.mxu0 %v2000_v4  ;;  %v2008_v12 = vld [vmem:[%s2700_s1 + $0x58] sm:$0xff]   ;;  %v2012_v16 = vld [vmem:[%s2700_s1 + $0x60] sm:$0xff]   ;;  %v2016_v20 = vld [vmem:[%s2700_s1 + $0x68] sm:$0xff]  }
   0x6   :  { %1642 = vmatprep.subr.bf16.mxu1 %v2001_v5  ;;  %v2009_v13 = vld [vmem:[%s2700_s1 + $0xd8] sm:$0xff]   ;;  %v2013_v17 = vld [vmem:[%s2700_s1 + $0xe0] sm:$0xff]   ;;  %v2017_v21 = vld [vmem:[%s2700_s1 + $0xe8] sm:$0xff]  }
   0x7   :  { %v2010_v14 = vld [vmem:[%s2700_s1 + $0x18] sm:$0xff]   ;;  %v2014_v18 = vld [vmem:[%s2700_s1 + $0x20] sm:$0xff]   ;;  %v2018_v22 = vld [vmem:[%s2700_s1 + $0x28] sm:$0xff]  }
   0x8   :  { %1579 = vmatpush3.bf16.msra.mxu0 %v2002_v6  ;;  %v2011_v15 = vld [vmem:[%s2700_s1 + $0x98] sm:$0xff]   ;;  %v2015_v19 = vld [vmem:[%s2700_s1 + $0xa0] sm:$0xff]   ;;  %v2019_v23 = vld [vmem:[%s2700_s1 + $0xa8] sm:$0xff]  }
   0x9   :  { %1643 = vmatpush3.bf16.msra.mxu1 %v2003_v7  ;;  %1580 = vmatprep.subr.bf16.mxu0 %v2004_v8  ;;  %v2020_v24 = vld [vmem:[%s2700_s1 + $0x70] sm:$0xff]   ;;  %v2024_v28 = vld [vmem:[%s2700_s1 + $0x78] sm:$0xff]   ;;  %v2033_v35 = vld [vmem:[%s2701_s0 + $0xc] ss:$20 sps:$4 sm:$0xff]  }
   0xa   :  { %1644 = vmatprep.subr.bf16.mxu1 %v2005_v9  ;;  %v2021_v25 = vld [vmem:[%s2700_s1 + $0xf0] sm:$0xff]   ;;  %v2025_v29 = vld [vmem:[%s2700_s1 + $0xf8] sm:$0xff]   ;;  %v2034_v36 = vld [vmem:[%s2700_s1 + $0x100] sm:$0xff]   ;;  %714 = vmatprep.mubr.bf16.mxu1 %v2033_v35 }
   0xb   :  { %v2022_v26 = vld [vmem:[%s2700_s1 + $0x30] sm:$0xff]   ;;  %v2026_v30 = vld [vmem:[%s2700_s1 + $0x38] sm:$0xff]   ;;  %v2035_v37 = vld [vmem:[%s2701_s0 + $0x2c] ss:$20 sps:$4 sm:$0xff]  }
   0xc   :  { %1581 = vmatpush3.bf16.msra.mxu0 %v2006_v10  ;;  %v2023_v27 = vld [vmem:[%s2700_s1 + $0xb0] sm:$0xff]   ;;  %v2027_v31 = vld [vmem:[%s2700_s1 + $0xb8] sm:$0xff]   ;;  %v2047_v42 = vld [vmem:[%s2700_s1 + $0x108] sm:$0xff]  }
   0xd   :  { %1645 = vmatpush3.bf16.msra.mxu1 %v2007_v11  ;;  %1582 = vmatprep.subr.bf16.mxu0 %v2008_v12  ;;  %v2028_v32 = vld [vmem:[%s2701_s0] ss:$20 sps:$4 sm:$0xff]   ;;  %v2030_v33 = vld [vmem:[%s2701_s0 + $0x4] ss:$20 sps:$4 sm:$0xff]   ;;  %v2031_v34 = vld [vmem:[%s2701_s0 + $0x8] ss:$20 sps:$4 sm:$0xff]  }
   0xe   :  { %1646 = vmatprep.subr.bf16.mxu1 %v2009_v13  ;;  %617 = vmatprep.mubr.bf16.mxu0 %v2030_v33  ;;  %v2037_v38 = vld [vmem:[%s2701_s0 + $0x34] ss:$20 sps:$4 sm:$0xff]   ;;  %v2040_v40 = vld [vmem:[%s2701_s0 + $0x30] ss:$20 sps:$4 sm:$0xff]   ;;  %v2046_v45 = vld [vmem:[%s2701_s0 + $0x58] ss:$20 sps:$4 sm:$0xff]  }
   0xf   :  { %v2039_v39 = vld [vmem:[%s2701_s0 + $0x28] ss:$20 sps:$4 sm:$0xff]   ;;  %v2045_v44 = vld [vmem:[%s2701_s0 + $0x50] ss:$20 sps:$4 sm:$0xff]   ;;  %v2052_v50 = vld [vmem:[%s2701_s0 + $0x78] ss:$20 sps:$4 sm:$0xff]  }
  0x10   :  { %1583 = vmatpush3.bf16.msra.mxu0 %v2010_v14  ;;  %v2041_v41 = vld [vmem:[%s2701_s0 + $0x54] ss:$20 sps:$4 sm:$0xff]   ;;  %v2043_v43 = vld [vmem:[%s2701_s0 + $0x5c] ss:$20 sps:$4 sm:$0xff]   ;;  %v2050_v48 = vld [vmem:[%s2701_s0 + $0x84] ss:$20 sps:$4 sm:$0xff]  }
  0x11   :  { %1647 = vmatpush3.bf16.msra.mxu1 %v2011_v15  ;;  %1584 = vmatprep.subr.bf16.mxu0 %v2012_v16  ;;  %v2060_v46 = vld [vmem:[%s2700_s1 + $0x110] sm:$0xff]   ;;  %v2073_v49 = vld [vmem:[%s2700_s1 + $0x118] sm:$0xff]   ;;  %v2056_v53 = vld [vmem:[%s2701_s0 + $0xac] ss:$20 sps:$4 sm:$0xff]  }
  0x12   :  { %1648 = vmatprep.subr.bf16.mxu1 %v2013_v17  ;;  %v2048_v47 = vld [vmem:[%s2701_s0 + $0x7c] ss:$20 sps:$4 sm:$0xff]   ;;  %v2053_v51 = vld [vmem:[%s2701_s0 + $0x80] ss:$20 sps:$4 sm:$0xff]   ;;  %v2054_v52 = vld [vmem:[%s2701_s0 + $0xa4] ss:$20 sps:$4 sm:$0xff]  }
  0x13   :  { %v2058_v54 = vld [vmem:[%s2701_s0 + $0xa0] ss:$20 sps:$4 sm:$0xff]   ;;  %v2059_v55 = vld [vmem:[%s2701_s0 + $0xa8] ss:$20 sps:$4 sm:$0xff]   ;;  %v2066_v59 = vld [vmem:[%s2701_s0 + $0xd0] ss:$20 sps:$4 sm:$0xff]  }
  0x14   :  { %1585 = vmatpush3.bf16.msra.mxu0 %v2014_v18  ;;  %v2061_v56 = vld [vmem:[%s2701_s0 + $0xcc] ss:$20 sps:$4 sm:$0xff]   ;;  %v2063_v57 = vld [vmem:[%s2701_s0 + $0xd4] ss:$20 sps:$4 sm:$0xff]   ;;  %v2069_v61 = vld [vmem:[%s2701_s0 + $0xfc] ss:$20 sps:$4 sm:$0xff]  }
  0x15   :  { %1649 = vmatpush3.bf16.msra.mxu1 %v2015_v19  ;;  %1586 = vmatprep.subr.bf16.mxu0 %v2016_v20  ;;  %v2065_v58 = vld [vmem:[%s2701_s0 + $0xc8] ss:$20 sps:$4 sm:$0xff]   ;;  %v2071_v62 = vld [vmem:[%s2701_s0 + $0xf0] ss:$20 sps:$4 sm:$0xff]   ;;  %v2072_v63 = vld [vmem:[%s2701_s0 + $0xf8] ss:$20 sps:$4 sm:$0xff]  }
  0x16   :  { %1650 = vmatprep.subr.bf16.mxu1 %v2017_v21  ;;  %v2067_v60 = vld [vmem:[%s2701_s0 + $0xf4] ss:$20 sps:$4 sm:$0xff]   ;;  %v2074_v0 = vld [vmem:[%s2701_s0 + $0x11c] ss:$20 sps:$4 sm:$0xff]   ;;  %v2076_v1 = vld [vmem:[%s2701_s0 + $0x124] ss:$20 sps:$4 sm:$0xff]  }
  0x17   :  { %v2078_v2 = vld [vmem:[%s2701_s0 + $0x118] ss:$20 sps:$4 sm:$0xff]   ;;  %v2079_v3 = vld [vmem:[%s2701_s0 + $0x120] ss:$20 sps:$4 sm:$0xff]   ;;  %v2080_v4 = vld [vmem:[%s2701_s0 + $0x10] ss:$20 sps:$4 sm:$0xff]  }
  0x18   :  { %1587 = vmatpush3.bf16.msra.mxu0 %v2018_v22  ;;  %v2081_v5 = vld [vmem:[%s2701_s0 + $0x38] ss:$20 sps:$4 sm:$0xff]   ;;  %v2082_v6 = vld [vmem:[%s2701_s0 + $0x60] ss:$20 sps:$4 sm:$0xff]   ;;  %v2083_v7 = vld [vmem:[%s2701_s0 + $0x88] ss:$20 sps:$4 sm:$0xff]  }
  0x19   :  { %1651 = vmatpush3.bf16.msra.mxu1 %v2019_v23  ;;  %1588 = vmatprep.subr.bf16.mxu0 %v2020_v24  ;;  %v2084_v8 = vld [vmem:[%s2701_s0 + $0xb0] ss:$20 sps:$4 sm:$0xff]   ;;  %v2085_v9 = vld [vmem:[%s2701_s0 + $0xd8] ss:$20 sps:$4 sm:$0xff]   ;;  %v2086_v10 = vld [vmem:[%s2701_s0 + $0x100] ss:$20 sps:$4 sm:$0xff]  }
  0x1a   :  { %1652 = vmatprep.subr.bf16.mxu1 %v2021_v25  ;;  %v2087_v11 = vld [vmem:[%s2701_s0 + $0x128] ss:$20 sps:$4 sm:$0xff]   ;;  %v876_v12 = vld [vmem:[%s2702_s2] sm:$0xff]  ;;  %v878_v15 = vld [vmem:[%s2702_s2 + $0x10] sm:$0xff] }
  0x1b   :  { %v877_v13 = vld [vmem:[%s2702_s2 + $0x8] sm:$0xff]  ;;  %v879_v16 = vld [vmem:[%s2702_s2 + $0x18] sm:$0xff]  ;;  %v880_v18 = vld [vmem:[%s2702_s2 + $0x20] sm:$0xff] }
  0x1c   :  { %1589 = vmatpush3.bf16.msra.mxu0 %v2022_v26  ;;  %v2367_v14 = vpack.c.bf16 %v877_v13, %v876_v12  ;;  %v2379_v17 = vpack.c.bf16 %v879_v16, %v878_v15  ;;  %v881_v19 = vld [vmem:[%s2702_s2 + $0x28] sm:$0xff]  ;;  %v882_v21 = vld [vmem:[%s2702_s2 + $0x30] sm:$0xff]  ;;  %v883_v22 = vld [vmem:[%s2702_s2 + $0x38] sm:$0xff] }
  0x1d   :  { %1653 = vmatpush3.bf16.msra.mxu1 %v2023_v27  ;;  %1590 = vmatprep.subr.bf16.mxu0 %v2024_v28  ;;  %v2391_v20 = vpack.c.bf16 %v881_v19, %v880_v18  ;;  %v2403_v23 = vpack.c.bf16 %v883_v22, %v882_v21  ;;  %v884_v24 = vld [vmem:[%s2702_s2 + $0x40] sm:$0xff]  ;;  %v885_v25 = vld [vmem:[%s2702_s2 + $0x48] sm:$0xff]  ;;  %v886_v27 = vld [vmem:[%s2702_s2 + $0x50] sm:$0xff] }
  0x1e   :  { %1654 = vmatprep.subr.bf16.mxu1 %v2025_v29  ;;  %v2415_v26 = vpack.c.bf16 %v885_v25, %v884_v24  ;;  %v887_v28 = vld [vmem:[%s2702_s2 + $0x58] sm:$0xff]  ;;  %v890_v33 = vld [vmem:[%s2702_s2 + $0x70] sm:$0xff] }
  0x1f   :  { %v2427_v29 = vpack.c.bf16 %v887_v28, %v886_v27 }
  0x20   :  { %1591 = vmatpush3.bf16.msra.mxu0 %v2026_v30  ;;  %v888_v30 = vld [vmem:[%s2702_s2 + $0x60] sm:$0xff] }
  0x21   :  { %1655 = vmatpush3.bf16.msra.mxu1 %v2027_v31  ;;  %1780 = vmatprep.subr.bf16.mxu0 %v2034_v36  ;;  %v889_v31 = vld [vmem:[%s2702_s2 + $0x68] sm:$0xff] }
  0x22   :  { %1917 = vmatprep.subr.bf16.mxu1 %v2367_v14 }
  0x23   :  { %618 = vmatmul.mubr.bf16.vlgmr.msra.gmra.mrb[0].mxu0 %v2028_v32  ;;  %v2439_v32 = vpack.c.bf16 %v889_v31, %v888_v30 }
  0x24   :  { %715 = vmatmul.mubr.bf16.vlgmr.msra.gmra.mrb[0].mxu1 %v2031_v34  ;;  %1781 = vmatpush3.bf16.msra.mxu0 %v2034_v36  ;;  %v891_v34 = vld [vmem:[%s2702_s2 + $0x78] sm:$0xff] }
  0x25   :  { %625 = vmatprep.mubr.bf16.mxu0 %v2035_v37  ;;  %722 = vmatprep.mubr.bf16.mxu1 %v2037_v38  ;;  %v2451_v35 = vpack.c.bf16 %v891_v34, %v890_v33 }
  0x26   :  { %1782 = vmatprep.subr.bf16.mxu0 %v2047_v42  ;;  %1919 = vmatpush3.bf16.msra.mxu1 %v2367_v14 }
  0x27   :  { %1921 = vmatprep.subr.bf16.mxu1 %v2379_v17 }
  0x28   :  { %1783 = vmatpush3.bf16.msra.mxu0 %v2047_v42 }
  0x29   :  { %1784 = vmatprep.subr.bf16.mxu0 %v2060_v46 }
  0x2a   :  { %1923 = vmatpush3.bf16.msra.mxu1 %v2379_v17 }
  0x2b   :  { %626 = vmatmul.mubr.bf16.gmra.mrb[4].mxu0 %v2039_v39  ;;  %1925 = vmatprep.subr.bf16.mxu1 %v2391_v20 }
  0x2c   :  { %723 = vmatmul.mubr.bf16.gmra.mrb[4].mxu1 %v2040_v40  ;;  %633 = vmatprep.mubr.bf16.mxu0 %v2041_v41 }
  0x2d   :  { %730 = vmatprep.mubr.bf16.mxu1 %v2043_v43  ;;  %1785 = vmatpush3.bf16.msra.mxu0 %v2060_v46 }
  0x2e   :  { %1786 = vmatprep.subr.bf16.mxu0 %v2073_v49  ;;  %1927 = vmatpush3.bf16.msra.mxu1 %v2391_v20 }
  0x2f   :  { %1929 = vmatprep.subr.bf16.mxu1 %v2403_v23 }
  0x31   :  { %1787 = vmatpush3.bf16.msra.mxu0 %v2073_v49 }
  0x32   :  { %1949 = vmatprep.subr.bf16.mxu0 %v2367_v14  ;;  %1931 = vmatpush3.bf16.msra.mxu1 %v2403_v23 }
  0x33   :  { %634 = vmatmul.mubr.bf16.gmra.mrb[8].mxu0 %v2045_v44  ;;  %1933 = vmatprep.subr.bf16.mxu1 %v2415_v26 }
  0x34   :  { %731 = vmatmul.mubr.bf16.gmra.mrb[8].mxu1 %v2046_v45  ;;  %641 = vmatprep.mubr.bf16.mxu0 %v2048_v47 }
  0x35   :  { %738 = vmatprep.mubr.bf16.mxu1 %v2050_v48 }
  0x36   :  { %1935 = vmatpush3.bf16.msra.mxu1 %v2415_v26 }
  0x37   :  { %1937 = vmatprep.subr.bf16.mxu1 %v2427_v29 }
  0x3a   :  { %1939 = vmatpush3.bf16.msra.mxu1 %v2427_v29 }
  0x3b   :  { %642 = vmatmul.mubr.bf16.gmra.mrb[12].mxu0 %v2052_v50  ;;  %1941 = vmatprep.subr.bf16.mxu1 %v2439_v32 }
  0x3c   :  { %739 = vmatmul.mubr.bf16.gmra.mrb[12].mxu1 %v2053_v51  ;;  %649 = vmatprep.mubr.bf16.mxu0 %v2054_v52 }
  0x3d   :  { %746 = vmatprep.mubr.bf16.mxu1 %v2056_v53 }
  0x3e   :  { %1943 = vmatpush3.bf16.msra.mxu1 %v2439_v32 }
  0x3f   :  { %1945 = vmatprep.subr.bf16.mxu1 %v2451_v35 }
  0x42   :  { %1947 = vmatpush3.bf16.msra.mxu1 %v2451_v35 }
  0x43   :  { %650 = vmatmul.mubr.bf16.gmra.mrb[16].mxu0 %v2058_v54  ;;  %1980 = vmatprep.subr.bf16.mxu1 %v2367_v14 }
  0x44   :  { %747 = vmatmul.mubr.bf16.gmra.mrb[16].mxu1 %v2059_v55  ;;  %657 = vmatprep.mubr.bf16.mxu0 %v2061_v56 }
  0x45   :  { %754 = vmatprep.mubr.bf16.mxu1 %v2063_v57 }
  0x4b   :  { %658 = vmatmul.mubr.bf16.gmra.mrb[20].mxu0 %v2065_v58 }
  0x4c   :  { %755 = vmatmul.mubr.bf16.gmra.mrb[20].mxu1 %v2066_v59  ;;  %665 = vmatprep.mubr.bf16.mxu0 %v2067_v60 }
  0x4d   :  { %762 = vmatprep.mubr.bf16.mxu1 %v2069_v61 }
  0x53   :  { %666 = vmatmul.mubr.bf16.gmra.mrb[24].mxu0 %v2071_v62 }
  0x54   :  { %763 = vmatmul.mubr.bf16.gmra.mrb[24].mxu1 %v2072_v63  ;;  %673 = vmatprep.mubr.bf16.mxu0 %v2074_v0 }
  0x55   :  { %770 = vmatprep.mubr.bf16.mxu1 %v2076_v1 }
  0x5b   :  { %674 = vmatmul.mubr.bf16.gmra.mrb[28].mxu0 %v2078_v2 }
  0x5c   :  { %771 = vmatmul.mubr.bf16.gmra.mrb[28].mxu1 %v2079_v3  ;;  %1788 = vmatprep.mubr.msk.bf16.mxu0 %vm560_vm0, %v2080_v4 }
  0x63   :  { %1789 = vmatmul.mubr.msk.bf16.vlgmr.msra.gmra.mrb[32].mxu0 %vm560_vm0, %v2081_v5 }
  0x64   :  { %1792 = vmatprep.mubr.msk.bf16.mxu0 %vm560_vm0, %v2082_v6  ;;  %1951 = vmatpush3.bf16.msra.mxu0 %v2367_v14 }
  0x65   :  { %1953 = vmatprep.subr.bf16.mxu0 %v2379_v17 }
  0x68   :  { %1955 = vmatpush3.bf16.msra.mxu0 %v2379_v17 }
  0x69   :  { %1957 = vmatprep.subr.bf16.mxu0 %v2391_v20 }
  0x6b   :  { %1793 = vmatmul.mubr.msk.bf16.gmra.mrb[36].mxu0 %vm560_vm0, %v2083_v7 }
  0x6c   :  { %1796 = vmatprep.mubr.msk.bf16.mxu0 %vm560_vm0, %v2084_v8  ;;  %1959 = vmatpush3.bf16.msra.mxu0 %v2391_v20 }
  0x6d   :  { %1961 = vmatprep.subr.bf16.mxu0 %v2403_v23 }
  0x70   :  { %1963 = vmatpush3.bf16.msra.mxu0 %v2403_v23 }
  0x71   :  { %1965 = vmatprep.subr.bf16.mxu0 %v2415_v26 }
  0x73   :  { %1797 = vmatmul.mubr.msk.bf16.gmra.mrb[40].mxu0 %vm560_vm0, %v2085_v9 }
  0x74   :  { %1800 = vmatprep.mubr.msk.bf16.mxu0 %vm560_vm0, %v2086_v10  ;;  %1967 = vmatpush3.bf16.msra.mxu0 %v2415_v26 }
  0x75   :  { %1969 = vmatprep.subr.bf16.mxu0 %v2427_v29 }
  0x78   :  { %1971 = vmatpush3.bf16.msra.mxu0 %v2427_v29 }
  0x79   :  { %1973 = vmatprep.subr.bf16.mxu0 %v2439_v32 }
  0x7b   :  { %1801 = vmatmul.mubr.msk.bf16.gmra.mrb[44].mxu0 %vm560_vm0, %v2087_v11 }
  0x7c   :  { %1975 = vmatpush3.bf16.msra.mxu0 %v2439_v32 }
  0x7d   :  { %1977 = vmatprep.subr.bf16.mxu0 %v2451_v35 }
  0x80   :  { %1979 = vmatpush3.bf16.msra.mxu0 %v2451_v35 }
  0xf6   :  { %v1592_v36 = vpop.f32.mrb[0].mxu0 }
  0xf7   :  { %v1656_v37 = vpop.f32.mrb[0].mxu1  ;;  %v1593_v38 = vpop.f32.mrb[1].mxu0 }
  0xf8   :  { %v1594_v39 = vadd.f32 %v1593_v38, %v1592_v36  ;;  %v1657_v40 = vpop.f32.mrb[1].mxu1  ;;  %v1595_v41 = vpop.f32.mrb[2].mxu0 }
  0xf9   :  { %v1658_v42 = vadd.f32 %v1657_v40, %v1656_v37  ;;  %v1659_v43 = vpop.f32.mrb[2].mxu1  ;;  %v1596_v44 = vpop.f32.mrb[3].mxu0 }
  0xfa   :  { %v1597_v45 = vadd.f32 %v1596_v44, %v1595_v41  ;;  %v1660_v46 = vpop.f32.mrb[3].mxu1 }
  0xfb   :  { %v1661_v47 = vadd.f32 %v1660_v46, %v1659_v43  ;;  %v2458_v48 = vadd.f32 %v1658_v42, %v1594_v39 }
  0xfd   :  { %v2460_v49 = vadd.f32 %v1661_v47, %v1597_v45 }
  0xfe   :  { %v1598_v50 = vpop.f32.mrb[4].mxu0 }
  0xff   :  { %v1662_v51 = vpop.f32.mrb[4].mxu1  ;;  %v1599_v52 = vpop.f32.mrb[5].mxu0 }
 0x100   :  { %v1600_v53 = vadd.f32 %v1599_v52, %v1598_v50  ;;  %v1663_v54 = vpop.f32.mrb[5].mxu1  ;;  %v1601_v55 = vpop.f32.mrb[6].mxu0 }
 0x101   :  { %v1664_v56 = vadd.f32 %v1663_v54, %v1662_v51  ;;  %v1665_v57 = vpop.f32.mrb[6].mxu1  ;;  %v1602_v58 = vpop.f32.mrb[7].mxu0 }
 0x102   :  { %v1603_v59 = vadd.f32 %v1602_v58, %v1601_v55  ;;  %v1666_v60 = vpop.f32.mrb[7].mxu1 }
 0x103   :  { %v1667_v61 = vadd.f32 %v1666_v60, %v1665_v57  ;;  %v2462_v62 = vadd.f32 %v1664_v56, %v1600_v53 }
 0x105   :  { %v2464_v63 = vadd.f32 %v1667_v61, %v1603_v59 }
 0x106   :  { %v1604_v0 = vpop.f32.mrb[8].mxu0 }
 0x107   :  { %v1668_v1 = vpop.f32.mrb[8].mxu1  ;;  %v1605_v2 = vpop.f32.mrb[9].mxu0 }
 0x108   :  { %v1606_v3 = vadd.f32 %v1605_v2, %v1604_v0  ;;  %v1669_v4 = vpop.f32.mrb[9].mxu1  ;;  %v1607_v5 = vpop.f32.mrb[10].mxu0 }
 0x109   :  { %v1670_v6 = vadd.f32 %v1669_v4, %v1668_v1  ;;  %v1671_v7 = vpop.f32.mrb[10].mxu1  ;;  %v1608_v8 = vpop.f32.mrb[11].mxu0 }
 0x10a   :  { %v1609_v9 = vadd.f32 %v1608_v8, %v1607_v5  ;;  %v1672_v10 = vpop.f32.mrb[11].mxu1 }
 0x10b   :  { %v1673_v11 = vadd.f32 %v1672_v10, %v1671_v7  ;;  %v2466_v12 = vadd.f32 %v1670_v6, %v1606_v3 }
 0x10d   :  { %v2468_v13 = vadd.f32 %v1673_v11, %v1609_v9 }
 0x10e   :  { %v1610_v15 = vpop.f32.mrb[12].mxu0 }
 0x10f   :  { %v1674_v16 = vpop.f32.mrb[12].mxu1  ;;  %v1611_v18 = vpop.f32.mrb[13].mxu0 }
 0x110   :  { %v1612_v19 = vadd.f32 %v1611_v18, %v1610_v15  ;;  %v1675_v21 = vpop.f32.mrb[13].mxu1  ;;  %v1613_v22 = vpop.f32.mrb[14].mxu0 }
 0x111   :  { %v1676_v24 = vadd.f32 %v1675_v21, %v1674_v16  ;;  %v1677_v25 = vpop.f32.mrb[14].mxu1  ;;  %v1614_v27 = vpop.f32.mrb[15].mxu0 }
 0x112   :  { %v1615_v28 = vadd.f32 %v1614_v27, %v1613_v22  ;;  %v1678_v30 = vpop.f32.mrb[15].mxu1 }
 0x113   :  { %v1679_v31 = vadd.f32 %v1678_v30, %v1677_v25  ;;  %v2470_v33 = vadd.f32 %v1676_v24, %v1612_v19 }
 0x115   :  { %v2472_v34 = vadd.f32 %v1679_v31, %v1615_v28 }
 0x116   :  { %v1616_v36 = vpop.f32.mrb[16].mxu0 }
 0x117   :  { %v1680_v37 = vpop.f32.mrb[16].mxu1  ;;  %v1617_v38 = vpop.f32.mrb[17].mxu0 }
 0x118   :  { %v1618_v39 = vadd.f32 %v1617_v38, %v1616_v36  ;;  %v1681_v40 = vpop.f32.mrb[17].mxu1  ;;  %v1619_v41 = vpop.f32.mrb[18].mxu0 }
 0x119   :  { %v1682_v42 = vadd.f32 %v1681_v40, %v1680_v37  ;;  %v1683_v43 = vpop.f32.mrb[18].mxu1  ;;  %v1620_v44 = vpop.f32.mrb[19].mxu0 }
 0x11a   :  { %v1621_v45 = vadd.f32 %v1620_v44, %v1619_v41  ;;  %v1684_v46 = vpop.f32.mrb[19].mxu1 }
 0x11b   :  { %v1685_v47 = vadd.f32 %v1684_v46, %v1683_v43  ;;  %v2474_v50 = vadd.f32 %v1682_v42, %v1618_v39 }
 0x11d   :  { %v2476_v51 = vadd.f32 %v1685_v47, %v1621_v45 }
 0x11e   :  { %v1622_v52 = vpop.f32.mrb[20].mxu0 }
 0x11f   :  { %v1686_v53 = vpop.f32.mrb[20].mxu1  ;;  %v1623_v54 = vpop.f32.mrb[21].mxu0 }
 0x120   :  { %v1624_v55 = vadd.f32 %v1623_v54, %v1622_v52  ;;  %v1687_v56 = vpop.f32.mrb[21].mxu1  ;;  %v1625_v57 = vpop.f32.mrb[22].mxu0 }
 0x121   :  { %v1688_v58 = vadd.f32 %v1687_v56, %v1686_v53  ;;  %v1689_v59 = vpop.f32.mrb[22].mxu1  ;;  %v1626_v60 = vpop.f32.mrb[23].mxu0 }
 0x122   :  { %v1627_v61 = vadd.f32 %v1626_v60, %v1625_v57  ;;  %v1690_v0 = vpop.f32.mrb[23].mxu1 }
 0x123   :  { %v1691_v1 = vadd.f32 %v1690_v0, %v1689_v59  ;;  %v757_v2 = vadd.f32 %v1688_v58, %v1624_v55 }
 0x125   :  { %v2478_v3 = vadd.f32 %v1691_v1, %v1627_v61 }
 0x126   :  { %v1628_v4 = vpop.f32.mrb[24].mxu0 }
 0x127   :  { %v1692_v5 = vpop.f32.mrb[24].mxu1  ;;  %v1629_v6 = vpop.f32.mrb[25].mxu0 }
 0x128   :  { %v1630_v7 = vadd.f32 %v1629_v6, %v1628_v4  ;;  %v1693_v8 = vpop.f32.mrb[25].mxu1  ;;  %v1631_v9 = vpop.f32.mrb[26].mxu0 }
 0x129   :  { %v1694_v10 = vadd.f32 %v1693_v8, %v1692_v5  ;;  %v1695_v11 = vpop.f32.mrb[26].mxu1  ;;  %v1632_v15 = vpop.f32.mrb[27].mxu0 }
 0x12a   :  { %v1633_v16 = vadd.f32 %v1632_v15, %v1631_v9  ;;  %v1696_v18 = vpop.f32.mrb[27].mxu1 }
 0x12b   :  { %v1697_v19 = vadd.f32 %v1696_v18, %v1695_v11  ;;  %v2480_v21 = vadd.f32 %v1694_v10, %v1630_v7 }
 0x12d   :  { %v2482_v22 = vadd.f32 %v1697_v19, %v1633_v16 }
 0x12e   :  { %v1634_v24 = vpop.f32.mrb[28].mxu0 }
 0x12f   :  { %v1698_v25 = vpop.f32.mrb[28].mxu1  ;;  %v1635_v27 = vpop.f32.mrb[29].mxu0 }
 0x130   :  { %v1636_v28 = vadd.f32 %v1635_v27, %v1634_v24  ;;  %v1699_v30 = vpop.f32.mrb[29].mxu1  ;;  %v1637_v31 = vpop.f32.mrb[30].mxu0 }
 0x131   :  { %v1700_v36 = vadd.f32 %v1699_v30, %v1698_v25  ;;  %v1701_v37 = vpop.f32.mrb[30].mxu1  ;;  %v1638_v38 = vpop.f32.mrb[31].mxu0 }
 0x132   :  { %v1639_v39 = vadd.f32 %v1638_v38, %v1637_v31  ;;  %v1702_v40 = vpop.f32.mrb[31].mxu1 }
 0x133   :  { %v1703_v41 = vadd.f32 %v1702_v40, %v1701_v37  ;;  %v773_v42 = vadd.f32 %v1700_v36, %v1636_v28 }
 0x135   :  { %v776_v43 = vadd.f32 %v1703_v41, %v1639_v39 }
 0x136   :  { %v1790_v44 = vpop.f32.mrb[32].mxu0 }
 0x137   :  { %v2485_v45 = vadd.f32 %v1790_v44, %v2462_v62  ;;  %v813_v46 = vpop.f32.mrb[33].mxu0 }
 0x138   :  { %v2488_v47 = vadd.f32 %v813_v46, %v2458_v48  ;;  %v1791_v52 = vpop.f32.mrb[34].mxu0  ;;  %v1060_v46 = vlaneseq }
 0x139   :  { %v2491_v53 = vadd.f32 %v1791_v52, %v2464_v63  ;;  %v816_v54 = vpop.f32.mrb[35].mxu0 }
 0x13a   :  { %v2494_v55 = vadd.f32 %v816_v54, %v2460_v49  ;;  %1836 = vmatprep.mubr.f32.mxu1 %v2488_v47 }
 0x13c   :  { %1837 = vmatmul.mubr.f32.vlgmr.msra.gmra.mrb[32].mxu1 %v2494_v55 }
 0x13d   :  { %1839 = vmatprep.mubr.f32.mxu1 %v2485_v45  ;;  %1988 = vmatpush3.bf16.msra.mxu1 %v2367_v14 }
 0x13e   :  { %v1794_v62 = vpop.f32.mrb[36].mxu0  ;;  %1981 = vmatprep.subr.bf16.mxu1 %v2379_v17 }
 0x13f   :  { %v2502_v48 = vadd.f32 %v1794_v62, %v2470_v33  ;;  %v829_v63 = vpop.f32.mrb[37].mxu0  ;;  %v2560_v62 = vshrl.u32 %v1060_v46, 7 }
 0x140   :  { %v2505_v56 = vadd.f32 %v829_v63, %v2466_v12  ;;  %v1795_v49 = vpop.f32.mrb[38].mxu0  ;;  %1840 = vmatmul.mubr.f32.gmra.mrb[34].mxu1 %v2491_v53 }
 0x141   :  { %v2509_v57 = vadd.f32 %v1795_v49, %v2472_v34  ;;  %v832_v58 = vpop.f32.mrb[39].mxu0  ;;  %1989 = vmatpush3.bf16.msra.mxu1 %v2379_v17  ;;  %v2565_v49 = vld [vmem:[%s2703_s3] sm:$0x1] }
 0x142   :  { %v2513_v14 = vadd.f32 %v832_v58, %v2468_v13  ;;  %1842 = vmatprep.mubr.f32.mxu1 %v2505_v56  ;;  %1982 = vmatprep.subr.bf16.mxu1 %v2391_v20 }
 0x144   :  { %1843 = vmatmul.mubr.f32.gmra.mrb[36].mxu1 %v2513_v14 }
 0x145   :  { %1845 = vmatprep.mubr.f32.mxu1 %v2502_v48  ;;  %1990 = vmatpush3.bf16.msra.mxu1 %v2391_v20 }
 0x146   :  { %v1798_v12 = vpop.f32.mrb[40].mxu0  ;;  %1983 = vmatprep.subr.bf16.mxu1 %v2403_v23 }
 0x147   :  { %v2521_v33 = vadd.f32 %v1798_v12, %v757_v2  ;;  %v845_v34 = vpop.f32.mrb[41].mxu0  ;;  %v1062_v12 = vsub.s32 0, %v2560_v62  ;;  %v1496_v62 = vld [vmem:[%s2705_s5] ss:$0 sm:$0xff] }
 0x148   :  { %v2524_v17 = vadd.f32 %v845_v34, %v2474_v50  ;;  %v1799_v13 = vpop.f32.mrb[42].mxu0  ;;  %1846 = vmatmul.mubr.f32.gmra.mrb[38].mxu1 %v2509_v57 }
 0x149   :  { %v2528_v59 = vadd.f32 %v1799_v13, %v2478_v3  ;;  %v848_v60 = vpop.f32.mrb[43].mxu0  ;;  %1991 = vmatpush3.bf16.msra.mxu1 %v2403_v23 }
 0x14a   :  { %v2532_v20 = vadd.f32 %v848_v60, %v2476_v51  ;;  %1848 = vmatprep.mubr.f32.mxu1 %v2524_v17  ;;  %1984 = vmatprep.subr.bf16.mxu1 %v2415_v26 }
 0x14c   :  { %1849 = vmatmul.mubr.f32.gmra.mrb[40].mxu1 %v2532_v20 }
 0x14d   :  { %1851 = vmatprep.mubr.f32.mxu1 %v2521_v33  ;;  %1992 = vmatpush3.bf16.msra.mxu1 %v2415_v26 }
 0x14e   :  { %v1802_v50 = vpop.f32.mrb[44].mxu0  ;;  %1985 = vmatprep.subr.bf16.mxu1 %v2427_v29 }
 0x14f   :  { %v2540_v61 = vadd.f32 %v1802_v50, %v773_v42  ;;  %v861_v0 = vpop.f32.mrb[45].mxu0 }
 0x150   :  { %v2543_v23 = vadd.f32 %v861_v0, %v2480_v21  ;;  %v1803_v51 = vpop.f32.mrb[46].mxu0  ;;  %1852 = vmatmul.mubr.f32.gmra.mrb[42].mxu1 %v2528_v59 }
 0x151   :  { %v2546_v1 = vadd.f32 %v1803_v51, %v776_v43  ;;  %v864_v2 = vpop.f32.mrb[47].mxu0  ;;  %1993 = vmatpush3.bf16.msra.mxu1 %v2427_v29 }
 0x152   :  { %v2550_v3 = vadd.f32 %v864_v2, %v2482_v22  ;;  %1854 = vmatprep.mubr.f32.mxu1 %v2543_v23  ;;  %1986 = vmatprep.subr.bf16.mxu1 %v2439_v32 }
 0x154   :  { %1855 = vmatmul.mubr.f32.gmra.mrb[44].mxu1 %v2550_v3 }
 0x155   :  { %1857 = vmatprep.mubr.f32.mxu1 %v2540_v61  ;;  %1994 = vmatpush3.bf16.msra.mxu1 %v2439_v32 }
 0x156   :  { %1987 = vmatprep.subr.bf16.mxu1 %v2451_v35 }
 0x158   :  { %1858 = vmatmul.mubr.f32.gmra.mrb[46].mxu1 %v2546_v1 }
 0x159   :  { %1995 = vmatpush3.bf16.msra.mxu1 %v2451_v35 }
 0x20f   :  { %v1838_v26 = vpop.f32.mrb[32].mxu1 }
 0x210   :  { %v959_v29 = vpop.f32.mrb[33].mxu1 }
 0x211   :  { %v1038_v4 = vadd.f32 %v1838_v26, %v959_v29 }
 0x213   :  { %v1841_v5 = vpop.f32.mrb[34].mxu1 }
 0x214   :  { %v969_v6 = vpop.f32.mrb[35].mxu1 }
 0x215   :  { %v1039_v7 = vadd.f32 %v1038_v4, %v969_v6 }
 0x217   :  { %v1844_v8 = vpop.f32.mrb[36].mxu1  ;;  %v1040_v9 = vadd.f32 %v1841_v5, %v1039_v7 }
 0x218   :  { %v979_v10 = vpop.f32.mrb[37].mxu1 }
 0x219   :  { %v1041_v11 = vadd.f32 %v1040_v9, %v979_v10 }
 0x21b   :  { %v1847_v15 = vpop.f32.mrb[38].mxu1  ;;  %v1042_v16 = vadd.f32 %v1844_v8, %v1041_v11 }
 0x21c   :  { %v989_v18 = vpop.f32.mrb[39].mxu1 }
 0x21d   :  { %v1043_v32 = vadd.f32 %v1042_v16, %v989_v18 }
 0x21f   :  { %v1850_v19 = vpop.f32.mrb[40].mxu1  ;;  %v1044_v21 = vadd.f32 %v1847_v15, %v1043_v32 }
 0x220   :  { %v999_v22 = vpop.f32.mrb[41].mxu1 }
 0x221   :  { %v1045_v24 = vadd.f32 %v1044_v21, %v999_v22 }
 0x223   :  { %v1853_v25 = vpop.f32.mrb[42].mxu1  ;;  %v1046_v35 = vadd.f32 %v1850_v19, %v1045_v24 }
 0x224   :  { %v1009_v27 = vpop.f32.mrb[43].mxu1 }
 0x225   :  { %v1047_v28 = vadd.f32 %v1046_v35, %v1009_v27 }
 0x227   :  { %v1856_v30 = vpop.f32.mrb[44].mxu1  ;;  %v1048_v31 = vadd.f32 %v1853_v25, %v1047_v28 }
 0x228   :  { %v1019_v36 = vpop.f32.mrb[45].mxu1 }
 0x229   :  { %v1049_v37 = vadd.f32 %v1048_v31, %v1019_v36 }
 0x22b   :  { %v1859_v38 = vpop.f32.mrb[46].mxu1  ;;  %v1050_v39 = vadd.f32 %v1856_v30, %v1049_v37 }
 0x22c   :  { %v1029_v40 = vpop.f32.mrb[47].mxu1 }
 0x22d   :  { %v1051_v41 = vadd.f32 %v1050_v39, %v1029_v40 }
 0x22f   :  { %v1052_v42 = vadd.f32 %v1859_v38, %v1051_v41 }
 0x231   :  { %v1053_v43 = vrot.slane %v1052_v42, 4 }
 0x233   :  { %v1054_v44 = vadd.f32 %v1053_v43, %v1052_v42 }
 0x235   :  { %v1055_v52 = vrot.slane %v1054_v44, 2 }
 0x237   :  { %v1056_v54 = vadd.f32 %v1055_v52, %v1054_v44 }
 0x239   :  { %v1057_v63 = vrot.slane %v1056_v54, 1 }
 0x23b   :  { %v1058_v58 = vadd.f32 %v1057_v63, %v1056_v54 }
 0x23d   :  { %v1059_v34 = vmul.f32 %v1058_v58, %v2565_v49 }
 0x23f   :  { %v1063_v13 = vrot.slane %v1059_v34, %v1062_v12 }
 0x241   :  { %v2572_v60 = vsub.f32 %v2488_v47, %v1063_v13  ;;  %v2575_v50 = vsub.f32 %v2524_v17, %v1063_v13  ;;  %v2578_v0 = vsub.f32 %v2494_v55, %v1063_v13  ;;  %v2581_v51 = vsub.f32 %v2532_v20, %v1063_v13 }
 0x242   :  { %v2584_v2 = vsub.f32 %v2485_v45, %v1063_v13  ;;  %v2587_v26 = vsub.f32 %v2521_v33, %v1063_v13  ;;  %v2600_v45 = vsub.f32 %v2491_v53, %v1063_v13  ;;  %v2603_v33 = vsub.f32 %v2528_v59, %v1063_v13 }
 0x243   :  { %v1080_v29 = vmul.f32 %v2572_v60, %v2572_v60  ;;  %v1088_v47 = vmul.f32 %v2575_v50, %v2575_v50  ;;  %v1081_v17 = vmul.f32 %v2578_v0, %v2578_v0  ;;  %v1089_v55 = vmul.f32 %v2581_v51, %v2581_v51 }
 0x244   :  { %v1082_v20 = vmul.f32 %v2584_v2, %v2584_v2  ;;  %v1090_v4 = vmul.f32 %v2587_v26, %v2587_v26  ;;  %v2608_v5 = vsub.f32 %v2505_v56, %v1063_v13  ;;  %v2611_v6 = vsub.f32 %v2543_v23, %v1063_v13 }
 0x245   :  { %1892 = vmatprep.mubr.f32.mxu0 %v1080_v29  ;;  %1904 = vmatprep.mubr.f32.mxu1 %v1088_v47  ;;  %v1083_v53 = vmul.f32 %v2600_v45, %v2600_v45  ;;  %v1091_v59 = vmul.f32 %v2603_v33, %v2603_v33  ;;  %v2618_v7 = vsub.f32 %v2513_v14, %v1063_v13 }
 0x246   :  { %1893 = vmatmul.mubr.f32.vlgmr.msra.gmra.mrb[48].mxu0 %v1081_v17  ;;  %1905 = vmatmul.mubr.f32.vlgmr.msra.gmra.mrb[48].mxu1 %v1089_v55  ;;  %v2621_v8 = vsub.f32 %v2550_v3, %v1063_v13  ;;  %v1084_v56 = vmul.f32 %v2608_v5, %v2608_v5  ;;  %v1092_v23 = vmul.f32 %v2611_v6, %v2611_v6 }
 0x247   :  { %1895 = vmatprep.mubr.f32.mxu0 %v1082_v20  ;;  %1907 = vmatprep.mubr.f32.mxu1 %v1090_v4  ;;  %v2628_v9 = vsub.f32 %v2502_v48, %v1063_v13  ;;  %v2631_v10 = vsub.f32 %v2540_v61, %v1063_v13  ;;  %v1085_v14 = vmul.f32 %v2618_v7, %v2618_v7 }
 0x248   :  { %v1093_v3 = vmul.f32 %v2621_v8, %v2621_v8  ;;  %v2638_v11 = vsub.f32 %v2509_v57, %v1063_v13  ;;  %v2641_v15 = vsub.f32 %v2546_v1, %v1063_v13 }
 0x249   :  { %v1086_v48 = vmul.f32 %v2628_v9, %v2628_v9  ;;  %v1094_v61 = vmul.f32 %v2631_v10, %v2631_v10 }
 0x24a   :  { %1896 = vmatmul.mubr.f32.gmra.mrb[50].mxu0 %v1083_v53  ;;  %1908 = vmatmul.mubr.f32.gmra.mrb[50].mxu1 %v1091_v59  ;;  %v1087_v16 = vmul.f32 %v2638_v11, %v2638_v11  ;;  %v1095_v57 = vmul.f32 %v2641_v15, %v2641_v15 }
 0x24b   :  { %1898 = vmatprep.mubr.f32.mxu0 %v1084_v56  ;;  %1910 = vmatprep.mubr.f32.mxu1 %v1092_v23 }
 0x24e   :  { %1899 = vmatmul.mubr.f32.gmra.mrb[52].mxu0 %v1085_v14  ;;  %1911 = vmatmul.mubr.f32.gmra.mrb[52].mxu1 %v1093_v3  ;;  %v1263_v14 = vld [vmem:[%s2704_s4] sm:$0x1] }
 0x24f   :  { %1901 = vmatprep.mubr.f32.mxu0 %v1086_v48  ;;  %1913 = vmatprep.mubr.f32.mxu1 %v1094_v61 }
 0x252   :  { %1902 = vmatmul.mubr.f32.gmra.mrb[54].mxu0 %v1087_v16  ;;  %1914 = vmatmul.mubr.f32.gmra.mrb[54].mxu1 %v1095_v57 }
 0x319   :  { %v1894_v1 = vpop.f32.mrb[48].mxu0  ;;  %v1906_v18 = vpop.f32.mrb[48].mxu1 }
 0x31a   :  { %v1162_v32 = vpop.f32.mrb[49].mxu0  ;;  %v1202_v19 = vpop.f32.mrb[49].mxu1 }
 0x31b   :  { %v1241_v21 = vadd.f32 %v1894_v1, %v1162_v32 }
 0x31d   :  { %v1897_v22 = vpop.f32.mrb[50].mxu0  ;;  %v1909_v24 = vpop.f32.mrb[50].mxu1 }
 0x31e   :  { %v1172_v25 = vpop.f32.mrb[51].mxu0  ;;  %v1212_v35 = vpop.f32.mrb[51].mxu1 }
 0x31f   :  { %v1242_v27 = vadd.f32 %v1241_v21, %v1172_v25 }
 0x321   :  { %v1900_v28 = vpop.f32.mrb[52].mxu0  ;;  %v1912_v30 = vpop.f32.mrb[52].mxu1  ;;  %v1243_v31 = vadd.f32 %v1897_v22, %v1242_v27 }
 0x322   :  { %v1182_v36 = vpop.f32.mrb[53].mxu0  ;;  %v1222_v37 = vpop.f32.mrb[53].mxu1 }
 0x323   :  { %v1244_v38 = vadd.f32 %v1243_v31, %v1182_v36 }
 0x325   :  { %v1903_v39 = vpop.f32.mrb[54].mxu0  ;;  %v1915_v40 = vpop.f32.mrb[54].mxu1  ;;  %v1245_v41 = vadd.f32 %v1900_v28, %v1244_v38 }
 0x326   :  { %v1192_v42 = vpop.f32.mrb[55].mxu0  ;;  %v1232_v43 = vpop.f32.mrb[55].mxu1 }
 0x327   :  { %v1246_v44 = vadd.f32 %v1245_v41, %v1192_v42 }
 0x329   :  { %v1247_v46 = vadd.f32 %v1903_v39, %v1246_v44 }
 0x32b   :  { %v1248_v52 = vadd.f32 %v1247_v46, %v1202_v19 }
 0x32d   :  { %v1249_v54 = vadd.f32 %v1906_v18, %v1248_v52 }
 0x32f   :  { %v1250_v63 = vadd.f32 %v1249_v54, %v1212_v35 }
 0x331   :  { %v1251_v58 = vadd.f32 %v1909_v24, %v1250_v63 }
 0x333   :  { %v1252_v34 = vadd.f32 %v1251_v58, %v1222_v37 }
 0x335   :  { %v1253_v13 = vadd.f32 %v1912_v30, %v1252_v34 }
 0x337   :  { %v1254_v29 = vadd.f32 %v1253_v13, %v1232_v43 }
 0x339   :  { %v1255_v47 = vadd.f32 %v1915_v40, %v1254_v29 }
 0x33b   :  { %v1256_v17 = vrot.slane %v1255_v47, 4 }
 0x33d   :  { %v1257_v55 = vadd.f32 %v1256_v17, %v1255_v47 }
 0x33f   :  { %v1258_v20 = vrot.slane %v1257_v55, 2 }
 0x341   :  { %v1259_v4 = vadd.f32 %v1258_v20, %v1257_v55 }
 0x343   :  { %v1260_v53 = vrot.slane %v1259_v4, 1 }
 0x345   :  { %v1261_v59 = vadd.f32 %v1260_v53, %v1259_v4 }
 0x347   :  { %v1262_v56 = vmul.f32 %v1261_v59, %v2565_v49 }
 0x349   :  { %v1264_v23 = vadd.f32 1e-05, %v1262_v56 }
 0x34b   :  { %2088 = vrsqrt.f32 %v1264_v23 }
 0x355   :  { %v2089_v3 = vpop.eup %2088 }
 0x356   :  { %v1266_v48 = vmul.f32 %v2089_v3, %v1263_v14 }
 0x358   :  { %v1271_v61 = vrot.slane %v1266_v48, %v1062_v12 }
 0x35a   :  { %v1273_v16 = vmul.f32 %v1271_v61, %v2572_v60  ;;  %v1274_v57 = vmul.f32 %v1271_v61, %v2578_v0  ;;  %v1275_v1 = vmul.f32 %v1271_v61, %v2584_v2  ;;  %v1276_v18 = vmul.f32 %v1271_v61, %v2600_v45 }
 0x35b   :  { %v1277_v49 = vmul.f32 %v1271_v61, %v2608_v5  ;;  %v1278_v32 = vmul.f32 %v1271_v61, %v2618_v7  ;;  %v1279_v19 = vmul.f32 %v1271_v61, %v2628_v9  ;;  %v1280_v21 = vmul.f32 %v1271_v61, %v2638_v11 }
 0x35c   :  { %v1281_v12 = vmul.f32 %v1271_v61, %v2575_v50  ;;  %v1282_v60 = vmul.f32 %v1271_v61, %v2581_v51  ;;  %v1283_v0 = vmul.f32 %v1271_v61, %v2587_v26  ;;  %v1284_v2 = vmul.f32 %v1271_v61, %v2603_v33 }
 0x35d   :  { %v1285_v45 = vmul.f32 %v1271_v61, %v2611_v6  ;;  %v1286_v5 = vmul.f32 %v1271_v61, %v2621_v8  ;;  %v1287_v7 = vmul.f32 %v1271_v61, %v2631_v10  ;;  %v1288_v9 = vmul.f32 %v1271_v61, %v2641_v15 }
 0x35e   :  { %v1296_v11 = vadd.f32 %v1496_v62, %v1273_v16  ;;  %v1297_v22 = vadd.f32 %v1496_v62, %v1274_v57  ;;  %v1298_v24 = vadd.f32 %v1496_v62, %v1275_v1  ;;  %v1299_v25 = vadd.f32 %v1496_v62, %v1276_v18 }
 0x35f   :  { %v1300_v35 = vadd.f32 %v1496_v62, %v1277_v49  ;;  %v1301_v50 = vadd.f32 %v1496_v62, %v1278_v32  ;;  %v1302_v27 = vadd.f32 %v1496_v62, %v1279_v19  ;;  %v1303_v51 = vadd.f32 %v1496_v62, %v1280_v21 }
 0x360   :  { %v1304_v28 = vadd.f32 %v1496_v62, %v1281_v12  ;;  %v1305_v26 = vadd.f32 %v1496_v62, %v1282_v60  ;;  %v1306_v30 = vadd.f32 %v1496_v62, %v1283_v0  ;;  %v1307_v33 = vadd.f32 %v1496_v62, %v1284_v2 }
 0x361   :  { %v1308_v31 = vadd.f32 %v1496_v62, %v1285_v45  ;;  %v1309_v6 = vadd.f32 %v1496_v62, %v1286_v5  ;;  %v1310_v36 = vadd.f32 %v1496_v62, %v1287_v7  ;;  %v1311_v8 = vadd.f32 %v1496_v62, %v1288_v9 }
 0x362   :  { %v1312_v37 = vmax.f32 %v1296_v11, 0.0  ;;  %v1313_v10 = vmax.f32 %v1297_v22, 0.0  ;;  %v1314_v38 = vmax.f32 %v1298_v24, 0.0  ;;  %v1315_v15 = vmax.f32 %v1299_v25, 0.0 }
 0x363   :  { %v1316_v39 = vmax.f32 %v1300_v35, 0.0  ;;  %v1317_v40 = vmax.f32 %v1301_v50, 0.0  ;;  %v1318_v41 = vmax.f32 %v1302_v27, 0.0  ;;  %v1319_v42 = vmax.f32 %v1303_v51, 0.0 }
 0x364   :  { %v1320_v43 = vmax.f32 %v1304_v28, 0.0  ;;  %v1321_v44 = vmax.f32 %v1305_v26, 0.0  ;;  %v1322_v46 = vmax.f32 %v1306_v30, 0.0  ;;  %v1323_v52 = vmax.f32 %v1307_v33, 0.0 }
 0x365   :  { %v1324_v54 = vmax.f32 %v1308_v31, 0.0  ;;  %v1325_v63 = vmax.f32 %v1309_v6, 0.0  ;;  %v1326_v58 = vmax.f32 %v1310_v36, 0.0  ;;  %v1327_v34 = vmax.f32 %v1311_v8, 0.0 }
 0x366   :  { %v1532_v13 = vpack.c.bf16 %v1313_v10, %v1312_v37  ;;  %v1537_v29 = vpack.c.bf16 %v1315_v15, %v1314_v38  ;;  %v1542_v47 = vpack.c.bf16 %v1317_v40, %v1316_v39  ;;  %v1547_v17 = vpack.c.bf16 %v1319_v42, %v1318_v41 }
 0x367   :  { %v1552_v55 = vpack.c.bf16 %v1321_v44, %v1320_v43  ;;  %v1557_v20 = vpack.c.bf16 %v1323_v52, %v1322_v46  ;;  %v1562_v4 = vpack.c.bf16 %v1325_v63, %v1324_v54  ;;  %v1567_v53 = vpack.c.bf16 %v1327_v34, %v1326_v58 }
 0x368   :  { %1533 = vst [vmem:[%s2706_s6] sm:$0xff] %v1532_v13   ;;  %1569 = vst [vmem:[%s2706_s6 + $0x8] sm:$0xff] %v1537_v29  }
 0x369   :  { %1570 = vst [vmem:[%s2706_s6 + $0x10] sm:$0xff] %v1542_v47   ;;  %1571 = vst [vmem:[%s2706_s6 + $0x18] sm:$0xff] %v1547_v17  }
 0x36a   :  { %1572 = vst [vmem:[%s2706_s6 + $0x20] sm:$0xff] %v1552_v55   ;;  %1573 = vst [vmem:[%s2706_s6 + $0x28] sm:$0xff] %v1557_v20  }
 0x36b   :  { %1574 = vst [vmem:[%s2706_s6 + $0x30] sm:$0xff] %v1562_v4   ;;  %1575 = vst [vmem:[%s2706_s6 + $0x38] sm:$0xff] %v1567_v53  }

// kernel: autoenc_forward.11
= control target key start
LH: loop header
LB: loop body
LE: loop exit
PB: predicated region body
PF: predicated region fallthrough
CT: control target
= control target key end

     0   :  { %vm796_vm0 = vcmask 523264   ;;  %s2521_s1 = inlined_call_operand.vmem [shape: bf16[576,128], index: 1, kind: input, shape index: {}]   ;;  %s2522_s0 = inlined_call_operand.vmem [shape: bf16[256,576], index: 0, kind: input, shape index: {}]   ;;  %s2523_s2 = inlined_call_operand.vmem [shape: f32[256,128], index: 2, kind: output, shape index: {}]  }
   0x1   :  { %v1796_v0 = vld [vmem:[%s2521_s1 + $0x40] sm:$0xff]   ;;  %v1798_v2 = vld [vmem:[%s2521_s1 + $0x48] sm:$0xff]   ;;  %v1800_v4 = vld [vmem:[%s2521_s1 + $0x50] sm:$0xff]  }
   0x2   :  { %v1797_v1 = vld [vmem:[%s2521_s1] sm:$0xff]   ;;  %1496 = vmatprep.subr.bf16.mxu0 %v1796_v0  ;;  %1780 = vmatprep.subr.bf16.mxu1 %v1796_v0  ;;  %v1799_v3 = vld [vmem:[%s2521_s1 + $0x8] sm:$0xff]   ;;  %v1801_v5 = vld [vmem:[%s2521_s1 + $0x10] sm:$0xff]  }
   0x3   :  { %1497 = vmatpush3.bf16.msra.mxu0 %v1797_v1  ;;  %1788 = vmatpush3.bf16.msra.mxu1 %v1797_v1  ;;  %v1802_v6 = vld [vmem:[%s2521_s1 + $0x58] sm:$0xff]   ;;  %v1804_v8 = vld [vmem:[%s2521_s1 + $0x60] sm:$0xff]   ;;  %v1806_v10 = vld [vmem:[%s2521_s1 + $0x68] sm:$0xff]  }
   0x4   :  { %1498 = vmatprep.subr.bf16.mxu0 %v1798_v2  ;;  %1781 = vmatprep.subr.bf16.mxu1 %v1798_v2  ;;  %v1803_v7 = vld [vmem:[%s2521_s1 + $0x18] sm:$0xff]   ;;  %v1805_v9 = vld [vmem:[%s2521_s1 + $0x20] sm:$0xff]   ;;  %v1807_v13 = vld [vmem:[%s2521_s1 + $0x28] sm:$0xff]  }
   0x5   :  { %v1814_v11 = vld [vmem:[%s2522_s0 + $0x4] ss:$20 sps:$4 sm:$0xff]   ;;  %v1808_v14 = vld [vmem:[%s2521_s1 + $0x70] sm:$0xff]   ;;  %v1820_v23 = vld [vmem:[%s2521_s1 + $0xc8] sm:$0xff]  }
   0x6   :  { %v1817_v12 = vld [vmem:[%s2522_s0 + $0x1e4] ss:$20 sps:$4 sm:$0xff]   ;;  %877 = vmatprep.mubr.bf16.mxu0 %v1814_v11  ;;  %v1809_v15 = vld [vmem:[%s2521_s1 + $0x30] sm:$0xff]   ;;  %v1823_v24 = vld [vmem:[%s2522_s0 + $0x2c] ss:$20 sps:$4 sm:$0xff]  }
   0x7   :  { %1499 = vmatpush3.bf16.msra.mxu0 %v1799_v3  ;;  %1789 = vmatpush3.bf16.msra.mxu1 %v1799_v3  ;;  %v1810_v16 = vld [vmem:[%s2521_s1 + $0x78] sm:$0xff]   ;;  %v1818_v18 = vld [vmem:[%s2521_s1 + $0xc0] sm:$0xff]   ;;  %v1822_v26 = vld [vmem:[%s2521_s1 + $0x88] sm:$0xff]  }
   0x8   :  { %1500 = vmatprep.subr.bf16.mxu0 %v1800_v4  ;;  %1782 = vmatprep.subr.bf16.mxu1 %v1800_v4  ;;  %v1811_v17 = vld [vmem:[%s2521_s1 + $0x38] sm:$0xff]   ;;  %v1821_v19 = vld [vmem:[%s2521_s1 + $0x100] sm:$0xff]   ;;  %v1829_v28 = vld [vmem:[%s2521_s1 + $0xd0] sm:$0xff]  }
   0x9   :  { %973 = vmatprep.mubr.bf16.mxu1 %v1817_v12  ;;  %v1812_v20 = vld [vmem:[%s2522_s0] ss:$20 sps:$4 sm:$0xff]   ;;  %v1827_v27 = vld [vmem:[%s2522_s0 + $0x28] ss:$20 sps:$4 sm:$0xff]   ;;  %v1837_v36 = vld [vmem:[%s2522_s0 + $0x50] ss:$20 sps:$4 sm:$0xff]  }
   0xa   :  { %v1815_v21 = vld [vmem:[%s2522_s0 + $0x1e0] ss:$20 sps:$4 sm:$0xff]   ;;  %v1828_v29 = vld [vmem:[%s2522_s0 + $0x208] ss:$20 sps:$4 sm:$0xff]   ;;  %v1838_v38 = vld [vmem:[%s2522_s0 + $0x230] ss:$20 sps:$4 sm:$0xff]  }
   0xb   :  { %1501 = vmatpush3.bf16.msra.mxu0 %v1801_v5  ;;  %1790 = vmatpush3.bf16.msra.mxu1 %v1801_v5  ;;  %v1819_v22 = vld [vmem:[%s2521_s1 + $0x80] sm:$0xff]   ;;  %v1830_v30 = vld [vmem:[%s2521_s1 + $0x90] sm:$0xff]   ;;  %v1831_v31 = vld [vmem:[%s2521_s1 + $0xd8] sm:$0xff]  }
   0xc   :  { %1502 = vmatprep.subr.bf16.mxu0 %v1802_v6  ;;  %1783 = vmatprep.subr.bf16.mxu1 %v1802_v6  ;;  %v1825_v25 = vld [vmem:[%s2522_s0 + $0x20c] ss:$20 sps:$4 sm:$0xff]   ;;  %v1833_v32 = vld [vmem:[%s2522_s0 + $0x54] ss:$20 sps:$4 sm:$0xff]   ;;  %v1832_v34 = vld [vmem:[%s2521_s1 + $0x98] sm:$0xff]  }
   0xd   :  { %v1835_v33 = vld [vmem:[%s2522_s0 + $0x234] ss:$20 sps:$4 sm:$0xff]   ;;  %v1839_v37 = vld [vmem:[%s2521_s1 + $0xe0] sm:$0xff]   ;;  %v1843_v41 = vld [vmem:[%s2522_s0 + $0x7c] ss:$20 sps:$4 sm:$0xff]  }
   0xe   :  { %v1852_v35 = vld [vmem:[%s2521_s1 + $0x108] sm:$0xff]   ;;  %v1840_v39 = vld [vmem:[%s2521_s1 + $0xa0] sm:$0xff]   ;;  %v1845_v42 = vld [vmem:[%s2522_s0 + $0x25c] ss:$20 sps:$4 sm:$0xff]  }
   0xf   :  { %1503 = vmatpush3.bf16.msra.mxu0 %v1803_v7  ;;  %1791 = vmatpush3.bf16.msra.mxu1 %v1803_v7  ;;  %v1841_v40 = vld [vmem:[%s2521_s1 + $0xe8] sm:$0xff]   ;;  %v1849_v46 = vld [vmem:[%s2521_s1 + $0xf0] sm:$0xff]   ;;  %v1851_v49 = vld [vmem:[%s2521_s1 + $0xf8] sm:$0xff]  }
  0x10   :  { %1504 = vmatprep.subr.bf16.mxu0 %v1804_v8  ;;  %1784 = vmatprep.subr.bf16.mxu1 %v1804_v8  ;;  %v1842_v43 = vld [vmem:[%s2521_s1 + $0xa8] sm:$0xff]   ;;  %v1872_v47 = vld [vmem:[%s2521_s1 + $0x110] sm:$0xff]   ;;  %v1854_v50 = vld [vmem:[%s2522_s0 + $0xa4] ss:$20 sps:$4 sm:$0xff]  }
  0x11   :  { %v1847_v44 = vld [vmem:[%s2522_s0 + $0x78] ss:$20 sps:$4 sm:$0xff]   ;;  %v1850_v48 = vld [vmem:[%s2521_s1 + $0xb0] sm:$0xff]   ;;  %v1856_v53 = vld [vmem:[%s2522_s0 + $0x8] ss:$20 sps:$4 sm:$0xff]  }
  0x12   :  { %v1848_v45 = vld [vmem:[%s2522_s0 + $0x258] ss:$20 sps:$4 sm:$0xff]   ;;  %v1859_v54 = vld [vmem:[%s2522_s0 + $0xa0] ss:$20 sps:$4 sm:$0xff]   ;;  %v1864_v58 = vld [vmem:[%s2522_s0 + $0xc8] ss:$20 sps:$4 sm:$0xff]  }
  0x13   :  { %1505 = vmatpush3.bf16.msra.mxu0 %v1805_v9  ;;  %1792 = vmatpush3.bf16.msra.mxu1 %v1805_v9  ;;  %v1858_v51 = vld [vmem:[%s2522_s0 + $0xc] ss:$20 sps:$4 sm:$0xff]   ;;  %v1853_v52 = vld [vmem:[%s2521_s1 + $0xb8] sm:$0xff]   ;;  %v1862_v57 = vld [vmem:[%s2522_s0 + $0x34] ss:$20 sps:$4 sm:$0xff]  }
  0x14   :  { %1506 = vmatprep.subr.bf16.mxu0 %v1806_v10  ;;  %1785 = vmatprep.subr.bf16.mxu1 %v1806_v10  ;;  %v1860_v55 = vld [vmem:[%s2522_s0 + $0xcc] ss:$20 sps:$4 sm:$0xff]   ;;  %v1891_v56 = vld [vmem:[%s2521_s1 + $0x118] sm:$0xff]   ;;  %v1865_v59 = vld [vmem:[%s2522_s0 + $0x30] ss:$20 sps:$4 sm:$0xff]  }
  0x15   :  { %v1866_v60 = vld [vmem:[%s2522_s0 + $0xf4] ss:$20 sps:$4 sm:$0xff]   ;;  %v1868_v61 = vld [vmem:[%s2522_s0 + $0x5c] ss:$20 sps:$4 sm:$0xff]   ;;  %v1871_v63 = vld [vmem:[%s2522_s0 + $0x58] ss:$20 sps:$4 sm:$0xff]  }
  0x16   :  { %v1870_v62 = vld [vmem:[%s2522_s0 + $0xf0] ss:$20 sps:$4 sm:$0xff]   ;;  %v1877_v2 = vld [vmem:[%s2522_s0 + $0x118] ss:$20 sps:$4 sm:$0xff]   ;;  %v1878_v3 = vld [vmem:[%s2522_s0 + $0x80] ss:$20 sps:$4 sm:$0xff]  }
  0x17   :  { %1507 = vmatpush3.bf16.msra.mxu0 %v1807_v13  ;;  %1793 = vmatpush3.bf16.msra.mxu1 %v1807_v13  ;;  %v1873_v0 = vld [vmem:[%s2522_s0 + $0x11c] ss:$20 sps:$4 sm:$0xff]   ;;  %v1875_v1 = vld [vmem:[%s2522_s0 + $0x84] ss:$20 sps:$4 sm:$0xff]   ;;  %v1881_v5 = vld [vmem:[%s2522_s0 + $0xac] ss:$20 sps:$4 sm:$0xff]  }
  0x18   :  { %1508 = vmatprep.subr.bf16.mxu0 %v1808_v14  ;;  %1786 = vmatprep.subr.bf16.mxu1 %v1808_v14  ;;  %v1879_v4 = vld [vmem:[%s2522_s0 + $0x144] ss:$20 sps:$4 sm:$0xff]   ;;  %v1883_v6 = vld [vmem:[%s2522_s0 + $0x140] ss:$20 sps:$4 sm:$0xff]   ;;  %v1884_v7 = vld [vmem:[%s2522_s0 + $0xa8] ss:$20 sps:$4 sm:$0xff]  }
  0x19   :  { %v1885_v8 = vld [vmem:[%s2522_s0 + $0x16c] ss:$20 sps:$4 sm:$0xff]   ;;  %v1887_v9 = vld [vmem:[%s2522_s0 + $0xd4] ss:$20 sps:$4 sm:$0xff]   ;;  %v1890_v11 = vld [vmem:[%s2522_s0 + $0xd0] ss:$20 sps:$4 sm:$0xff]  }
  0x1a   :  { %v1889_v10 = vld [vmem:[%s2522_s0 + $0x168] ss:$20 sps:$4 sm:$0xff]   ;;  %v1896_v14 = vld [vmem:[%s2522_s0 + $0x190] ss:$20 sps:$4 sm:$0xff]  }
  0x1b   :  { %1509 = vmatpush3.bf16.msra.mxu0 %v1809_v15  ;;  %1794 = vmatpush3.bf16.msra.mxu1 %v1809_v15  ;;  %v1892_v12 = vld [vmem:[%s2522_s0 + $0x194] ss:$20 sps:$4 sm:$0xff]   ;;  %v1894_v13 = vld [vmem:[%s2522_s0 + $0xfc] ss:$20 sps:$4 sm:$0xff]   ;;  %v1897_v15 = vld [vmem:[%s2522_s0 + $0xf8] ss:$20 sps:$4 sm:$0xff]  }
  0x1c   :  { %1510 = vmatprep.subr.bf16.mxu0 %v1810_v16  ;;  %1787 = vmatprep.subr.bf16.mxu1 %v1810_v16  ;;  %v1898_v16 = vld [vmem:[%s2522_s0 + $0x1bc] ss:$20 sps:$4 sm:$0xff]  }
  0x1f   :  { %1511 = vmatpush3.bf16.msra.mxu0 %v1811_v17  ;;  %1795 = vmatpush3.bf16.msra.mxu1 %v1811_v17  ;;  %v1900_v17 = vld [vmem:[%s2522_s0 + $0x124] ss:$20 sps:$4 sm:$0xff]  }
  0x20   :  { %1608 = vmatprep.subr.bf16.mxu1 %v1818_v18  ;;  %1740 = vmatprep.subr.bf16.mxu0 %v1821_v19  ;;  %v1902_v18 = vld [vmem:[%s2522_s0 + $0x1b8] ss:$20 sps:$4 sm:$0xff]  }
  0x22   :  { %878 = vmatmul.mubr.bf16.vlgmr.msra.gmra.mrb[0].mxu0 %v1812_v20  ;;  %974 = vmatmul.mubr.bf16.vlgmr.msra.gmra.mrb[0].mxu1 %v1815_v21  ;;  %v1904_v20 = vld [vmem:[%s2522_s0 + $0x14c] ss:$20 sps:$4 sm:$0xff]   ;;  %v1906_v21 = vld [vmem:[%s2522_s0 + $0x10] ss:$20 sps:$4 sm:$0xff]  }
  0x23   :  { %1609 = vmatpush3.bf16.msra.mxu1 %v1819_v22  ;;  %1741 = vmatpush3.bf16.msra.mxu0 %v1821_v19  ;;  %v1903_v19 = vld [vmem:[%s2522_s0 + $0x120] ss:$20 sps:$4 sm:$0xff]   ;;  %v1907_v22 = vld [vmem:[%s2522_s0 + $0x148] ss:$20 sps:$4 sm:$0xff]  }
  0x24   :  { %1610 = vmatprep.subr.bf16.mxu1 %v1820_v23  ;;  %885 = vmatprep.mubr.bf16.mxu0 %v1823_v24  ;;  %v1908_v23 = vld [vmem:[%s2522_s0 + $0x38] ss:$20 sps:$4 sm:$0xff]   ;;  %v1909_v24 = vld [vmem:[%s2522_s0 + $0x174] ss:$20 sps:$4 sm:$0xff]  }
  0x25   :  { %981 = vmatprep.mubr.bf16.mxu1 %v1825_v25  ;;  %1742 = vmatprep.subr.bf16.mxu0 %v1852_v35  ;;  %v1911_v25 = vld [vmem:[%s2522_s0 + $0x60] ss:$20 sps:$4 sm:$0xff]  }
  0x27   :  { %1611 = vmatpush3.bf16.msra.mxu1 %v1822_v26  ;;  %1743 = vmatpush3.bf16.msra.mxu0 %v1852_v35  ;;  %v1912_v26 = vld [vmem:[%s2522_s0 + $0x170] ss:$20 sps:$4 sm:$0xff]   ;;  %v1923_v35 = vld [vmem:[%s2522_s0 + $0x128] ss:$20 sps:$4 sm:$0xff]  }
  0x28   :  { %1612 = vmatprep.subr.bf16.mxu1 %v1829_v28  ;;  %1744 = vmatprep.subr.bf16.mxu0 %v1872_v47  ;;  %v1914_v28 = vld [vmem:[%s2522_s0 + $0x19c] ss:$20 sps:$4 sm:$0xff]  }
  0x2a   :  { %886 = vmatmul.mubr.bf16.gmra.mrb[4].mxu0 %v1827_v27  ;;  %982 = vmatmul.mubr.bf16.gmra.mrb[4].mxu1 %v1828_v29  ;;  %v1913_v27 = vld [vmem:[%s2522_s0 + $0x88] ss:$20 sps:$4 sm:$0xff]   ;;  %v1916_v29 = vld [vmem:[%s2522_s0 + $0xb0] ss:$20 sps:$4 sm:$0xff]  }
  0x2b   :  { %1613 = vmatpush3.bf16.msra.mxu1 %v1830_v30  ;;  %893 = vmatprep.mubr.bf16.mxu0 %v1833_v32  ;;  %v1917_v30 = vld [vmem:[%s2522_s0 + $0x198] ss:$20 sps:$4 sm:$0xff]  }
  0x2c   :  { %1614 = vmatprep.subr.bf16.mxu1 %v1831_v31  ;;  %989 = vmatprep.mubr.bf16.mxu1 %v1835_v33  ;;  %v1918_v31 = vld [vmem:[%s2522_s0 + $0xd8] ss:$20 sps:$4 sm:$0xff]   ;;  %v1921_v33 = vld [vmem:[%s2522_s0 + $0x100] ss:$20 sps:$4 sm:$0xff]  }
  0x2d   :  { %1745 = vmatpush3.bf16.msra.mxu0 %v1872_v47  ;;  %v1919_v32 = vld [vmem:[%s2522_s0 + $0x1c4] ss:$20 sps:$4 sm:$0xff]  }
  0x2e   :  { %1746 = vmatprep.subr.bf16.mxu0 %v1891_v56  ;;  %v1938_v47 = vld [vmem:[%s2522_s0 + $0x218] ss:$20 sps:$4 sm:$0xff]  }
  0x2f   :  { %1615 = vmatpush3.bf16.msra.mxu1 %v1832_v34  ;;  %v1922_v34 = vld [vmem:[%s2522_s0 + $0x1c0] ss:$20 sps:$4 sm:$0xff]  }
  0x30   :  { %1616 = vmatprep.subr.bf16.mxu1 %v1839_v37  ;;  %v1926_v37 = vld [vmem:[%s2522_s0 + $0x150] ss:$20 sps:$4 sm:$0xff]  }
  0x31   :  { %1747 = vmatpush3.bf16.msra.mxu0 %v1891_v56 }
  0x32   :  { %894 = vmatmul.mubr.bf16.gmra.mrb[8].mxu0 %v1837_v36  ;;  %990 = vmatmul.mubr.bf16.gmra.mrb[8].mxu1 %v1838_v38  ;;  %v1924_v36 = vld [vmem:[%s2522_s0 + $0x1ec] ss:$20 sps:$4 sm:$0xff]   ;;  %v1927_v38 = vld [vmem:[%s2522_s0 + $0x1e8] ss:$20 sps:$4 sm:$0xff]  }
  0x33   :  { %1617 = vmatpush3.bf16.msra.mxu1 %v1840_v39  ;;  %901 = vmatprep.mubr.bf16.mxu0 %v1843_v41  ;;  %v1928_v39 = vld [vmem:[%s2522_s0 + $0x178] ss:$20 sps:$4 sm:$0xff]   ;;  %v1931_v41 = vld [vmem:[%s2522_s0 + $0x1a0] ss:$20 sps:$4 sm:$0xff]  }
  0x34   :  { %1618 = vmatprep.subr.bf16.mxu1 %v1841_v40  ;;  %997 = vmatprep.mubr.bf16.mxu1 %v1845_v42  ;;  %v1929_v40 = vld [vmem:[%s2522_s0 + $0x214] ss:$20 sps:$4 sm:$0xff]   ;;  %v1932_v42 = vld [vmem:[%s2522_s0 + $0x210] ss:$20 sps:$4 sm:$0xff]  }
  0x37   :  { %1619 = vmatpush3.bf16.msra.mxu1 %v1842_v43  ;;  %v1933_v43 = vld [vmem:[%s2522_s0 + $0x1c8] ss:$20 sps:$4 sm:$0xff]  }
  0x38   :  { %1620 = vmatprep.subr.bf16.mxu1 %v1849_v46  ;;  %v1937_v46 = vld [vmem:[%s2522_s0 + $0x238] ss:$20 sps:$4 sm:$0xff]  }
  0x3a   :  { %902 = vmatmul.mubr.bf16.gmra.mrb[12].mxu0 %v1847_v44  ;;  %998 = vmatmul.mubr.bf16.gmra.mrb[12].mxu1 %v1848_v45  ;;  %v1934_v44 = vld [vmem:[%s2522_s0 + $0x23c] ss:$20 sps:$4 sm:$0xff]  }
  0x3b   :  { %1621 = vmatpush3.bf16.msra.mxu1 %v1850_v48  ;;  %909 = vmatprep.mubr.bf16.mxu0 %v1854_v50  ;;  %v1936_v45 = vld [vmem:[%s2522_s0 + $0x1f0] ss:$20 sps:$4 sm:$0xff]   ;;  %v1942_v50 = vld [vmem:[%s2522_s0 + $0x260] ss:$20 sps:$4 sm:$0xff]  }
  0x3c   :  { %1622 = vmatprep.subr.bf16.mxu1 %v1851_v49  ;;  %1038 = vmatprep.mubr.bf16.mxu1 %v1858_v51  ;;  %v1939_v48 = vld [vmem:[%s2522_s0 + $0x264] ss:$20 sps:$4 sm:$0xff]   ;;  %v1941_v49 = vld [vmem:[%s2522_s0 + $0x240] ss:$20 sps:$4 sm:$0xff]   ;;  %v1943_v51 = vld [vmem:[%s2522_s0 + $0x268] ss:$20 sps:$4 sm:$0xff]  }
  0x3f   :  { %1623 = vmatpush3.bf16.msra.mxu1 %v1853_v52 }
  0x42   :  { %910 = vmatmul.mubr.bf16.gmra.mrb[16].mxu0 %v1859_v54  ;;  %1039 = vmatmul.mubr.bf16.vlgmr.msra.gmra.mrb[16].mxu1 %v1856_v53 }
  0x43   :  { %917 = vmatprep.mubr.bf16.mxu0 %v1860_v55  ;;  %1046 = vmatprep.mubr.bf16.mxu1 %v1862_v57 }
  0x4a   :  { %918 = vmatmul.mubr.bf16.gmra.mrb[20].mxu0 %v1864_v58  ;;  %1047 = vmatmul.mubr.bf16.gmra.mrb[20].mxu1 %v1865_v59 }
  0x4b   :  { %925 = vmatprep.mubr.bf16.mxu0 %v1866_v60  ;;  %1054 = vmatprep.mubr.bf16.mxu1 %v1868_v61 }
  0x52   :  { %926 = vmatmul.mubr.bf16.gmra.mrb[24].mxu0 %v1870_v62  ;;  %1055 = vmatmul.mubr.bf16.gmra.mrb[24].mxu1 %v1871_v63 }
  0x53   :  { %933 = vmatprep.mubr.bf16.mxu0 %v1873_v0  ;;  %1062 = vmatprep.mubr.bf16.mxu1 %v1875_v1 }
  0x5a   :  { %934 = vmatmul.mubr.bf16.gmra.mrb[28].mxu0 %v1877_v2  ;;  %1063 = vmatmul.mubr.bf16.gmra.mrb[28].mxu1 %v1878_v3 }
  0x5b   :  { %941 = vmatprep.mubr.bf16.mxu0 %v1879_v4  ;;  %1070 = vmatprep.mubr.bf16.mxu1 %v1881_v5 }
  0x62   :  { %942 = vmatmul.mubr.bf16.gmra.mrb[32].mxu0 %v1883_v6  ;;  %1071 = vmatmul.mubr.bf16.gmra.mrb[32].mxu1 %v1884_v7 }
  0x63   :  { %949 = vmatprep.mubr.bf16.mxu0 %v1885_v8  ;;  %1078 = vmatprep.mubr.bf16.mxu1 %v1887_v9 }
  0x6a   :  { %950 = vmatmul.mubr.bf16.gmra.mrb[36].mxu0 %v1889_v10  ;;  %1079 = vmatmul.mubr.bf16.gmra.mrb[36].mxu1 %v1890_v11 }
  0x6b   :  { %957 = vmatprep.mubr.bf16.mxu0 %v1892_v12  ;;  %1086 = vmatprep.mubr.bf16.mxu1 %v1894_v13 }
  0x72   :  { %958 = vmatmul.mubr.bf16.gmra.mrb[40].mxu0 %v1896_v14  ;;  %1087 = vmatmul.mubr.bf16.gmra.mrb[40].mxu1 %v1897_v15 }
  0x73   :  { %965 = vmatprep.mubr.bf16.mxu0 %v1898_v16  ;;  %1094 = vmatprep.mubr.bf16.mxu1 %v1900_v17 }
  0x7a   :  { %966 = vmatmul.mubr.bf16.gmra.mrb[44].mxu0 %v1902_v18  ;;  %1095 = vmatmul.mubr.bf16.gmra.mrb[44].mxu1 %v1903_v19 }
  0x7b   :  { %1102 = vmatprep.mubr.bf16.mxu1 %v1904_v20  ;;  %1748 = vmatprep.mubr.msk.bf16.mxu0 %vm796_vm0, %v1906_v21 }
  0x82   :  { %1103 = vmatmul.mubr.bf16.gmra.mrb[48].mxu1 %v1907_v22  ;;  %1749 = vmatmul.mubr.msk.bf16.vlgmr.msra.gmra.mrb[48].mxu0 %vm796_vm0, %v1908_v23 }
  0x83   :  { %1110 = vmatprep.mubr.bf16.mxu1 %v1909_v24  ;;  %1752 = vmatprep.mubr.msk.bf16.mxu0 %vm796_vm0, %v1911_v25 }
  0x8a   :  { %1111 = vmatmul.mubr.bf16.gmra.mrb[52].mxu1 %v1912_v26  ;;  %1753 = vmatmul.mubr.msk.bf16.gmra.mrb[52].mxu0 %vm796_vm0, %v1913_v27 }
  0x8b   :  { %1118 = vmatprep.mubr.bf16.mxu1 %v1914_v28  ;;  %1756 = vmatprep.mubr.msk.bf16.mxu0 %vm796_vm0, %v1916_v29 }
  0x92   :  { %1119 = vmatmul.mubr.bf16.gmra.mrb[56].mxu1 %v1917_v30  ;;  %1757 = vmatmul.mubr.msk.bf16.gmra.mrb[56].mxu0 %vm796_vm0, %v1918_v31 }
  0x93   :  { %1126 = vmatprep.mubr.bf16.mxu1 %v1919_v32  ;;  %1760 = vmatprep.mubr.msk.bf16.mxu0 %vm796_vm0, %v1921_v33 }
  0x9a   :  { %1127 = vmatmul.mubr.bf16.gmra.mrb[60].mxu1 %v1922_v34  ;;  %1761 = vmatmul.mubr.msk.bf16.gmra.mrb[60].mxu0 %vm796_vm0, %v1923_v35 }
  0x9b   :  { %1134 = vmatprep.mubr.bf16.mxu1 %v1924_v36  ;;  %1764 = vmatprep.mubr.msk.bf16.mxu0 %vm796_vm0, %v1926_v37 }
  0xa2   :  { %1135 = vmatmul.mubr.bf16.gmra.mrb[64].mxu1 %v1927_v38  ;;  %1765 = vmatmul.mubr.msk.bf16.gmra.mrb[64].mxu0 %vm796_vm0, %v1928_v39 }
  0xa3   :  { %1142 = vmatprep.mubr.bf16.mxu1 %v1929_v40  ;;  %1768 = vmatprep.mubr.msk.bf16.mxu0 %vm796_vm0, %v1931_v41 }
  0xaa   :  { %1143 = vmatmul.mubr.bf16.gmra.mrb[68].mxu1 %v1932_v42  ;;  %1769 = vmatmul.mubr.msk.bf16.gmra.mrb[68].mxu0 %vm796_vm0, %v1933_v43 }
  0xab   :  { %1150 = vmatprep.mubr.bf16.mxu1 %v1934_v44  ;;  %1772 = vmatprep.mubr.msk.bf16.mxu0 %vm796_vm0, %v1936_v45 }
  0xb2   :  { %1151 = vmatmul.mubr.bf16.gmra.mrb[72].mxu1 %v1937_v46  ;;  %1773 = vmatmul.mubr.msk.bf16.gmra.mrb[72].mxu0 %vm796_vm0, %v1938_v47 }
  0xb3   :  { %1158 = vmatprep.mubr.bf16.mxu1 %v1939_v48  ;;  %1776 = vmatprep.mubr.msk.bf16.mxu0 %vm796_vm0, %v1941_v49 }
  0xba   :  { %1159 = vmatmul.mubr.bf16.gmra.mrb[76].mxu1 %v1942_v50  ;;  %1777 = vmatmul.mubr.msk.bf16.gmra.mrb[76].mxu0 %vm796_vm0, %v1943_v51 }
  0xf5   :  { %v1584_v52 = vpop.f32.mrb[0].mxu1  ;;  %v1512_v53 = vpop.f32.mrb[0].mxu0 }
  0xf6   :  { %v1585_v54 = vpop.f32.mrb[1].mxu1  ;;  %v1513_v55 = vpop.f32.mrb[1].mxu0 }
  0xf7   :  { %v2323_v56 = vadd.f32 %v1585_v54, %v1584_v52  ;;  %v1587_v57 = vpop.f32.mrb[2].mxu1  ;;  %v1514_v58 = vadd.f32 %v1513_v55, %v1512_v53  ;;  %v1515_v59 = vpop.f32.mrb[2].mxu0 }
  0xf8   :  { %v1588_v60 = vpop.f32.mrb[3].mxu1  ;;  %v1516_v61 = vpop.f32.mrb[3].mxu0 }
  0xf9   :  { %v2325_v62 = vadd.f32 %v1588_v60, %v1587_v57  ;;  %v1517_v63 = vadd.f32 %v1516_v61, %v1515_v59 }
  0xfd   :  { %v1590_v0 = vpop.f32.mrb[4].mxu1  ;;  %v1518_v1 = vpop.f32.mrb[4].mxu0 }
  0xfe   :  { %v1591_v2 = vpop.f32.mrb[5].mxu1  ;;  %v1519_v3 = vpop.f32.mrb[5].mxu0 }
  0xff   :  { %v2327_v4 = vadd.f32 %v1591_v2, %v1590_v0  ;;  %v1593_v5 = vpop.f32.mrb[6].mxu1  ;;  %v1520_v6 = vadd.f32 %v1519_v3, %v1518_v1  ;;  %v1521_v7 = vpop.f32.mrb[6].mxu0 }
 0x100   :  { %v1594_v8 = vpop.f32.mrb[7].mxu1  ;;  %v1522_v9 = vpop.f32.mrb[7].mxu0 }
 0x101   :  { %v2329_v10 = vadd.f32 %v1594_v8, %v1593_v5  ;;  %v1523_v11 = vadd.f32 %v1522_v9, %v1521_v7 }
 0x105   :  { %v1596_v12 = vpop.f32.mrb[8].mxu1  ;;  %v1524_v13 = vpop.f32.mrb[8].mxu0 }
 0x106   :  { %v1597_v14 = vpop.f32.mrb[9].mxu1  ;;  %v1525_v15 = vpop.f32.mrb[9].mxu0 }
 0x107   :  { %v2331_v16 = vadd.f32 %v1597_v14, %v1596_v12  ;;  %v1599_v17 = vpop.f32.mrb[10].mxu1  ;;  %v1526_v18 = vadd.f32 %v1525_v15, %v1524_v13  ;;  %v1527_v19 = vpop.f32.mrb[10].mxu0 }
 0x108   :  { %v1600_v20 = vpop.f32.mrb[11].mxu1  ;;  %v1528_v21 = vpop.f32.mrb[11].mxu0 }
 0x109   :  { %v2333_v22 = vadd.f32 %v1600_v20, %v1599_v17  ;;  %v1529_v23 = vadd.f32 %v1528_v21, %v1527_v19 }
 0x10d   :  { %v1602_v24 = vpop.f32.mrb[12].mxu1  ;;  %v1530_v25 = vpop.f32.mrb[12].mxu0 }
 0x10e   :  { %v1603_v26 = vpop.f32.mrb[13].mxu1  ;;  %v1531_v27 = vpop.f32.mrb[13].mxu0 }
 0x10f   :  { %v2335_v28 = vadd.f32 %v1603_v26, %v1602_v24  ;;  %v1605_v29 = vpop.f32.mrb[14].mxu1  ;;  %v1532_v30 = vadd.f32 %v1531_v27, %v1530_v25  ;;  %v1533_v31 = vpop.f32.mrb[14].mxu0 }
 0x110   :  { %v1606_v32 = vpop.f32.mrb[15].mxu1  ;;  %v1534_v33 = vpop.f32.mrb[15].mxu0 }
 0x111   :  { %v2337_v34 = vadd.f32 %v1606_v32, %v1605_v29  ;;  %v1535_v35 = vadd.f32 %v1534_v33, %v1533_v31 }
 0x115   :  { %v1624_v36 = vpop.f32.mrb[16].mxu1  ;;  %v1536_v37 = vpop.f32.mrb[16].mxu0 }
 0x116   :  { %v1625_v38 = vpop.f32.mrb[17].mxu1  ;;  %v1537_v39 = vpop.f32.mrb[17].mxu0 }
 0x117   :  { %v1626_v40 = vadd.f32 %v1625_v38, %v1624_v36  ;;  %v1627_v41 = vpop.f32.mrb[18].mxu1  ;;  %v1538_v42 = vadd.f32 %v1537_v39, %v1536_v37  ;;  %v1539_v43 = vpop.f32.mrb[18].mxu0 }
 0x118   :  { %v1628_v44 = vpop.f32.mrb[19].mxu1  ;;  %v1540_v45 = vpop.f32.mrb[19].mxu0 }
 0x119   :  { %v1629_v46 = vadd.f32 %v1628_v44, %v1627_v41  ;;  %v1541_v47 = vadd.f32 %v1540_v45, %v1539_v43  ;;  %v2339_v48 = vadd.f32 %v1626_v40, %v1514_v58 }
 0x11b   :  { %v2341_v49 = vadd.f32 %v1629_v46, %v1517_v63 }
 0x11d   :  { %v1630_v50 = vpop.f32.mrb[20].mxu1  ;;  %v1542_v51 = vpop.f32.mrb[20].mxu0 }
 0x11e   :  { %v1631_v52 = vpop.f32.mrb[21].mxu1  ;;  %v1543_v53 = vpop.f32.mrb[21].mxu0 }
 0x11f   :  { %v1632_v54 = vadd.f32 %v1631_v52, %v1630_v50  ;;  %v1633_v55 = vpop.f32.mrb[22].mxu1  ;;  %v1544_v57 = vadd.f32 %v1543_v53, %v1542_v51  ;;  %v1545_v59 = vpop.f32.mrb[22].mxu0 }
 0x120   :  { %v1634_v60 = vpop.f32.mrb[23].mxu1  ;;  %v1546_v61 = vpop.f32.mrb[23].mxu0 }
 0x121   :  { %v1635_v0 = vadd.f32 %v1634_v60, %v1633_v55  ;;  %v1547_v1 = vadd.f32 %v1546_v61, %v1545_v59  ;;  %v2343_v2 = vadd.f32 %v1632_v54, %v1520_v6 }
 0x123   :  { %v2345_v3 = vadd.f32 %v1635_v0, %v1523_v11 }
 0x125   :  { %v1636_v58 = vpop.f32.mrb[24].mxu1  ;;  %v1548_v5 = vpop.f32.mrb[24].mxu0 }
 0x126   :  { %v1637_v63 = vpop.f32.mrb[25].mxu1  ;;  %v1549_v7 = vpop.f32.mrb[25].mxu0 }
 0x127   :  { %v1638_v8 = vadd.f32 %v1637_v63, %v1636_v58  ;;  %v1639_v9 = vpop.f32.mrb[26].mxu1  ;;  %v1550_v12 = vadd.f32 %v1549_v7, %v1548_v5  ;;  %v1551_v13 = vpop.f32.mrb[26].mxu0 }
 0x128   :  { %v1640_v14 = vpop.f32.mrb[27].mxu1  ;;  %v1552_v15 = vpop.f32.mrb[27].mxu0 }
 0x129   :  { %v1641_v17 = vadd.f32 %v1640_v14, %v1639_v9  ;;  %v1553_v19 = vadd.f32 %v1552_v15, %v1551_v13  ;;  %v2347_v20 = vadd.f32 %v1638_v8, %v1526_v18 }
 0x12b   :  { %v2349_v21 = vadd.f32 %v1641_v17, %v1529_v23 }
 0x12d   :  { %v1642_v6 = vpop.f32.mrb[28].mxu1  ;;  %v1554_v24 = vpop.f32.mrb[28].mxu0 }
 0x12e   :  { %v1643_v11 = vpop.f32.mrb[29].mxu1  ;;  %v1555_v25 = vpop.f32.mrb[29].mxu0 }
 0x12f   :  { %v1644_v26 = vadd.f32 %v1643_v11, %v1642_v6  ;;  %v1645_v27 = vpop.f32.mrb[30].mxu1  ;;  %v1556_v29 = vadd.f32 %v1555_v25, %v1554_v24  ;;  %v1557_v31 = vpop.f32.mrb[30].mxu0 }
 0x130   :  { %v1646_v32 = vpop.f32.mrb[31].mxu1  ;;  %v1558_v33 = vpop.f32.mrb[31].mxu0 }
 0x131   :  { %v1647_v36 = vadd.f32 %v1646_v32, %v1645_v27  ;;  %v1559_v37 = vadd.f32 %v1558_v33, %v1557_v31  ;;  %v2351_v38 = vadd.f32 %v1644_v26, %v1532_v30 }
 0x133   :  { %v2353_v39 = vadd.f32 %v1647_v36, %v1535_v35 }
 0x135   :  { %v1648_v18 = vpop.f32.mrb[32].mxu1  ;;  %v1560_v40 = vpop.f32.mrb[32].mxu0 }
 0x136   :  { %v1649_v23 = vpop.f32.mrb[33].mxu1  ;;  %v1561_v41 = vpop.f32.mrb[33].mxu0 }
 0x137   :  { %v1650_v43 = vadd.f32 %v1649_v23, %v1648_v18  ;;  %v1651_v44 = vpop.f32.mrb[34].mxu1  ;;  %v2355_v45 = vadd.f32 %v1561_v41, %v1560_v40  ;;  %v1563_v46 = vpop.f32.mrb[34].mxu0 }
 0x138   :  { %v1652_v50 = vpop.f32.mrb[35].mxu1  ;;  %v1564_v51 = vpop.f32.mrb[35].mxu0 }
 0x139   :  { %v1653_v52 = vadd.f32 %v1652_v50, %v1651_v44  ;;  %v2357_v53 = vadd.f32 %v1564_v51, %v1563_v46  ;;  %v2359_v54 = vadd.f32 %v1650_v43, %v1538_v42 }
 0x13b   :  { %v2361_v30 = vadd.f32 %v1653_v52, %v1541_v47 }
 0x13d   :  { %v1654_v35 = vpop.f32.mrb[36].mxu1  ;;  %v1566_v55 = vpop.f32.mrb[36].mxu0 }
 0x13e   :  { %v1655_v59 = vpop.f32.mrb[37].mxu1  ;;  %v1567_v60 = vpop.f32.mrb[37].mxu0 }
 0x13f   :  { %v1656_v61 = vadd.f32 %v1655_v59, %v1654_v35  ;;  %v1657_v0 = vpop.f32.mrb[38].mxu1  ;;  %v2363_v58 = vadd.f32 %v1567_v60, %v1566_v55  ;;  %v1569_v5 = vpop.f32.mrb[38].mxu0 }
 0x140   :  { %v1658_v63 = vpop.f32.mrb[39].mxu1  ;;  %v1570_v7 = vpop.f32.mrb[39].mxu0 }
 0x141   :  { %v1659_v8 = vadd.f32 %v1658_v63, %v1657_v0  ;;  %v2365_v9 = vadd.f32 %v1570_v7, %v1569_v5  ;;  %v2367_v13 = vadd.f32 %v1656_v61, %v1544_v57 }
 0x143   :  { %v2369_v42 = vadd.f32 %v1659_v8, %v1547_v1 }
 0x145   :  { %v1660_v47 = vpop.f32.mrb[40].mxu1  ;;  %v1572_v14 = vpop.f32.mrb[40].mxu0 }
 0x146   :  { %v1661_v15 = vpop.f32.mrb[41].mxu1  ;;  %v1573_v17 = vpop.f32.mrb[41].mxu0 }
 0x147   :  { %v1662_v6 = vadd.f32 %v1661_v15, %v1660_v47  ;;  %v1663_v24 = vpop.f32.mrb[42].mxu1  ;;  %v2371_v11 = vadd.f32 %v1573_v17, %v1572_v14  ;;  %v1575_v25 = vpop.f32.mrb[42].mxu0 }
 0x148   :  { %v1664_v26 = vpop.f32.mrb[43].mxu1  ;;  %v1576_v27 = vpop.f32.mrb[43].mxu0 }
 0x149   :  { %v1665_v31 = vadd.f32 %v1664_v26, %v1663_v24  ;;  %v2373_v32 = vadd.f32 %v1576_v27, %v1575_v25  ;;  %v2375_v33 = vadd.f32 %v1662_v6, %v1550_v12 }
 0x14b   :  { %v2377_v57 = vadd.f32 %v1665_v31, %v1553_v19 }
 0x14d   :  { %v1666_v1 = vpop.f32.mrb[44].mxu1  ;;  %v1578_v36 = vpop.f32.mrb[44].mxu0 }
 0x14e   :  { %v1667_v18 = vpop.f32.mrb[45].mxu1  ;;  %v1579_v40 = vpop.f32.mrb[45].mxu0 }
 0x14f   :  { %v1668_v23 = vadd.f32 %v1667_v18, %v1666_v1  ;;  %v1669_v41 = vpop.f32.mrb[46].mxu1  ;;  %v2379_v43 = vadd.f32 %v1579_v40, %v1578_v36  ;;  %v1581_v44 = vpop.f32.mrb[46].mxu0 }
 0x150   :  { %v1670_v46 = vpop.f32.mrb[47].mxu1  ;;  %v1582_v50 = vpop.f32.mrb[47].mxu0 }
 0x151   :  { %v1671_v51 = vadd.f32 %v1670_v46, %v1669_v41  ;;  %v2381_v52 = vadd.f32 %v1582_v50, %v1581_v44  ;;  %v2383_v35 = vadd.f32 %v1668_v23, %v1556_v29 }
 0x153   :  { %v2385_v12 = vadd.f32 %v1671_v51, %v1559_v37 }
 0x155   :  { %v1672_v19 = vpop.f32.mrb[48].mxu1  ;;  %v1750_v55 = vpop.f32.mrb[48].mxu0 }
 0x156   :  { %v1210_v59 = vadd.f32 %v1750_v55, %v2343_v2  ;;  %v1673_v60 = vpop.f32.mrb[49].mxu1  ;;  %v1201_v61 = vpop.f32.mrb[49].mxu0 }
 0x157   :  { %v1674_v0 = vadd.f32 %v1673_v60, %v1672_v19  ;;  %v1202_v5 = vadd.f32 %v1201_v61, %v2339_v48  ;;  %v1675_v63 = vpop.f32.mrb[50].mxu1  ;;  %v1751_v7 = vpop.f32.mrb[50].mxu0 }
 0x158   :  { %1330 = vst [vmem:[%s2523_s2 + $0x10] sm:$0xff] %v1210_v59  ;;  %v1213_v29 = vadd.f32 %v1751_v7, %v2345_v3  ;;  %v1676_v8 = vpop.f32.mrb[51].mxu1  ;;  %v1204_v37 = vpop.f32.mrb[51].mxu0 }
 0x159   :  { %1328 = vst [vmem:[%s2523_s2] sm:$0xff] %v1202_v5  ;;  %v1677_v2 = vadd.f32 %v1676_v8, %v1675_v63  ;;  %v1205_v47 = vadd.f32 %v1204_v37, %v2341_v49  ;;  %v2398_v14 = vadd.f32 %v1674_v0, %v2355_v45 }
 0x15a   :  { %1331 = vst [vmem:[%s2523_s2 + $0x18] sm:$0xff] %v1213_v29 }
 0x15b   :  { %1329 = vst [vmem:[%s2523_s2 + $0x8] sm:$0xff] %v1205_v47  ;;  %v2407_v48 = vadd.f32 %v1677_v2, %v2357_v53 }
 0x15d   :  { %v1678_v3 = vpop.f32.mrb[52].mxu1  ;;  %v1754_v15 = vpop.f32.mrb[52].mxu0 }
 0x15e   :  { %v1226_v17 = vadd.f32 %v1754_v15, %v2351_v38  ;;  %v1679_v6 = vpop.f32.mrb[53].mxu1  ;;  %v1217_v49 = vpop.f32.mrb[53].mxu0 }
 0x15f   :  { %v1680_v24 = vadd.f32 %v1679_v6, %v1678_v3  ;;  %v1218_v45 = vadd.f32 %v1217_v49, %v2347_v20  ;;  %v1681_v25 = vpop.f32.mrb[54].mxu1  ;;  %v1755_v26 = vpop.f32.mrb[54].mxu0 }
 0x160   :  { %1334 = vst [vmem:[%s2523_s2 + $0x30] sm:$0xff] %v1226_v17  ;;  %v1229_v27 = vadd.f32 %v1755_v26, %v2353_v39  ;;  %v1682_v31 = vpop.f32.mrb[55].mxu1  ;;  %v1220_v53 = vpop.f32.mrb[55].mxu0 }
 0x161   :  { %1332 = vst [vmem:[%s2523_s2 + $0x20] sm:$0xff] %v1218_v45  ;;  %v1683_v38 = vadd.f32 %v1682_v31, %v1681_v25  ;;  %v1221_v1 = vadd.f32 %v1220_v53, %v2349_v21  ;;  %v1113_v36 = vadd.f32 %v1680_v24, %v2363_v58 }
 0x162   :  { %1335 = vst [vmem:[%s2523_s2 + $0x38] sm:$0xff] %v1229_v27 }
 0x163   :  { %1333 = vst [vmem:[%s2523_s2 + $0x28] sm:$0xff] %v1221_v1  ;;  %v1116_v20 = vadd.f32 %v1683_v38, %v2365_v9 }
 0x165   :  { %v1684_v39 = vpop.f32.mrb[56].mxu1  ;;  %v1758_v18 = vpop.f32.mrb[56].mxu0 }
 0x166   :  { %v1242_v40 = vadd.f32 %v1758_v18, %v2367_v13  ;;  %v1685_v23 = vpop.f32.mrb[57].mxu1  ;;  %v1233_v41 = vpop.f32.mrb[57].mxu0 }
 0x167   :  { %v1686_v44 = vadd.f32 %v1685_v23, %v1684_v39  ;;  %v1234_v21 = vadd.f32 %v1233_v41, %v2359_v54  ;;  %v1687_v58 = vpop.f32.mrb[58].mxu1  ;;  %v1759_v46 = vpop.f32.mrb[58].mxu0 }
 0x168   :  { %1338 = vst [vmem:[%s2523_s2 + $0x50] sm:$0xff] %v1242_v40  ;;  %v1245_v50 = vadd.f32 %v1759_v46, %v2369_v42  ;;  %v1688_v51 = vpop.f32.mrb[59].mxu1  ;;  %v1236_v19 = vpop.f32.mrb[59].mxu0 }
 0x169   :  { %1336 = vst [vmem:[%s2523_s2 + $0x40] sm:$0xff] %v1234_v21  ;;  %v1689_v9 = vadd.f32 %v1688_v51, %v1687_v58  ;;  %v1237_v13 = vadd.f32 %v1236_v19, %v2361_v30  ;;  %v1121_v55 = vadd.f32 %v1686_v44, %v2371_v11 }
 0x16a   :  { %1339 = vst [vmem:[%s2523_s2 + $0x58] sm:$0xff] %v1245_v50 }
 0x16b   :  { %1337 = vst [vmem:[%s2523_s2 + $0x48] sm:$0xff] %v1237_v13  ;;  %v1124_v54 = vadd.f32 %v1689_v9, %v2373_v32 }
 0x16d   :  { %v1690_v42 = vpop.f32.mrb[60].mxu1  ;;  %v1762_v59 = vpop.f32.mrb[60].mxu0 }
 0x16e   :  { %v1258_v60 = vadd.f32 %v1762_v59, %v2383_v35  ;;  %v1691_v61 = vpop.f32.mrb[61].mxu1  ;;  %v1249_v0 = vpop.f32.mrb[61].mxu0 }
 0x16f   :  { %v1692_v5 = vadd.f32 %v1691_v61, %v1690_v42  ;;  %v1250_v30 = vadd.f32 %v1249_v0, %v2375_v33  ;;  %v1693_v11 = vpop.f32.mrb[62].mxu1  ;;  %v1763_v63 = vpop.f32.mrb[62].mxu0 }
 0x170   :  { %1342 = vst [vmem:[%s2523_s2 + $0x70] sm:$0xff] %v1258_v60  ;;  %v1261_v7 = vadd.f32 %v1763_v63, %v2385_v12  ;;  %v1694_v29 = vpop.f32.mrb[63].mxu1  ;;  %v1252_v8 = vpop.f32.mrb[63].mxu0 }
 0x171   :  { %1340 = vst [vmem:[%s2523_s2 + $0x60] sm:$0xff] %v1250_v30  ;;  %v1695_v32 = vadd.f32 %v1694_v29, %v1693_v11  ;;  %v1253_v35 = vadd.f32 %v1252_v8, %v2377_v57  ;;  %v1129_v37 = vadd.f32 %v1692_v5, %v2379_v43 }
 0x172   :  { %1343 = vst [vmem:[%s2523_s2 + $0x78] sm:$0xff] %v1261_v7 }
 0x173   :  { %1341 = vst [vmem:[%s2523_s2 + $0x68] sm:$0xff] %v1253_v35  ;;  %v1132_v33 = vadd.f32 %v1695_v32, %v2381_v52 }
 0x175   :  { %v1696_v12 = vpop.f32.mrb[64].mxu1  ;;  %v1766_v2 = vpop.f32.mrb[64].mxu0 }
 0x176   :  { %v1274_v47 = vadd.f32 %v1766_v2, %v1113_v36  ;;  %v1697_v3 = vpop.f32.mrb[65].mxu1  ;;  %v1265_v15 = vpop.f32.mrb[65].mxu0 }
 0x177   :  { %v1698_v17 = vadd.f32 %v1697_v3, %v1696_v12  ;;  %v1266_v57 = vadd.f32 %v1265_v15, %v2398_v14  ;;  %v1699_v6 = vpop.f32.mrb[66].mxu1  ;;  %v1767_v43 = vpop.f32.mrb[66].mxu0 }
 0x178   :  { %1346 = vst [vmem:[%s2523_s2 + $0x90] sm:$0xff] %v1274_v47  ;;  %v1277_v49 = vadd.f32 %v1767_v43, %v1116_v20  ;;  %v1700_v24 = vpop.f32.mrb[67].mxu1  ;;  %v1268_v45 = vpop.f32.mrb[67].mxu0 }
 0x179   :  { %1344 = vst [vmem:[%s2523_s2 + $0x80] sm:$0xff] %v1266_v57  ;;  %v1701_v52 = vadd.f32 %v1700_v24, %v1699_v6  ;;  %v1269_v25 = vadd.f32 %v1268_v45, %v2407_v48  ;;  %v1137_v26 = vadd.f32 %v1698_v17, %v2323_v56 }
 0x17a   :  { %1347 = vst [vmem:[%s2523_s2 + $0x98] sm:$0xff] %v1277_v49 }
 0x17b   :  { %1345 = vst [vmem:[%s2523_s2 + $0x88] sm:$0xff] %v1269_v25  ;;  %v1140_v14 = vadd.f32 %v1701_v52, %v2325_v62 }
 0x17d   :  { %v1702_v27 = vpop.f32.mrb[68].mxu1  ;;  %v1770_v31 = vpop.f32.mrb[68].mxu0 }
 0x17e   :  { %v1290_v53 = vadd.f32 %v1770_v31, %v1129_v37  ;;  %v1703_v38 = vpop.f32.mrb[69].mxu1  ;;  %v1281_v1 = vpop.f32.mrb[69].mxu0 }
 0x17f   :  { %v1704_v36 = vadd.f32 %v1703_v38, %v1702_v27  ;;  %v1282_v20 = vadd.f32 %v1281_v1, %v1121_v55  ;;  %v1705_v48 = vpop.f32.mrb[70].mxu1  ;;  %v1771_v39 = vpop.f32.mrb[70].mxu0 }
 0x180   :  { %1350 = vst [vmem:[%s2523_s2 + $0xb0] sm:$0xff] %v1290_v53  ;;  %v1293_v56 = vadd.f32 %v1771_v39, %v1132_v33  ;;  %v1706_v18 = vpop.f32.mrb[71].mxu1  ;;  %v1284_v40 = vpop.f32.mrb[71].mxu0 }
 0x181   :  { %1348 = vst [vmem:[%s2523_s2 + $0xa0] sm:$0xff] %v1282_v20  ;;  %v1707_v62 = vadd.f32 %v1706_v18, %v1705_v48  ;;  %v1285_v23 = vadd.f32 %v1284_v40, %v1124_v54  ;;  %v1145_v41 = vadd.f32 %v1704_v36, %v2327_v4 }
 0x182   :  { %1351 = vst [vmem:[%s2523_s2 + $0xb8] sm:$0xff] %v1293_v56 }
 0x183   :  { %1349 = vst [vmem:[%s2523_s2 + $0xa8] sm:$0xff] %v1285_v23  ;;  %v1148_v44 = vadd.f32 %v1707_v62, %v2329_v10 }
 0x185   :  { %v1708_v21 = vpop.f32.mrb[72].mxu1  ;;  %v1774_v58 = vpop.f32.mrb[72].mxu0 }
 0x186   :  { %v1306_v46 = vadd.f32 %v1774_v58, %v1145_v41  ;;  %v1709_v50 = vpop.f32.mrb[73].mxu1  ;;  %v1297_v51 = vpop.f32.mrb[73].mxu0 }
 0x187   :  { %v1710_v19 = vadd.f32 %v1709_v50, %v1708_v21  ;;  %v1298_v9 = vadd.f32 %v1297_v51, %v1137_v26  ;;  %v1711_v13 = vpop.f32.mrb[74].mxu1  ;;  %v1775_v55 = vpop.f32.mrb[74].mxu0 }
 0x188   :  { %1354 = vst [vmem:[%s2523_s2 + $0xd0] sm:$0xff] %v1306_v46  ;;  %v1309_v4 = vadd.f32 %v1775_v55, %v1148_v44  ;;  %v1712_v54 = vpop.f32.mrb[75].mxu1  ;;  %v1300_v42 = vpop.f32.mrb[75].mxu0 }
 0x189   :  { %1352 = vst [vmem:[%s2523_s2 + $0xc0] sm:$0xff] %v1298_v9  ;;  %v1713_v10 = vadd.f32 %v1712_v54, %v1711_v13  ;;  %v1301_v59 = vadd.f32 %v1300_v42, %v1140_v14  ;;  %v1153_v60 = vadd.f32 %v1710_v19, %v2331_v16 }
 0x18a   :  { %1355 = vst [vmem:[%s2523_s2 + $0xd8] sm:$0xff] %v1309_v4 }
 0x18b   :  { %1353 = vst [vmem:[%s2523_s2 + $0xc8] sm:$0xff] %v1301_v59  ;;  %v1156_v61 = vadd.f32 %v1713_v10, %v2333_v22 }
 0x18d   :  { %v1714_v0 = vpop.f32.mrb[76].mxu1  ;;  %v1778_v5 = vpop.f32.mrb[76].mxu0 }
 0x18e   :  { %v1715_v30 = vpop.f32.mrb[77].mxu1  ;;  %v1313_v11 = vpop.f32.mrb[77].mxu0 }
 0x18f   :  { %v1716_v63 = vadd.f32 %v1715_v30, %v1714_v0  ;;  %v1314_v7 = vadd.f32 %v1313_v11, %v1153_v60  ;;  %v1717_v29 = vpop.f32.mrb[78].mxu1  ;;  %v1779_v8 = vpop.f32.mrb[78].mxu0 }
 0x190   :  { %v1718_v32 = vpop.f32.mrb[79].mxu1  ;;  %v1316_v16 = vpop.f32.mrb[79].mxu0 }
 0x191   :  { %v1161_v35 = vadd.f32 %v1716_v63, %v2335_v28  ;;  %1356 = vst [vmem:[%s2523_s2 + $0xe0] sm:$0xff] %v1314_v7  ;;  %v1719_v37 = vadd.f32 %v1718_v32, %v1717_v29  ;;  %v1317_v33 = vadd.f32 %v1316_v16, %v1156_v61 }
 0x193   :  { %v1322_v12 = vadd.f32 %v1778_v5, %v1161_v35  ;;  %v1164_v22 = vadd.f32 %v1719_v37, %v2337_v34  ;;  %1357 = vst [vmem:[%s2523_s2 + $0xe8] sm:$0xff] %v1317_v33 }
 0x195   :  { %1358 = vst [vmem:[%s2523_s2 + $0xf0] sm:$0xff] %v1322_v12  ;;  %v1325_v2 = vadd.f32 %v1779_v8, %v1164_v22 }
 0x197   :  { %1359 = vst [vmem:[%s2523_s2 + $0xf8] sm:$0xff] %v1325_v2 }

</bundles_post_ra>
